<compile_context>
chip_gen: v6e
topology: v6e:2x2x1
jax: 0.10.0
libtpu: 0.0.40
codegen_flags: <defaults>
</compile_context>

<pallas_src>
from types import SimpleNamespace

import numpy as np
import jax
import jax.numpy as jnp
from jax import lax
from jax.experimental import pallas as pl
from jax.experimental.pallas import tpu as pltpu

LANES = 128  # lane-dense channel padding for all slabs / matmul operands


# ---------------------------------------------------------------------------
# Static per-layer plan (shapes, strides, activations) derived from config.
# ---------------------------------------------------------------------------
def build_plan(cfg):
    n = cfg.conv_layers_app
    plan = []
    h = w = cfg.img_size
    for i in range(n):
        cin = cfg.channels_app[n - 1 - i]
        cout = (cfg.channels_app[n - 2 - i] if i != n - 1
                else cfg.channels_app[-1] * 2)
        k = cfg.kernel_sizes_app[i]
        s = cfg.strides_app[i]
        p = cfg.pads_app[i]
        h_out = (h + 2 * p - k) // s + 1
        w_out = (w + 2 * p - k) // s + 1
        # Faithful to the PyTorch source: the *appearance* encoder selects the
        # sigmoid position via conv_layers_geo (they coincide in this config).
        act = "sigmoid" if i == cfg.conv_layers_geo - 1 else "relu"
        plan.append(SimpleNamespace(cin=cin, cout=cout, k=k, s=s, p=p,
                                    h_in=h, w_in=w, h_out=h_out, w_out=w_out,
                                    act=act))
        h, w = h_out, w_out
    return plan


# ---------------------------------------------------------------------------
# Parameters (PyTorch layout, deterministic uniform init).
# ---------------------------------------------------------------------------
def make_params(cfg, key):
    params = {"conv": []}
    plan = build_plan(cfg)
    for L in plan:
        fan_in = L.cin * L.k * L.k
        bound = 1.0 / np.sqrt(fan_in)
        key, k1, k2 = jax.random.split(key, 3)
        w = jax.random.uniform(k1, (L.cout, L.cin, L.k, L.k), jnp.float32,
                               -bound, bound)            # OIHW like nn.Conv2d
        b = jax.random.uniform(k2, (L.cout,), jnp.float32, -bound, bound)
        params["conv"].append((w, b, L.k, L.s, L.p, L.act))

    fc_in = (cfg.img_size // 16) * (cfg.img_size // 16) * cfg.channels_app[0] * 2
    fc_out = 2 * cfg.z_dim_app
    bound = 1.0 / np.sqrt(fc_in)
    key, k1, k2 = jax.random.split(key, 3)
    w_fc = jax.random.uniform(k1, (fc_out, fc_in), jnp.float32, -bound, bound)
    b_fc = jax.random.uniform(k2, (fc_out,), jnp.float32, -bound, bound)
    params["fc"] = (w_fc, b_fc)
    return params


# ---------------------------------------------------------------------------
# One-time (hoisted) repack of the weights into the kernel's matmul layout.
# ---------------------------------------------------------------------------
def pack_kernel_params(params, cfg, plan):
    z = cfg.z_dim_app
    packed = []
    for (w, b, k, s, p, act), L in zip(params["conv"], plan):
        assert L.cin <= LANES and L.cout <= LANES
        # OIHW -> (k*k, Cin, Cout), zero-padded to (k*k, 128, 128).
        wk = jnp.transpose(w, (2, 3, 1, 0)).reshape(k * k, L.cin, L.cout)
        wk_pad = jnp.zeros((k * k, LANES, LANES), jnp.float32)
        wk_pad = wk_pad.at[:, :L.cin, :L.cout].set(wk)
        b_pad = jnp.zeros((1, LANES), jnp.float32).at[0, :L.cout].set(b)
        packed += [wk_pad, b_pad]

    w_fc, b_fc = params["fc"]                       # (2z, fc_in), (2z,)
    last = plan[-1]
    hw = last.h_out * last.w_out
    cout = last.cout
    assert w_fc.shape[1] == hw * cout and 2 * z <= LANES
    # Output columns: [mu_0..mu_{z-1}, ls_0..ls_{z-1}] = interleaved original
    # FC outputs (2n, 2n+1)  -> mu/logsigma split is free in the kernel.
    col_perm = np.concatenate([np.arange(z) * 2, np.arange(z) * 2 + 1])
    w_perm = w_fc[col_perm]                         # (2z, fc_in)
    b_perm = b_fc[col_perm]
    # Input rows: kernel row p*128 + c  <->  torch CHW-flat index c*hw + p.
    w_pcn = jnp.transpose(w_perm.reshape(2 * z, cout, hw), (2, 1, 0))  # (p,c,n)
    blk = jnp.zeros((hw, LANES, 2 * z), jnp.float32).at[:, :cout, :].set(w_pcn)
    fcw = jnp.zeros((hw * LANES, LANES), jnp.float32)
    fcw = fcw.at[:, :2 * z].set(blk.reshape(hw * LANES, 2 * z))
    fcb = jnp.zeros((1, LANES), jnp.float32).at[0, :2 * z].set(b_perm)
    packed += [fcw, fcb]
    return packed


# ---------------------------------------------------------------------------
# Fused Pallas kernel: staged-in padded image -> 4 convs -> FC -> (mu, ls).
# ---------------------------------------------------------------------------
def _make_kernel(plan, z_dim):
    n_layers = len(plan)

    def kernel(*refs):
        img_ref = refs[0]
        conv_refs = refs[1:1 + 2 * n_layers]
        fcw_ref = refs[1 + 2 * n_layers]
        fcb_ref = refs[2 + 2 * n_layers]
        mu_ref = refs[3 + 2 * n_layers]
        ls_ref = refs[4 + 2 * n_layers]
        slabs = (refs[5 + 2 * n_layers], refs[6 + 2 * n_layers])

        # ---- stage the input image (HWC rows, channels on lanes) into the
        # ---- zero-padded slab for layer 0
        L0 = plan[0]
        wp0 = L0.w_in + 2 * L0.p
        slabs[0][...] = jnp.zeros_like(slabs[0])
        x_img = img_ref[0]                                  # (H*W, Cin)
        for h in range(L0.h_in):
            slabs[0][pl.ds((h + L0.p) * wp0 + L0.p, L0.w_in), 0:L0.cin] = \
                x_img[h * L0.w_in:(h + 1) * L0.w_in, :]

        cur = 0
        final = None
        for li, L in enumerate(plan):
            in_slab = slabs[cur]
            w_ref = conv_refs[2 * li]
            b_ref = conv_refs[2 * li + 1]
            wp_in = L.w_in + 2 * L.p
            m_rows = L.h_out * L.w_out

            # conv = KH*KW accumulating matmuls over shifted/strided VMEM views
            acc = jnp.zeros((m_rows, LANES), jnp.float32)
            for i in range(L.k):
                for j in range(L.k):
                    rows = []
                    for oh in range(L.h_out):
                        start = (i + L.s * oh) * wp_in + j
                        if L.s > 1 and L.w_out > 1:
                            idx = pl.ds(start, L.w_out, stride=L.s)
                        else:
                            idx = pl.ds(start, L.w_out)
                        rows.append(in_slab[idx, :])        # (w_out, 128)
                    patch = (rows[0] if len(rows) == 1
                             else jnp.concatenate(rows, axis=0))
                    acc = acc + jnp.dot(patch, w_ref[i * L.k + j],
                                        preferred_element_type=jnp.float32)
            acc = acc + b_ref[...]                          # (1,128) broadcast
            acc = (jax.nn.sigmoid(acc) if L.act == "sigmoid"
                   else jnp.maximum(acc, 0.0))

            if li + 1 < n_layers:
                # write activation rows into the next layer's zero-padded slab
                nxt = plan[li + 1]
                out_slab = slabs[1 - cur]
                wp_out = nxt.w_in + 2 * nxt.p
                out_slab[...] = jnp.zeros_like(out_slab)
                for oh in range(L.h_out):
                    out_slab[pl.ds((oh + nxt.p) * wp_out + nxt.p, L.w_out), :] = \
                        acc[oh * L.w_out:(oh + 1) * L.w_out, :]
                cur = 1 - cur
            else:
                final = acc                                 # (hw_last, 128)

        # ---- FC (+ReLU) with pre-permuted/padded weight, then mu/ls split
        hw = plan[-1].h_out * plan[-1].w_out
        fc_acc = jnp.zeros((1, LANES), jnp.float32)
        for p_ in range(hw):
            fc_acc = fc_acc + jnp.dot(final[p_:p_ + 1, :],
                                      fcw_ref[p_ * LANES:(p_ + 1) * LANES, :],
                                      preferred_element_type=jnp.float32)
        out = jnp.maximum(fc_acc + fcb_ref[...], 0.0)       # (1, 128)
        mu_ref[0] = out[:, 0:z_dim]
        ls_ref[0] = out[:, z_dim:2 * z_dim]

    return kernel


def _const_index_map(nd):
    return lambda b: (0,) * nd


# ---------------------------------------------------------------------------
# Forward wrapper: one pallas_call, grid over batch (parallel).
# ---------------------------------------------------------------------------
def encoder_appearance_forward(img_nchw, kparams, cfg, plan):
    B, cin, H, W = img_nchw.shape
    assert cin == plan[0].cin and H == cfg.img_size and W == cfg.img_size
    z = cfg.z_dim_app

    # the only wrapper-side data movement: NCHW -> (B, H*W, Cin) HWC rows
    x = jnp.transpose(img_nchw, (0, 2, 3, 1)).reshape(B, H * W, cin)
    x = x.astype(jnp.float32)

    max_rows = max((L.h_in + 2 * L.p) * (L.w_in + 2 * L.p) for L in plan)
    max_rows = ((max_rows + 7) // 8) * 8

    in_specs = [pl.BlockSpec((1, H * W, cin), lambda b: (b, 0, 0))]
    for arr in kparams:
        in_specs.append(pl.BlockSpec(arr.shape, _const_index_map(arr.ndim)))
    out_specs = (pl.BlockSpec((1, 1, z), lambda b: (b, 0, 0)),
                 pl.BlockSpec((1, 1, z), lambda b: (b, 0, 0)))

    mu, ls = pl.pallas_call(
        _make_kernel(plan, z),
        out_shape=(jax.ShapeDtypeStruct((B, 1, z), jnp.float32),
                   jax.ShapeDtypeStruct((B, 1, z), jnp.float32)),
        grid=(B,),
        in_specs=in_specs,
        out_specs=out_specs,
        scratch_shapes=[pltpu.VMEM((max_rows, LANES), jnp.float32),
                        pltpu.VMEM((max_rows, LANES), jnp.float32)],
        compiler_params=pltpu.CompilerParams(
            dimension_semantics=("parallel",)),
    )(x, *kparams)
    return mu.reshape(B, z), ls.reshape(B, z)


# ---------------------------------------------------------------------------
# Pure-JAX reference (correctness check only), per-sample semantics.
# ---------------------------------------------------------------------------
def reference_forward(img_nchw, params, cfg):
    x = img_nchw
    for (w, b, k, s, p, act) in params["conv"]:
        x = lax.conv_general_dilated(
            x, w, window_strides=(s, s), padding=[(p, p), (p, p)],
            dimension_numbers=("NCHW", "OIHW", "NCHW"))
        x = x + b[None, :, None, None]
        x = jax.nn.sigmoid(x) if act == "sigmoid" else jnp.maximum(x, 0.0)
    B = x.shape[0]
    flat = x.reshape(B, -1)                                 # per-sample CHW
    w_fc, b_fc = params["fc"]
    out = jnp.maximum(flat @ w_fc.T + b_fc[None, :], 0.0)
    out = out.reshape(B, cfg.z_dim_app, 2)
    return out[..., 0], out[..., 1]


if __name__ == "__main__":
    cfg = SimpleNamespace(
        img_size=16,
        z_dim_app=4,
        conv_layers_app=4,
        conv_layers_geo=4,
        channels_app=[4, 8, 8, 4],      # input image channels = channels_app[-1]
        kernel_sizes_app=[3, 3, 3, 3],
        strides_app=[2, 2, 2, 2],
        pads_app=[1, 1, 1, 1],
    )

    key = jax.random.PRNGKey(0)
    key, pkey, xkey = jax.random.split(key, 3)
    params = make_params(cfg, pkey)
    plan = build_plan(cfg)
    kparams = pack_kernel_params(params, cfg, plan)   # hoisted, done once

    B = 2
    img = jax.random.normal(
        xkey, (B, cfg.channels_app[-1], cfg.img_size, cfg.img_size),
        jnp.float32)

    fwd = jax.jit(lambda im, kp: encoder_appearance_forward(im, kp, cfg, plan))
    mu, logsigma = jax.block_until_ready(fwd(img, kparams))

    mu_ref, logsigma_ref = reference_forward(img, params, cfg)
    assert mu.shape == (B, cfg.z_dim_app) and logsigma.shape == (B, cfg.z_dim_app)
    np.testing.assert_allclose(np.asarray(mu), np.asarray(mu_ref),
                               rtol=3e-4, atol=1e-5)
    np.testing.assert_allclose(np.asarray(logsigma), np.asarray(logsigma_ref),
                               rtol=3e-4, atol=1e-5)

    print("KERNEL_OK")
</pallas_src>

<mosaic_0001>
module attributes {stable_mosaic.version = 11 : i64} {
  func.func @kernel(%arg0: i32, %arg1: memref<1x256x4xf32, #tpu.memory_space<vmem>>, %arg2: memref<9x128x128xf32, #tpu.memory_space<vmem>>, %arg3: memref<1x128xf32, #tpu.memory_space<vmem>>, %arg4: memref<9x128x128xf32, #tpu.memory_space<vmem>>, %arg5: memref<1x128xf32, #tpu.memory_space<vmem>>, %arg6: memref<9x128x128xf32, #tpu.memory_space<vmem>>, %arg7: memref<1x128xf32, #tpu.memory_space<vmem>>, %arg8: memref<9x128x128xf32, #tpu.memory_space<vmem>>, %arg9: memref<1x128xf32, #tpu.memory_space<vmem>>, %arg10: memref<128x128xf32, #tpu.memory_space<vmem>>, %arg11: memref<1x128xf32, #tpu.memory_space<vmem>>, %arg12: memref<1x1x4xf32, #tpu.memory_space<vmem>>, %arg13: memref<1x1x4xf32, #tpu.memory_space<vmem>>, %arg14: memref<328x128xf32, #tpu.memory_space<vmem>>, %arg15: memref<328x128xf32, #tpu.memory_space<vmem>>) attributes {dimension_semantics = [#tpu.dimension_semantics<parallel>], iteration_bounds = array<i64: 2>, scalar_prefetch = 0 : i64, scratch_operands = 2 : i64, tpu.core_type = #tpu.core_type<tc>, window_params = [{transform_indices = @transform_0, window_bounds = array<i64: 1, 256, 4>}, {pipeline_mode = #tpu.pipeline_mode<synchronous>, transform_indices = @transform_1, window_bounds = array<i64: 9, 128, 128>}, {pipeline_mode = #tpu.pipeline_mode<synchronous>, transform_indices = @transform_2, window_bounds = array<i64: 1, 128>}, {pipeline_mode = #tpu.pipeline_mode<synchronous>, transform_indices = @transform_3, window_bounds = array<i64: 9, 128, 128>}, {pipeline_mode = #tpu.pipeline_mode<synchronous>, transform_indices = @transform_4, window_bounds = array<i64: 1, 128>}, {pipeline_mode = #tpu.pipeline_mode<synchronous>, transform_indices = @transform_5, window_bounds = array<i64: 9, 128, 128>}, {pipeline_mode = #tpu.pipeline_mode<synchronous>, transform_indices = @transform_6, window_bounds = array<i64: 1, 128>}, {pipeline_mode = #tpu.pipeline_mode<synchronous>, transform_indices = @transform_7, window_bounds = array<i64: 9, 128, 128>}, {pipeline_mode = #tpu.pipeline_mode<synchronous>, transform_indices = @transform_8, window_bounds = array<i64: 1, 128>}, {pipeline_mode = #tpu.pipeline_mode<synchronous>, transform_indices = @transform_9, window_bounds = array<i64: 128, 128>}, {pipeline_mode = #tpu.pipeline_mode<synchronous>, transform_indices = @transform_10, window_bounds = array<i64: 1, 128>}, {transform_indices = @transform_11, window_bounds = array<i64: 1, 1, 4>}, {transform_indices = @transform_12, window_bounds = array<i64: 1, 1, 4>}]} {
    %cst = arith.constant 0.000000e+00 : f32
    %0 = vector.broadcast %cst : f32 to vector<328x128xf32>
    %c0 = arith.constant 0 : index
    %c0_0 = arith.constant 0 : index
    %1 = vector.load %arg14[%c0, %c0_0] : memref<328x128xf32, #tpu.memory_space<vmem>>, vector<328x128xf32>
    tpu.vector_store %arg14[%c0, %c0_0], %0 {strides = array<i32>} : memref<328x128xf32, #tpu.memory_space<vmem>>, vector<328x128xf32>,
    %c0_1 = arith.constant 0 : index
    %c0_2 = arith.constant 0 : index
    %c0_3 = arith.constant 0 : index
    %2 = vector.load %arg1[%c0_1, %c0_2, %c0_3] : memref<1x256x4xf32, #tpu.memory_space<vmem>>, vector<1x256x4xf32>
    %3 = vector.shape_cast %2 : vector<1x256x4xf32> to vector<256x4xf32>
    %4 = vector.extract_strided_slice %3 {offsets = [0, 0], sizes = [16, 4], strides = [1, 1]} : vector<256x4xf32> to vector<16x4xf32>
    %c19 = arith.constant 19 : index
    %c0_4 = arith.constant 0 : index
    %5 = vector.load %arg14[%c19, %c0_4] : memref<328x128xf32, #tpu.memory_space<vmem>>, vector<16x4xf32>
    tpu.vector_store %arg14[%c19, %c0_4], %4 {strides = array<i32>} : memref<328x128xf32, #tpu.memory_space<vmem>>, vector<16x4xf32>,
    %6 = vector.extract_strided_slice %3 {offsets = [16, 0], sizes = [16, 4], strides = [1, 1]} : vector<256x4xf32> to vector<16x4xf32>
    %c37 = arith.constant 37 : index
    %c0_5 = arith.constant 0 : index
    %7 = vector.load %arg14[%c37, %c0_5] : memref<328x128xf32, #tpu.memory_space<vmem>>, vector<16x4xf32>
    tpu.vector_store %arg14[%c37, %c0_5], %6 {strides = array<i32>} : memref<328x128xf32, #tpu.memory_space<vmem>>, vector<16x4xf32>,
    %8 = vector.extract_strided_slice %3 {offsets = [32, 0], sizes = [16, 4], strides = [1, 1]} : vector<256x4xf32> to vector<16x4xf32>
    %c55 = arith.constant 55 : index
    %c0_6 = arith.constant 0 : index
    %9 = vector.load %arg14[%c55, %c0_6] : memref<328x128xf32, #tpu.memory_space<vmem>>, vector<16x4xf32>
    tpu.vector_store %arg14[%c55, %c0_6], %8 {strides = array<i32>} : memref<328x128xf32, #tpu.memory_space<vmem>>, vector<16x4xf32>,
    %10 = vector.extract_strided_slice %3 {offsets = [48, 0], sizes = [16, 4], strides = [1, 1]} : vector<256x4xf32> to vector<16x4xf32>
    %c73 = arith.constant 73 : index
    %c0_7 = arith.constant 0 : index
    %11 = vector.load %arg14[%c73, %c0_7] : memref<328x128xf32, #tpu.memory_space<vmem>>, vector<16x4xf32>
    tpu.vector_store %arg14[%c73, %c0_7], %10 {strides = array<i32>} : memref<328x128xf32, #tpu.memory_space<vmem>>, vector<16x4xf32>,
    %12 = vector.extract_strided_slice %3 {offsets = [64, 0], sizes = [16, 4], strides = [1, 1]} : vector<256x4xf32> to vector<16x4xf32>
    %c91 = arith.constant 91 : index
    %c0_8 = arith.constant 0 : index
    %13 = vector.load %arg14[%c91, %c0_8] : memref<328x128xf32, #tpu.memory_space<vmem>>, vector<16x4xf32>
    tpu.vector_store %arg14[%c91, %c0_8], %12 {strides = array<i32>} : memref<328x128xf32, #tpu.memory_space<vmem>>, vector<16x4xf32>,
    %14 = vector.extract_strided_slice %3 {offsets = [80, 0], sizes = [16, 4], strides = [1, 1]} : vector<256x4xf32> to vector<16x4xf32>
    %c109 = arith.constant 109 : index
    %c0_9 = arith.constant 0 : index
    %15 = vector.load %arg14[%c109, %c0_9] : memref<328x128xf32, #tpu.memory_space<vmem>>, vector<16x4xf32>
    tpu.vector_store %arg14[%c109, %c0_9], %14 {strides = array<i32>} : memref<328x128xf32, #tpu.memory_space<vmem>>, vector<16x4xf32>,
    %16 = vector.extract_strided_slice %3 {offsets = [96, 0], sizes = [16, 4], strides = [1, 1]} : vector<256x4xf32> to vector<16x4xf32>
    %c127 = arith.constant 127 : index
    %c0_10 = arith.constant 0 : index
    %17 = vector.load %arg14[%c127, %c0_10] : memref<328x128xf32, #tpu.memory_space<vmem>>, vector<16x4xf32>
    tpu.vector_store %arg14[%c127, %c0_10], %16 {strides = array<i32>} : memref<328x128xf32, #tpu.memory_space<vmem>>, vector<16x4xf32>,
    %18 = vector.extract_strided_slice %3 {offsets = [112, 0], sizes = [16, 4], strides = [1, 1]} : vector<256x4xf32> to vector<16x4xf32>
    %c145 = arith.constant 145 : index
    %c0_11 = arith.constant 0 : index
    %19 = vector.load %arg14[%c145, %c0_11] : memref<328x128xf32, #tpu.memory_space<vmem>>, vector<16x4xf32>
    tpu.vector_store %arg14[%c145, %c0_11], %18 {strides = array<i32>} : memref<328x128xf32, #tpu.memory_space<vmem>>, vector<16x4xf32>,
    %20 = vector.extract_strided_slice %3 {offsets = [128, 0], sizes = [16, 4], strides = [1, 1]} : vector<256x4xf32> to vector<16x4xf32>
    %c163 = arith.constant 163 : index
    %c0_12 = arith.constant 0 : index
    %21 = vector.load %arg14[%c163, %c0_12] : memref<328x128xf32, #tpu.memory_space<vmem>>, vector<16x4xf32>
    tpu.vector_store %arg14[%c163, %c0_12], %20 {strides = array<i32>} : memref<328x128xf32, #tpu.memory_space<vmem>>, vector<16x4xf32>,
    %22 = vector.extract_strided_slice %3 {offsets = [144, 0], sizes = [16, 4], strides = [1, 1]} : vector<256x4xf32> to vector<16x4xf32>
    %c181 = arith.constant 181 : index
    %c0_13 = arith.constant 0 : index
    %23 = vector.load %arg14[%c181, %c0_13] : memref<328x128xf32, #tpu.memory_space<vmem>>, vector<16x4xf32>
    tpu.vector_store %arg14[%c181, %c0_13], %22 {strides = array<i32>} : memref<328x128xf32, #tpu.memory_space<vmem>>, vector<16x4xf32>,
    %24 = vector.extract_strided_slice %3 {offsets = [160, 0], sizes = [16, 4], strides = [1, 1]} : vector<256x4xf32> to vector<16x4xf32>
    %c199 = arith.constant 199 : index
    %c0_14 = arith.constant 0 : index
    %25 = vector.load %arg14[%c199, %c0_14] : memref<328x128xf32, #tpu.memory_space<vmem>>, vector<16x4xf32>
    tpu.vector_store %arg14[%c199, %c0_14], %24 {strides = array<i32>} : memref<328x128xf32, #tpu.memory_space<vmem>>, vector<16x4xf32>,
    %26 = vector.extract_strided_slice %3 {offsets = [176, 0], sizes = [16, 4], strides = [1, 1]} : vector<256x4xf32> to vector<16x4xf32>
    %c217 = arith.constant 217 : index
    %c0_15 = arith.constant 0 : index
    %27 = vector.load %arg14[%c217, %c0_15] : memref<328x128xf32, #tpu.memory_space<vmem>>, vector<16x4xf32>
    tpu.vector_store %arg14[%c217, %c0_15], %26 {strides = array<i32>} : memref<328x128xf32, #tpu.memory_space<vmem>>, vector<16x4xf32>,
    %28 = vector.extract_strided_slice %3 {offsets = [192, 0], sizes = [16, 4], strides = [1, 1]} : vector<256x4xf32> to vector<16x4xf32>
    %c235 = arith.constant 235 : index
    %c0_16 = arith.constant 0 : index
    %29 = vector.load %arg14[%c235, %c0_16] : memref<328x128xf32, #tpu.memory_space<vmem>>, vector<16x4xf32>
    tpu.vector_store %arg14[%c235, %c0_16], %28 {strides = array<i32>} : memref<328x128xf32, #tpu.memory_space<vmem>>, vector<16x4xf32>,
    %30 = vector.extract_strided_slice %3 {offsets = [208, 0], sizes = [16, 4], strides = [1, 1]} : vector<256x4xf32> to vector<16x4xf32>
    %c253 = arith.constant 253 : index
    %c0_17 = arith.constant 0 : index
    %31 = vector.load %arg14[%c253, %c0_17] : memref<328x128xf32, #tpu.memory_space<vmem>>, vector<16x4xf32>
    tpu.vector_store %arg14[%c253, %c0_17], %30 {strides = array<i32>} : memref<328x128xf32, #tpu.memory_space<vmem>>, vector<16x4xf32>,
    %32 = vector.extract_strided_slice %3 {offsets = [224, 0], sizes = [16, 4], strides = [1, 1]} : vector<256x4xf32> to vector<16x4xf32>
    %c271 = arith.constant 271 : index
    %c0_18 = arith.constant 0 : index
    %33 = vector.load %arg14[%c271, %c0_18] : memref<328x128xf32, #tpu.memory_space<vmem>>, vector<16x4xf32>
    tpu.vector_store %arg14[%c271, %c0_18], %32 {strides = array<i32>} : memref<328x128xf32, #tpu.memory_space<vmem>>, vector<16x4xf32>,
    %34 = vector.extract_strided_slice %3 {offsets = [240, 0], sizes = [16, 4], strides = [1, 1]} : vector<256x4xf32> to vector<16x4xf32>
    %c289 = arith.constant 289 : index
    %c0_19 = arith.constant 0 : index
    %35 = vector.load %arg14[%c289, %c0_19] : memref<328x128xf32, #tpu.memory_space<vmem>>, vector<16x4xf32>
    tpu.vector_store %arg14[%c289, %c0_19], %34 {strides = array<i32>} : memref<328x128xf32, #tpu.memory_space<vmem>>, vector<16x4xf32>,
    %cst_20 = arith.constant 0.000000e+00 : f32
    %36 = vector.broadcast %cst_20 : f32 to vector<64x128xf32>
    %c0_21 = arith.constant 0 : index
    %c0_22 = arith.constant 0 : index
    %37 = tpu.strided_load %arg14[%c0_21, %c0_22] {strides = array<i32: 2, 1>} : memref<328x128xf32, #tpu.memory_space<vmem>>, vector<8x128xf32>
    %c36 = arith.constant 36 : index
    %c0_23 = arith.constant 0 : index
    %38 = tpu.strided_load %arg14[%c36, %c0_23] {strides = array<i32: 2, 1>} : memref<328x128xf32, #tpu.memory_space<vmem>>, vector<8x128xf32>
    %c72 = arith.constant 72 : index
    %c0_24 = arith.constant 0 : index
    %39 = tpu.strided_load %arg14[%c72, %c0_24] {strides = array<i32: 2, 1>} : memref<328x128xf32, #tpu.memory_space<vmem>>, vector<8x128xf32>
    %c108 = arith.constant 108 : index
    %c0_25 = arith.constant 0 : index
    %40 = tpu.strided_load %arg14[%c108, %c0_25] {strides = array<i32: 2, 1>} : memref<328x128xf32, #tpu.memory_space<vmem>>, vector<8x128xf32>
    %c144 = arith.constant 144 : index
    %c0_26 = arith.constant 0 : index
    %41 = tpu.strided_load %arg14[%c144, %c0_26] {strides = array<i32: 2, 1>} : memref<328x128xf32, #tpu.memory_space<vmem>>, vector<8x128xf32>
    %c180 = arith.constant 180 : index
    %c0_27 = arith.constant 0 : index
    %42 = tpu.strided_load %arg14[%c180, %c0_27] {strides = array<i32: 2, 1>} : memref<328x128xf32, #tpu.memory_space<vmem>>, vector<8x128xf32>
    %c216 = arith.constant 216 : index
    %c0_28 = arith.constant 0 : index
    %43 = tpu.strided_load %arg14[%c216, %c0_28] {strides = array<i32: 2, 1>} : memref<328x128xf32, #tpu.memory_space<vmem>>, vector<8x128xf32>
    %c252 = arith.constant 252 : index
    %c0_29 = arith.constant 0 : index
    %44 = tpu.strided_load %arg14[%c252, %c0_29] {strides = array<i32: 2, 1>} : memref<328x128xf32, #tpu.memory_space<vmem>>, vector<8x128xf32>
    %45 = tpu.concatenate %37, %38, %39, %40, %41, %42, %43, %44 in 0 : vector<8x128xf32>, vector<8x128xf32>, vector<8x128xf32>, vector<8x128xf32>, vector<8x128xf32>, vector<8x128xf32>, vector<8x128xf32>, vector<8x128xf32> -> vector<64x128xf32>
    %c0_30 = arith.constant 0 : index
    %c0_31 = arith.constant 0 : index
    %c0_32 = arith.constant 0 : index
    %46 = vector.load %arg2[%c0_30, %c0_31, %c0_32] : memref<9x128x128xf32, #tpu.memory_space<vmem>>, vector<1x128x128xf32>
    %47 = vector.shape_cast %46 : vector<1x128x128xf32> to vector<128x128xf32>
    %cst_33 = arith.constant dense<0.000000e+00> : vector<64x128xf32>
    %48 = tpu.matmul %45, %47, %cst_33 {dimension_numbers = #tpu.dot_dimension_numbers<[1], [0], [0], [1], [0, 0, 1, 1], [], []>} : vector<64x128xf32>, vector<128x128xf32>, vector<64x128xf32> -> vector<64x128xf32>
    %49 = arith.addf %36, %48 : vector<64x128xf32>
    %c1 = arith.constant 1 : index
    %c0_34 = arith.constant 0 : index
    %50 = tpu.strided_load %arg14[%c1, %c0_34] {strides = array<i32: 2, 1>} : memref<328x128xf32, #tpu.memory_space<vmem>>, vector<8x128xf32>
    %c37_35 = arith.constant 37 : index
    %c0_36 = arith.constant 0 : index
    %51 = tpu.strided_load %arg14[%c37_35, %c0_36] {strides = array<i32: 2, 1>} : memref<328x128xf32, #tpu.memory_space<vmem>>, vector<8x128xf32>
    %c73_37 = arith.constant 73 : index
    %c0_38 = arith.constant 0 : index
    %52 = tpu.strided_load %arg14[%c73_37, %c0_38] {strides = array<i32: 2, 1>} : memref<328x128xf32, #tpu.memory_space<vmem>>, vector<8x128xf32>
    %c109_39 = arith.constant 109 : index
    %c0_40 = arith.constant 0 : index
    %53 = tpu.strided_load %arg14[%c109_39, %c0_40] {strides = array<i32: 2, 1>} : memref<328x128xf32, #tpu.memory_space<vmem>>, vector<8x128xf32>
    %c145_41 = arith.constant 145 : index
    %c0_42 = arith.constant 0 : index
    %54 = tpu.strided_load %arg14[%c145_41, %c0_42] {strides = array<i32: 2, 1>} : memref<328x128xf32, #tpu.memory_space<vmem>>, vector<8x128xf32>
    %c181_43 = arith.constant 181 : index
    %c0_44 = arith.constant 0 : index
    %55 = tpu.strided_load %arg14[%c181_43, %c0_44] {strides = array<i32: 2, 1>} : memref<328x128xf32, #tpu.memory_space<vmem>>, vector<8x128xf32>
    %c217_45 = arith.constant 217 : index
    %c0_46 = arith.constant 0 : index
    %56 = tpu.strided_load %arg14[%c217_45, %c0_46] {strides = array<i32: 2, 1>} : memref<328x128xf32, #tpu.memory_space<vmem>>, vector<8x128xf32>
    %c253_47 = arith.constant 253 : index
    %c0_48 = arith.constant 0 : index
    %57 = tpu.strided_load %arg14[%c253_47, %c0_48] {strides = array<i32: 2, 1>} : memref<328x128xf32, #tpu.memory_space<vmem>>, vector<8x128xf32>
    %58 = tpu.concatenate %50, %51, %52, %53, %54, %55, %56, %57 in 0 : vector<8x128xf32>, vector<8x128xf32>, vector<8x128xf32>, vector<8x128xf32>, vector<8x128xf32>, vector<8x128xf32>, vector<8x128xf32>, vector<8x128xf32> -> vector<64x128xf32>
    %c1_49 = arith.constant 1 : index
    %c0_50 = arith.constant 0 : index
    %c0_51 = arith.constant 0 : index
    %59 = vector.load %arg2[%c1_49, %c0_50, %c0_51] : memref<9x128x128xf32, #tpu.memory_space<vmem>>, vector<1x128x128xf32>
    %60 = vector.shape_cast %59 : vector<1x128x128xf32> to vector<128x128xf32>
    %cst_52 = arith.constant dense<0.000000e+00> : vector<64x128xf32>
    %61 = tpu.matmul %58, %60, %cst_52 {dimension_numbers = #tpu.dot_dimension_numbers<[1], [0], [0], [1], [0, 0, 1, 1], [], []>} : vector<64x128xf32>, vector<128x128xf32>, vector<64x128xf32> -> vector<64x128xf32>
    %62 = arith.addf %49, %61 : vector<64x128xf32>
    %c2 = arith.constant 2 : index
    %c0_53 = arith.constant 0 : index
    %63 = tpu.strided_load %arg14[%c2, %c0_53] {strides = array<i32: 2, 1>} : memref<328x128xf32, #tpu.memory_space<vmem>>, vector<8x128xf32>
    %c38 = arith.constant 38 : index
    %c0_54 = arith.constant 0 : index
    %64 = tpu.strided_load %arg14[%c38, %c0_54] {strides = array<i32: 2, 1>} : memref<328x128xf32, #tpu.memory_space<vmem>>, vector<8x128xf32>
    %c74 = arith.constant 74 : index
    %c0_55 = arith.constant 0 : index
    %65 = tpu.strided_load %arg14[%c74, %c0_55] {strides = array<i32: 2, 1>} : memref<328x128xf32, #tpu.memory_space<vmem>>, vector<8x128xf32>
    %c110 = arith.constant 110 : index
    %c0_56 = arith.constant 0 : index
    %66 = tpu.strided_load %arg14[%c110, %c0_56] {strides = array<i32: 2, 1>} : memref<328x128xf32, #tpu.memory_space<vmem>>, vector<8x128xf32>
    %c146 = arith.constant 146 : index
    %c0_57 = arith.constant 0 : index
    %67 = tpu.strided_load %arg14[%c146, %c0_57] {strides = array<i32: 2, 1>} : memref<328x128xf32, #tpu.memory_space<vmem>>, vector<8x128xf32>
    %c182 = arith.constant 182 : index
    %c0_58 = arith.constant 0 : index
    %68 = tpu.strided_load %arg14[%c182, %c0_58] {strides = array<i32: 2, 1>} : memref<328x128xf32, #tpu.memory_space<vmem>>, vector<8x128xf32>
    %c218 = arith.constant 218 : index
    %c0_59 = arith.constant 0 : index
    %69 = tpu.strided_load %arg14[%c218, %c0_59] {strides = array<i32: 2, 1>} : memref<328x128xf32, #tpu.memory_space<vmem>>, vector<8x128xf32>
    %c254 = arith.constant 254 : index
    %c0_60 = arith.constant 0 : index
    %70 = tpu.strided_load %arg14[%c254, %c0_60] {strides = array<i32: 2, 1>} : memref<328x128xf32, #tpu.memory_space<vmem>>, vector<8x128xf32>
    %71 = tpu.concatenate %63, %64, %65, %66, %67, %68, %69, %70 in 0 : vector<8x128xf32>, vector<8x128xf32>, vector<8x128xf32>, vector<8x128xf32>, vector<8x128xf32>, vector<8x128xf32>, vector<8x128xf32>, vector<8x128xf32> -> vector<64x128xf32>
    %c2_61 = arith.constant 2 : index
    %c0_62 = arith.constant 0 : index
    %c0_63 = arith.constant 0 : index
    %72 = vector.load %arg2[%c2_61, %c0_62, %c0_63] : memref<9x128x128xf32, #tpu.memory_space<vmem>>, vector<1x128x128xf32>
    %73 = vector.shape_cast %72 : vector<1x128x128xf32> to vector<128x128xf32>
    %cst_64 = arith.constant dense<0.000000e+00> : vector<64x128xf32>
    %74 = tpu.matmul %71, %73, %cst_64 {dimension_numbers = #tpu.dot_dimension_numbers<[1], [0], [0], [1], [0, 0, 1, 1], [], []>} : vector<64x128xf32>, vector<128x128xf32>, vector<64x128xf32> -> vector<64x128xf32>
    %75 = arith.addf %62, %74 : vector<64x128xf32>
    %c18 = arith.constant 18 : index
    %c0_65 = arith.constant 0 : index
    %76 = tpu.strided_load %arg14[%c18, %c0_65] {strides = array<i32: 2, 1>} : memref<328x128xf32, #tpu.memory_space<vmem>>, vector<8x128xf32>
    %c54 = arith.constant 54 : index
    %c0_66 = arith.constant 0 : index
    %77 = tpu.strided_load %arg14[%c54, %c0_66] {strides = array<i32: 2, 1>} : memref<328x128xf32, #tpu.memory_space<vmem>>, vector<8x128xf32>
    %c90 = arith.constant 90 : index
    %c0_67 = arith.constant 0 : index
    %78 = tpu.strided_load %arg14[%c90, %c0_67] {strides = array<i32: 2, 1>} : memref<328x128xf32, #tpu.memory_space<vmem>>, vector<8x128xf32>
    %c126 = arith.constant 126 : index
    %c0_68 = arith.constant 0 : index
    %79 = tpu.strided_load %arg14[%c126, %c0_68] {strides = array<i32: 2, 1>} : memref<328x128xf32, #tpu.memory_space<vmem>>, vector<8x128xf32>
    %c162 = arith.constant 162 : index
    %c0_69 = arith.constant 0 : index
    %80 = tpu.strided_load %arg14[%c162, %c0_69] {strides = array<i32: 2, 1>} : memref<328x128xf32, #tpu.memory_space<vmem>>, vector<8x128xf32>
    %c198 = arith.constant 198 : index
    %c0_70 = arith.constant 0 : index
    %81 = tpu.strided_load %arg14[%c198, %c0_70] {strides = array<i32: 2, 1>} : memref<328x128xf32, #tpu.memory_space<vmem>>, vector<8x128xf32>
    %c234 = arith.constant 234 : index
    %c0_71 = arith.constant 0 : index
    %82 = tpu.strided_load %arg14[%c234, %c0_71] {strides = array<i32: 2, 1>} : memref<328x128xf32, #tpu.memory_space<vmem>>, vector<8x128xf32>
    %c270 = arith.constant 270 : index
    %c0_72 = arith.constant 0 : index
    %83 = tpu.strided_load %arg14[%c270, %c0_72] {strides = array<i32: 2, 1>} : memref<328x128xf32, #tpu.memory_space<vmem>>, vector<8x128xf32>
    %84 = tpu.concatenate %76, %77, %78, %79, %80, %81, %82, %83 in 0 : vector<8x128xf32>, vector<8x128xf32>, vector<8x128xf32>, vector<8x128xf32>, vector<8x128xf32>, vector<8x128xf32>, vector<8x128xf32>, vector<8x128xf32> -> vector<64x128xf32>
    %c3 = arith.constant 3 : index
    %c0_73 = arith.constant 0 : index
    %c0_74 = arith.constant 0 : index
    %85 = vector.load %arg2[%c3, %c0_73, %c0_74] : memref<9x128x128xf32, #tpu.memory_space<vmem>>, vector<1x128x128xf32>
    %86 = vector.shape_cast %85 : vector<1x128x128xf32> to vector<128x128xf32>
    %cst_75 = arith.constant dense<0.000000e+00> : vector<64x128xf32>
    %87 = tpu.matmul %84, %86, %cst_75 {dimension_numbers = #tpu.dot_dimension_numbers<[1], [0], [0], [1], [0, 0, 1, 1], [], []>} : vector<64x128xf32>, vector<128x128xf32>, vector<64x128xf32> -> vector<64x128xf32>
    %88 = arith.addf %75, %87 : vector<64x128xf32>
    %c19_76 = arith.constant 19 : index
    %c0_77 = arith.constant 0 : index
    %89 = tpu.strided_load %arg14[%c19_76, %c0_77] {strides = array<i32: 2, 1>} : memref<328x128xf32, #tpu.memory_space<vmem>>, vector<8x128xf32>
    %c55_78 = arith.constant 55 : index
    %c0_79 = arith.constant 0 : index
    %90 = tpu.strided_load %arg14[%c55_78, %c0_79] {strides = array<i32: 2, 1>} : memref<328x128xf32, #tpu.memory_space<vmem>>, vector<8x128xf32>
    %c91_80 = arith.constant 91 : index
    %c0_81 = arith.constant 0 : index
    %91 = tpu.strided_load %arg14[%c91_80, %c0_81] {strides = array<i32: 2, 1>} : memref<328x128xf32, #tpu.memory_space<vmem>>, vector<8x128xf32>
    %c127_82 = arith.constant 127 : index
    %c0_83 = arith.constant 0 : index
    %92 = tpu.strided_load %arg14[%c127_82, %c0_83] {strides = array<i32: 2, 1>} : memref<328x128xf32, #tpu.memory_space<vmem>>, vector<8x128xf32>
    %c163_84 = arith.constant 163 : index
    %c0_85 = arith.constant 0 : index
    %93 = tpu.strided_load %arg14[%c163_84, %c0_85] {strides = array<i32: 2, 1>} : memref<328x128xf32, #tpu.memory_space<vmem>>, vector<8x128xf32>
    %c199_86 = arith.constant 199 : index
    %c0_87 = arith.constant 0 : index
    %94 = tpu.strided_load %arg14[%c199_86, %c0_87] {strides = array<i32: 2, 1>} : memref<328x128xf32, #tpu.memory_space<vmem>>, vector<8x128xf32>
    %c235_88 = arith.constant 235 : index
    %c0_89 = arith.constant 0 : index
    %95 = tpu.strided_load %arg14[%c235_88, %c0_89] {strides = array<i32: 2, 1>} : memref<328x128xf32, #tpu.memory_space<vmem>>, vector<8x128xf32>
    %c271_90 = arith.constant 271 : index
    %c0_91 = arith.constant 0 : index
    %96 = tpu.strided_load %arg14[%c271_90, %c0_91] {strides = array<i32: 2, 1>} : memref<328x128xf32, #tpu.memory_space<vmem>>, vector<8x128xf32>
    %97 = tpu.concatenate %89, %90, %91, %92, %93, %94, %95, %96 in 0 : vector<8x128xf32>, vector<8x128xf32>, vector<8x128xf32>, vector<8x128xf32>, vector<8x128xf32>, vector<8x128xf32>, vector<8x128xf32>, vector<8x128xf32> -> vector<64x128xf32>
    %c4 = arith.constant 4 : index
    %c0_92 = arith.constant 0 : index
    %c0_93 = arith.constant 0 : index
    %98 = vector.load %arg2[%c4, %c0_92, %c0_93] : memref<9x128x128xf32, #tpu.memory_space<vmem>>, vector<1x128x128xf32>
    %99 = vector.shape_cast %98 : vector<1x128x128xf32> to vector<128x128xf32>
    %cst_94 = arith.constant dense<0.000000e+00> : vector<64x128xf32>
    %100 = tpu.matmul %97, %99, %cst_94 {dimension_numbers = #tpu.dot_dimension_numbers<[1], [0], [0], [1], [0, 0, 1, 1], [], []>} : vector<64x128xf32>, vector<128x128xf32>, vector<64x128xf32> -> vector<64x128xf32>
    %101 = arith.addf %88, %100 : vector<64x128xf32>
    %c20 = arith.constant 20 : index
    %c0_95 = arith.constant 0 : index
    %102 = tpu.strided_load %arg14[%c20, %c0_95] {strides = array<i32: 2, 1>} : memref<328x128xf32, #tpu.memory_space<vmem>>, vector<8x128xf32>
    %c56 = arith.constant 56 : index
    %c0_96 = arith.constant 0 : index
    %103 = tpu.strided_load %arg14[%c56, %c0_96] {strides = array<i32: 2, 1>} : memref<328x128xf32, #tpu.memory_space<vmem>>, vector<8x128xf32>
    %c92 = arith.constant 92 : index
    %c0_97 = arith.constant 0 : index
    %104 = tpu.strided_load %arg14[%c92, %c0_97] {strides = array<i32: 2, 1>} : memref<328x128xf32, #tpu.memory_space<vmem>>, vector<8x128xf32>
    %c128 = arith.constant 128 : index
    %c0_98 = arith.constant 0 : index
    %105 = tpu.strided_load %arg14[%c128, %c0_98] {strides = array<i32: 2, 1>} : memref<328x128xf32, #tpu.memory_space<vmem>>, vector<8x128xf32>
    %c164 = arith.constant 164 : index
    %c0_99 = arith.constant 0 : index
    %106 = tpu.strided_load %arg14[%c164, %c0_99] {strides = array<i32: 2, 1>} : memref<328x128xf32, #tpu.memory_space<vmem>>, vector<8x128xf32>
    %c200 = arith.constant 200 : index
    %c0_100 = arith.constant 0 : index
    %107 = tpu.strided_load %arg14[%c200, %c0_100] {strides = array<i32: 2, 1>} : memref<328x128xf32, #tpu.memory_space<vmem>>, vector<8x128xf32>
    %c236 = arith.constant 236 : index
    %c0_101 = arith.constant 0 : index
    %108 = tpu.strided_load %arg14[%c236, %c0_101] {strides = array<i32: 2, 1>} : memref<328x128xf32, #tpu.memory_space<vmem>>, vector<8x128xf32>
    %c272 = arith.constant 272 : index
    %c0_102 = arith.constant 0 : index
    %109 = tpu.strided_load %arg14[%c272, %c0_102] {strides = array<i32: 2, 1>} : memref<328x128xf32, #tpu.memory_space<vmem>>, vector<8x128xf32>
    %110 = tpu.concatenate %102, %103, %104, %105, %106, %107, %108, %109 in 0 : vector<8x128xf32>, vector<8x128xf32>, vector<8x128xf32>, vector<8x128xf32>, vector<8x128xf32>, vector<8x128xf32>, vector<8x128xf32>, vector<8x128xf32> -> vector<64x128xf32>
    %c5 = arith.constant 5 : index
    %c0_103 = arith.constant 0 : index
    %c0_104 = arith.constant 0 : index
    %111 = vector.load %arg2[%c5, %c0_103, %c0_104] : memref<9x128x128xf32, #tpu.memory_space<vmem>>, vector<1x128x128xf32>
    %112 = vector.shape_cast %111 : vector<1x128x128xf32> to vector<128x128xf32>
    %cst_105 = arith.constant dense<0.000000e+00> : vector<64x128xf32>
    %113 = tpu.matmul %110, %112, %cst_105 {dimension_numbers = #tpu.dot_dimension_numbers<[1], [0], [0], [1], [0, 0, 1, 1], [], []>} : vector<64x128xf32>, vector<128x128xf32>, vector<64x128xf32> -> vector<64x128xf32>
    %114 = arith.addf %101, %113 : vector<64x128xf32>
    %c36_106 = arith.constant 36 : index
    %c0_107 = arith.constant 0 : index
    %115 = tpu.strided_load %arg14[%c36_106, %c0_107] {strides = array<i32: 2, 1>} : memref<328x128xf32, #tpu.memory_space<vmem>>, vector<8x128xf32>
    %c72_108 = arith.constant 72 : index
    %c0_109 = arith.constant 0 : index
    %116 = tpu.strided_load %arg14[%c72_108, %c0_109] {strides = array<i32: 2, 1>} : memref<328x128xf32, #tpu.memory_space<vmem>>, vector<8x128xf32>
    %c108_110 = arith.constant 108 : index
    %c0_111 = arith.constant 0 : index
    %117 = tpu.strided_load %arg14[%c108_110, %c0_111] {strides = array<i32: 2, 1>} : memref<328x128xf32, #tpu.memory_space<vmem>>, vector<8x128xf32>
    %c144_112 = arith.constant 144 : index
    %c0_113 = arith.constant 0 : index
    %118 = tpu.strided_load %arg14[%c144_112, %c0_113] {strides = array<i32: 2, 1>} : memref<328x128xf32, #tpu.memory_space<vmem>>, vector<8x128xf32>
    %c180_114 = arith.constant 180 : index
    %c0_115 = arith.constant 0 : index
    %119 = tpu.strided_load %arg14[%c180_114, %c0_115] {strides = array<i32: 2, 1>} : memref<328x128xf32, #tpu.memory_space<vmem>>, vector<8x128xf32>
    %c216_116 = arith.constant 216 : index
    %c0_117 = arith.constant 0 : index
    %120 = tpu.strided_load %arg14[%c216_116, %c0_117] {strides = array<i32: 2, 1>} : memref<328x128xf32, #tpu.memory_space<vmem>>, vector<8x128xf32>
    %c252_118 = arith.constant 252 : index
    %c0_119 = arith.constant 0 : index
    %121 = tpu.strided_load %arg14[%c252_118, %c0_119] {strides = array<i32: 2, 1>} : memref<328x128xf32, #tpu.memory_space<vmem>>, vector<8x128xf32>
    %c288 = arith.constant 288 : index
    %c0_120 = arith.constant 0 : index
    %122 = tpu.strided_load %arg14[%c288, %c0_120] {strides = array<i32: 2, 1>} : memref<328x128xf32, #tpu.memory_space<vmem>>, vector<8x128xf32>
    %123 = tpu.concatenate %115, %116, %117, %118, %119, %120, %121, %122 in 0 : vector<8x128xf32>, vector<8x128xf32>, vector<8x128xf32>, vector<8x128xf32>, vector<8x128xf32>, vector<8x128xf32>, vector<8x128xf32>, vector<8x128xf32> -> vector<64x128xf32>
    %c6 = arith.constant 6 : index
    %c0_121 = arith.constant 0 : index
    %c0_122 = arith.constant 0 : index
    %124 = vector.load %arg2[%c6, %c0_121, %c0_122] : memref<9x128x128xf32, #tpu.memory_space<vmem>>, vector<1x128x128xf32>
    %125 = vector.shape_cast %124 : vector<1x128x128xf32> to vector<128x128xf32>
    %cst_123 = arith.constant dense<0.000000e+00> : vector<64x128xf32>
    %126 = tpu.matmul %123, %125, %cst_123 {dimension_numbers = #tpu.dot_dimension_numbers<[1], [0], [0], [1], [0, 0, 1, 1], [], []>} : vector<64x128xf32>, vector<128x128xf32>, vector<64x128xf32> -> vector<64x128xf32>
    %127 = arith.addf %114, %126 : vector<64x128xf32>
    %c37_124 = arith.constant 37 : index
    %c0_125 = arith.constant 0 : index
    %128 = tpu.strided_load %arg14[%c37_124, %c0_125] {strides = array<i32: 2, 1>} : memref<328x128xf32, #tpu.memory_space<vmem>>, vector<8x128xf32>
    %c73_126 = arith.constant 73 : index
    %c0_127 = arith.constant 0 : index
    %129 = tpu.strided_load %arg14[%c73_126, %c0_127] {strides = array<i32: 2, 1>} : memref<328x128xf32, #tpu.memory_space<vmem>>, vector<8x128xf32>
    %c109_128 = arith.constant 109 : index
    %c0_129 = arith.constant 0 : index
    %130 = tpu.strided_load %arg14[%c109_128, %c0_129] {strides = array<i32: 2, 1>} : memref<328x128xf32, #tpu.memory_space<vmem>>, vector<8x128xf32>
    %c145_130 = arith.constant 145 : index
    %c0_131 = arith.constant 0 : index
    %131 = tpu.strided_load %arg14[%c145_130, %c0_131] {strides = array<i32: 2, 1>} : memref<328x128xf32, #tpu.memory_space<vmem>>, vector<8x128xf32>
    %c181_132 = arith.constant 181 : index
    %c0_133 = arith.constant 0 : index
    %132 = tpu.strided_load %arg14[%c181_132, %c0_133] {strides = array<i32: 2, 1>} : memref<328x128xf32, #tpu.memory_space<vmem>>, vector<8x128xf32>
    %c217_134 = arith.constant 217 : index
    %c0_135 = arith.constant 0 : index
    %133 = tpu.strided_load %arg14[%c217_134, %c0_135] {strides = array<i32: 2, 1>} : memref<328x128xf32, #tpu.memory_space<vmem>>, vector<8x128xf32>
    %c253_136 = arith.constant 253 : index
    %c0_137 = arith.constant 0 : index
    %134 = tpu.strided_load %arg14[%c253_136, %c0_137] {strides = array<i32: 2, 1>} : memref<328x128xf32, #tpu.memory_space<vmem>>, vector<8x128xf32>
    %c289_138 = arith.constant 289 : index
    %c0_139 = arith.constant 0 : index
    %135 = tpu.strided_load %arg14[%c289_138, %c0_139] {strides = array<i32: 2, 1>} : memref<328x128xf32, #tpu.memory_space<vmem>>, vector<8x128xf32>
    %136 = tpu.concatenate %128, %129, %130, %131, %132, %133, %134, %135 in 0 : vector<8x128xf32>, vector<8x128xf32>, vector<8x128xf32>, vector<8x128xf32>, vector<8x128xf32>, vector<8x128xf32>, vector<8x128xf32>, vector<8x128xf32> -> vector<64x128xf32>
    %c7 = arith.constant 7 : index
    %c0_140 = arith.constant 0 : index
    %c0_141 = arith.constant 0 : index
    %137 = vector.load %arg2[%c7, %c0_140, %c0_141] : memref<9x128x128xf32, #tpu.memory_space<vmem>>, vector<1x128x128xf32>
    %138 = vector.shape_cast %137 : vector<1x128x128xf32> to vector<128x128xf32>
    %cst_142 = arith.constant dense<0.000000e+00> : vector<64x128xf32>
    %139 = tpu.matmul %136, %138, %cst_142 {dimension_numbers = #tpu.dot_dimension_numbers<[1], [0], [0], [1], [0, 0, 1, 1], [], []>} : vector<64x128xf32>, vector<128x128xf32>, vector<64x128xf32> -> vector<64x128xf32>
    %140 = arith.addf %127, %139 : vector<64x128xf32>
    %c38_143 = arith.constant 38 : index
    %c0_144 = arith.constant 0 : index
    %141 = tpu.strided_load %arg14[%c38_143, %c0_144] {strides = array<i32: 2, 1>} : memref<328x128xf32, #tpu.memory_space<vmem>>, vector<8x128xf32>
    %c74_145 = arith.constant 74 : index
    %c0_146 = arith.constant 0 : index
    %142 = tpu.strided_load %arg14[%c74_145, %c0_146] {strides = array<i32: 2, 1>} : memref<328x128xf32, #tpu.memory_space<vmem>>, vector<8x128xf32>
    %c110_147 = arith.constant 110 : index
    %c0_148 = arith.constant 0 : index
    %143 = tpu.strided_load %arg14[%c110_147, %c0_148] {strides = array<i32: 2, 1>} : memref<328x128xf32, #tpu.memory_space<vmem>>, vector<8x128xf32>
    %c146_149 = arith.constant 146 : index
    %c0_150 = arith.constant 0 : index
    %144 = tpu.strided_load %arg14[%c146_149, %c0_150] {strides = array<i32: 2, 1>} : memref<328x128xf32, #tpu.memory_space<vmem>>, vector<8x128xf32>
    %c182_151 = arith.constant 182 : index
    %c0_152 = arith.constant 0 : index
    %145 = tpu.strided_load %arg14[%c182_151, %c0_152] {strides = array<i32: 2, 1>} : memref<328x128xf32, #tpu.memory_space<vmem>>, vector<8x128xf32>
    %c218_153 = arith.constant 218 : index
    %c0_154 = arith.constant 0 : index
    %146 = tpu.strided_load %arg14[%c218_153, %c0_154] {strides = array<i32: 2, 1>} : memref<328x128xf32, #tpu.memory_space<vmem>>, vector<8x128xf32>
    %c254_155 = arith.constant 254 : index
    %c0_156 = arith.constant 0 : index
    %147 = tpu.strided_load %arg14[%c254_155, %c0_156] {strides = array<i32: 2, 1>} : memref<328x128xf32, #tpu.memory_space<vmem>>, vector<8x128xf32>
    %c290 = arith.constant 290 : index
    %c0_157 = arith.constant 0 : index
    %148 = tpu.strided_load %arg14[%c290, %c0_157] {strides = array<i32: 2, 1>} : memref<328x128xf32, #tpu.memory_space<vmem>>, vector<8x128xf32>
    %149 = tpu.concatenate %141, %142, %143, %144, %145, %146, %147, %148 in 0 : vector<8x128xf32>, vector<8x128xf32>, vector<8x128xf32>, vector<8x128xf32>, vector<8x128xf32>, vector<8x128xf32>, vector<8x128xf32>, vector<8x128xf32> -> vector<64x128xf32>
    %c8 = arith.constant 8 : index
    %c0_158 = arith.constant 0 : index
    %c0_159 = arith.constant 0 : index
    %150 = vector.load %arg2[%c8, %c0_158, %c0_159] : memref<9x128x128xf32, #tpu.memory_space<vmem>>, vector<1x128x128xf32>
    %151 = vector.shape_cast %150 : vector<1x128x128xf32> to vector<128x128xf32>
    %cst_160 = arith.constant dense<0.000000e+00> : vector<64x128xf32>
    %152 = tpu.matmul %149, %151, %cst_160 {dimension_numbers = #tpu.dot_dimension_numbers<[1], [0], [0], [1], [0, 0, 1, 1], [], []>} : vector<64x128xf32>, vector<128x128xf32>, vector<64x128xf32> -> vector<64x128xf32>
    %153 = arith.addf %140, %152 : vector<64x128xf32>
    %c0_161 = arith.constant 0 : index
    %c0_162 = arith.constant 0 : index
    %154 = vector.load %arg3[%c0_161, %c0_162] : memref<1x128xf32, #tpu.memory_space<vmem>>, vector<1x128xf32>
    %155 = vector.broadcast %154 : vector<1x128xf32> to vector<64x128xf32>
    %156 = arith.addf %153, %155 : vector<64x128xf32>
    %cst_163 = arith.constant 0.000000e+00 : f32
    %157 = vector.broadcast %cst_163 : f32 to vector<64x128xf32>
    %158 = arith.maximumf %156, %157 : vector<64x128xf32>
    %cst_164 = arith.constant 0.000000e+00 : f32
    %159 = vector.broadcast %cst_164 : f32 to vector<328x128xf32>
    %c0_165 = arith.constant 0 : index
    %c0_166 = arith.constant 0 : index
    %160 = vector.load %arg15[%c0_165, %c0_166] : memref<328x128xf32, #tpu.memory_space<vmem>>, vector<328x128xf32>
    tpu.vector_store %arg15[%c0_165, %c0_166], %159 {strides = array<i32>} : memref<328x128xf32, #tpu.memory_space<vmem>>, vector<328x128xf32>,
    %161 = vector.extract_strided_slice %158 {offsets = [0, 0], sizes = [8, 128], strides = [1, 1]} : vector<64x128xf32> to vector<8x128xf32>
    %c11 = arith.constant 11 : index
    %c0_167 = arith.constant 0 : index
    %162 = vector.load %arg15[%c11, %c0_167] : memref<328x128xf32, #tpu.memory_space<vmem>>, vector<8x128xf32>
    tpu.vector_store %arg15[%c11, %c0_167], %161 {strides = array<i32>} : memref<328x128xf32, #tpu.memory_space<vmem>>, vector<8x128xf32>,
    %163 = vector.extract_strided_slice %158 {offsets = [8, 0], sizes = [8, 128], strides = [1, 1]} : vector<64x128xf32> to vector<8x128xf32>
    %c21 = arith.constant 21 : index
    %c0_168 = arith.constant 0 : index
    %164 = vector.load %arg15[%c21, %c0_168] : memref<328x128xf32, #tpu.memory_space<vmem>>, vector<8x128xf32>
    tpu.vector_store %arg15[%c21, %c0_168], %163 {strides = array<i32>} : memref<328x128xf32, #tpu.memory_space<vmem>>, vector<8x128xf32>,
    %165 = vector.extract_strided_slice %158 {offsets = [16, 0], sizes = [8, 128], strides = [1, 1]} : vector<64x128xf32> to vector<8x128xf32>
    %c31 = arith.constant 31 : index
    %c0_169 = arith.constant 0 : index
    %166 = vector.load %arg15[%c31, %c0_169] : memref<328x128xf32, #tpu.memory_space<vmem>>, vector<8x128xf32>
    tpu.vector_store %arg15[%c31, %c0_169], %165 {strides = array<i32>} : memref<328x128xf32, #tpu.memory_space<vmem>>, vector<8x128xf32>,
    %167 = vector.extract_strided_slice %158 {offsets = [24, 0], sizes = [8, 128], strides = [1, 1]} : vector<64x128xf32> to vector<8x128xf32>
    %c41 = arith.constant 41 : index
    %c0_170 = arith.constant 0 : index
    %168 = vector.load %arg15[%c41, %c0_170] : memref<328x128xf32, #tpu.memory_space<vmem>>, vector<8x128xf32>
    tpu.vector_store %arg15[%c41, %c0_170], %167 {strides = array<i32>} : memref<328x128xf32, #tpu.memory_space<vmem>>, vector<8x128xf32>,
    %169 = vector.extract_strided_slice %158 {offsets = [32, 0], sizes = [8, 128], strides = [1, 1]} : vector<64x128xf32> to vector<8x128xf32>
    %c51 = arith.constant 51 : index
    %c0_171 = arith.constant 0 : index
    %170 = vector.load %arg15[%c51, %c0_171] : memref<328x128xf32, #tpu.memory_space<vmem>>, vector<8x128xf32>
    tpu.vector_store %arg15[%c51, %c0_171], %169 {strides = array<i32>} : memref<328x128xf32, #tpu.memory_space<vmem>>, vector<8x128xf32>,
    %171 = vector.extract_strided_slice %158 {offsets = [40, 0], sizes = [8, 128], strides = [1, 1]} : vector<64x128xf32> to vector<8x128xf32>
    %c61 = arith.constant 61 : index
    %c0_172 = arith.constant 0 : index
    %172 = vector.load %arg15[%c61, %c0_172] : memref<328x128xf32, #tpu.memory_space<vmem>>, vector<8x128xf32>
    tpu.vector_store %arg15[%c61, %c0_172], %171 {strides = array<i32>} : memref<328x128xf32, #tpu.memory_space<vmem>>, vector<8x128xf32>,
    %173 = vector.extract_strided_slice %158 {offsets = [48, 0], sizes = [8, 128], strides = [1, 1]} : vector<64x128xf32> to vector<8x128xf32>
    %c71 = arith.constant 71 : index
    %c0_173 = arith.constant 0 : index
    %174 = vector.load %arg15[%c71, %c0_173] : memref<328x128xf32, #tpu.memory_space<vmem>>, vector<8x128xf32>
    tpu.vector_store %arg15[%c71, %c0_173], %173 {strides = array<i32>} : memref<328x128xf32, #tpu.memory_space<vmem>>, vector<8x128xf32>,
    %175 = vector.extract_strided_slice %158 {offsets = [56, 0], sizes = [8, 128], strides = [1, 1]} : vector<64x128xf32> to vector<8x128xf32>
    %c81 = arith.constant 81 : index
    %c0_174 = arith.constant 0 : index
    %176 = vector.load %arg15[%c81, %c0_174] : memref<328x128xf32, #tpu.memory_space<vmem>>, vector<8x128xf32>
    tpu.vector_store %arg15[%c81, %c0_174], %175 {strides = array<i32>} : memref<328x128xf32, #tpu.memory_space<vmem>>, vector<8x128xf32>,
    %cst_175 = arith.constant 0.000000e+00 : f32
    %177 = vector.broadcast %cst_175 : f32 to vector<16x128xf32>
    %c0_176 = arith.constant 0 : index
    %c0_177 = arith.constant 0 : index
    %178 = tpu.strided_load %arg15[%c0_176, %c0_177] {strides = array<i32: 2, 1>} : memref<328x128xf32, #tpu.memory_space<vmem>>, vector<4x128xf32>
    %c20_178 = arith.constant 20 : index
    %c0_179 = arith.constant 0 : index
    %179 = tpu.strided_load %arg15[%c20_178, %c0_179] {strides = array<i32: 2, 1>} : memref<328x128xf32, #tpu.memory_space<vmem>>, vector<4x128xf32>
    %c40 = arith.constant 40 : index
    %c0_180 = arith.constant 0 : index
    %180 = tpu.strided_load %arg15[%c40, %c0_180] {strides = array<i32: 2, 1>} : memref<328x128xf32, #tpu.memory_space<vmem>>, vector<4x128xf32>
    %c60 = arith.constant 60 : index
    %c0_181 = arith.constant 0 : index
    %181 = tpu.strided_load %arg15[%c60, %c0_181] {strides = array<i32: 2, 1>} : memref<328x128xf32, #tpu.memory_space<vmem>>, vector<4x128xf32>
    %182 = tpu.concatenate %178, %179, %180, %181 in 0 : vector<4x128xf32>, vector<4x128xf32>, vector<4x128xf32>, vector<4x128xf32> -> vector<16x128xf32>
    %c0_182 = arith.constant 0 : index
    %c0_183 = arith.constant 0 : index
    %c0_184 = arith.constant 0 : index
    %183 = vector.load %arg4[%c0_182, %c0_183, %c0_184] : memref<9x128x128xf32, #tpu.memory_space<vmem>>, vector<1x128x128xf32>
    %184 = vector.shape_cast %183 : vector<1x128x128xf32> to vector<128x128xf32>
    %cst_185 = arith.constant dense<0.000000e+00> : vector<16x128xf32>
    %185 = tpu.matmul %182, %184, %cst_185 {dimension_numbers = #tpu.dot_dimension_numbers<[1], [0], [0], [1], [0, 0, 1, 1], [], []>} : vector<16x128xf32>, vector<128x128xf32>, vector<16x128xf32> -> vector<16x128xf32>
    %186 = arith.addf %177, %185 : vector<16x128xf32>
    %c1_186 = arith.constant 1 : index
    %c0_187 = arith.constant 0 : index
    %187 = tpu.strided_load %arg15[%c1_186, %c0_187] {strides = array<i32: 2, 1>} : memref<328x128xf32, #tpu.memory_space<vmem>>, vector<4x128xf32>
    %c21_188 = arith.constant 21 : index
    %c0_189 = arith.constant 0 : index
    %188 = tpu.strided_load %arg15[%c21_188, %c0_189] {strides = array<i32: 2, 1>} : memref<328x128xf32, #tpu.memory_space<vmem>>, vector<4x128xf32>
    %c41_190 = arith.constant 41 : index
    %c0_191 = arith.constant 0 : index
    %189 = tpu.strided_load %arg15[%c41_190, %c0_191] {strides = array<i32: 2, 1>} : memref<328x128xf32, #tpu.memory_space<vmem>>, vector<4x128xf32>
    %c61_192 = arith.constant 61 : index
    %c0_193 = arith.constant 0 : index
    %190 = tpu.strided_load %arg15[%c61_192, %c0_193] {strides = array<i32: 2, 1>} : memref<328x128xf32, #tpu.memory_space<vmem>>, vector<4x128xf32>
    %191 = tpu.concatenate %187, %188, %189, %190 in 0 : vector<4x128xf32>, vector<4x128xf32>, vector<4x128xf32>, vector<4x128xf32> -> vector<16x128xf32>
    %c1_194 = arith.constant 1 : index
    %c0_195 = arith.constant 0 : index
    %c0_196 = arith.constant 0 : index
    %192 = vector.load %arg4[%c1_194, %c0_195, %c0_196] : memref<9x128x128xf32, #tpu.memory_space<vmem>>, vector<1x128x128xf32>
    %193 = vector.shape_cast %192 : vector<1x128x128xf32> to vector<128x128xf32>
    %cst_197 = arith.constant dense<0.000000e+00> : vector<16x128xf32>
    %194 = tpu.matmul %191, %193, %cst_197 {dimension_numbers = #tpu.dot_dimension_numbers<[1], [0], [0], [1], [0, 0, 1, 1], [], []>} : vector<16x128xf32>, vector<128x128xf32>, vector<16x128xf32> -> vector<16x128xf32>
    %195 = arith.addf %186, %194 : vector<16x128xf32>
    %c2_198 = arith.constant 2 : index
    %c0_199 = arith.constant 0 : index
    %196 = tpu.strided_load %arg15[%c2_198, %c0_199] {strides = array<i32: 2, 1>} : memref<328x128xf32, #tpu.memory_space<vmem>>, vector<4x128xf32>
    %c22 = arith.constant 22 : index
    %c0_200 = arith.constant 0 : index
    %197 = tpu.strided_load %arg15[%c22, %c0_200] {strides = array<i32: 2, 1>} : memref<328x128xf32, #tpu.memory_space<vmem>>, vector<4x128xf32>
    %c42 = arith.constant 42 : index
    %c0_201 = arith.constant 0 : index
    %198 = tpu.strided_load %arg15[%c42, %c0_201] {strides = array<i32: 2, 1>} : memref<328x128xf32, #tpu.memory_space<vmem>>, vector<4x128xf32>
    %c62 = arith.constant 62 : index
    %c0_202 = arith.constant 0 : index
    %199 = tpu.strided_load %arg15[%c62, %c0_202] {strides = array<i32: 2, 1>} : memref<328x128xf32, #tpu.memory_space<vmem>>, vector<4x128xf32>
    %200 = tpu.concatenate %196, %197, %198, %199 in 0 : vector<4x128xf32>, vector<4x128xf32>, vector<4x128xf32>, vector<4x128xf32> -> vector<16x128xf32>
    %c2_203 = arith.constant 2 : index
    %c0_204 = arith.constant 0 : index
    %c0_205 = arith.constant 0 : index
    %201 = vector.load %arg4[%c2_203, %c0_204, %c0_205] : memref<9x128x128xf32, #tpu.memory_space<vmem>>, vector<1x128x128xf32>
    %202 = vector.shape_cast %201 : vector<1x128x128xf32> to vector<128x128xf32>
    %cst_206 = arith.constant dense<0.000000e+00> : vector<16x128xf32>
    %203 = tpu.matmul %200, %202, %cst_206 {dimension_numbers = #tpu.dot_dimension_numbers<[1], [0], [0], [1], [0, 0, 1, 1], [], []>} : vector<16x128xf32>, vector<128x128xf32>, vector<16x128xf32> -> vector<16x128xf32>
    %204 = arith.addf %195, %203 : vector<16x128xf32>
    %c10 = arith.constant 10 : index
    %c0_207 = arith.constant 0 : index
    %205 = tpu.strided_load %arg15[%c10, %c0_207] {strides = array<i32: 2, 1>} : memref<328x128xf32, #tpu.memory_space<vmem>>, vector<4x128xf32>
    %c30 = arith.constant 30 : index
    %c0_208 = arith.constant 0 : index
    %206 = tpu.strided_load %arg15[%c30, %c0_208] {strides = array<i32: 2, 1>} : memref<328x128xf32, #tpu.memory_space<vmem>>, vector<4x128xf32>
    %c50 = arith.constant 50 : index
    %c0_209 = arith.constant 0 : index
    %207 = tpu.strided_load %arg15[%c50, %c0_209] {strides = array<i32: 2, 1>} : memref<328x128xf32, #tpu.memory_space<vmem>>, vector<4x128xf32>
    %c70 = arith.constant 70 : index
    %c0_210 = arith.constant 0 : index
    %208 = tpu.strided_load %arg15[%c70, %c0_210] {strides = array<i32: 2, 1>} : memref<328x128xf32, #tpu.memory_space<vmem>>, vector<4x128xf32>
    %209 = tpu.concatenate %205, %206, %207, %208 in 0 : vector<4x128xf32>, vector<4x128xf32>, vector<4x128xf32>, vector<4x128xf32> -> vector<16x128xf32>
    %c3_211 = arith.constant 3 : index
    %c0_212 = arith.constant 0 : index
    %c0_213 = arith.constant 0 : index
    %210 = vector.load %arg4[%c3_211, %c0_212, %c0_213] : memref<9x128x128xf32, #tpu.memory_space<vmem>>, vector<1x128x128xf32>
    %211 = vector.shape_cast %210 : vector<1x128x128xf32> to vector<128x128xf32>
    %cst_214 = arith.constant dense<0.000000e+00> : vector<16x128xf32>
    %212 = tpu.matmul %209, %211, %cst_214 {dimension_numbers = #tpu.dot_dimension_numbers<[1], [0], [0], [1], [0, 0, 1, 1], [], []>} : vector<16x128xf32>, vector<128x128xf32>, vector<16x128xf32> -> vector<16x128xf32>
    %213 = arith.addf %204, %212 : vector<16x128xf32>
    %c11_215 = arith.constant 11 : index
    %c0_216 = arith.constant 0 : index
    %214 = tpu.strided_load %arg15[%c11_215, %c0_216] {strides = array<i32: 2, 1>} : memref<328x128xf32, #tpu.memory_space<vmem>>, vector<4x128xf32>
    %c31_217 = arith.constant 31 : index
    %c0_218 = arith.constant 0 : index
    %215 = tpu.strided_load %arg15[%c31_217, %c0_218] {strides = array<i32: 2, 1>} : memref<328x128xf32, #tpu.memory_space<vmem>>, vector<4x128xf32>
    %c51_219 = arith.constant 51 : index
    %c0_220 = arith.constant 0 : index
    %216 = tpu.strided_load %arg15[%c51_219, %c0_220] {strides = array<i32: 2, 1>} : memref<328x128xf32, #tpu.memory_space<vmem>>, vector<4x128xf32>
    %c71_221 = arith.constant 71 : index
    %c0_222 = arith.constant 0 : index
    %217 = tpu.strided_load %arg15[%c71_221, %c0_222] {strides = array<i32: 2, 1>} : memref<328x128xf32, #tpu.memory_space<vmem>>, vector<4x128xf32>
    %218 = tpu.concatenate %214, %215, %216, %217 in 0 : vector<4x128xf32>, vector<4x128xf32>, vector<4x128xf32>, vector<4x128xf32> -> vector<16x128xf32>
    %c4_223 = arith.constant 4 : index
    %c0_224 = arith.constant 0 : index
    %c0_225 = arith.constant 0 : index
    %219 = vector.load %arg4[%c4_223, %c0_224, %c0_225] : memref<9x128x128xf32, #tpu.memory_space<vmem>>, vector<1x128x128xf32>
    %220 = vector.shape_cast %219 : vector<1x128x128xf32> to vector<128x128xf32>
    %cst_226 = arith.constant dense<0.000000e+00> : vector<16x128xf32>
    %221 = tpu.matmul %218, %220, %cst_226 {dimension_numbers = #tpu.dot_dimension_numbers<[1], [0], [0], [1], [0, 0, 1, 1], [], []>} : vector<16x128xf32>, vector<128x128xf32>, vector<16x128xf32> -> vector<16x128xf32>
    %222 = arith.addf %213, %221 : vector<16x128xf32>
    %c12 = arith.constant 12 : index
    %c0_227 = arith.constant 0 : index
    %223 = tpu.strided_load %arg15[%c12, %c0_227] {strides = array<i32: 2, 1>} : memref<328x128xf32, #tpu.memory_space<vmem>>, vector<4x128xf32>
    %c32 = arith.constant 32 : index
    %c0_228 = arith.constant 0 : index
    %224 = tpu.strided_load %arg15[%c32, %c0_228] {strides = array<i32: 2, 1>} : memref<328x128xf32, #tpu.memory_space<vmem>>, vector<4x128xf32>
    %c52 = arith.constant 52 : index
    %c0_229 = arith.constant 0 : index
    %225 = tpu.strided_load %arg15[%c52, %c0_229] {strides = array<i32: 2, 1>} : memref<328x128xf32, #tpu.memory_space<vmem>>, vector<4x128xf32>
    %c72_230 = arith.constant 72 : index
    %c0_231 = arith.constant 0 : index
    %226 = tpu.strided_load %arg15[%c72_230, %c0_231] {strides = array<i32: 2, 1>} : memref<328x128xf32, #tpu.memory_space<vmem>>, vector<4x128xf32>
    %227 = tpu.concatenate %223, %224, %225, %226 in 0 : vector<4x128xf32>, vector<4x128xf32>, vector<4x128xf32>, vector<4x128xf32> -> vector<16x128xf32>
    %c5_232 = arith.constant 5 : index
    %c0_233 = arith.constant 0 : index
    %c0_234 = arith.constant 0 : index
    %228 = vector.load %arg4[%c5_232, %c0_233, %c0_234] : memref<9x128x128xf32, #tpu.memory_space<vmem>>, vector<1x128x128xf32>
    %229 = vector.shape_cast %228 : vector<1x128x128xf32> to vector<128x128xf32>
    %cst_235 = arith.constant dense<0.000000e+00> : vector<16x128xf32>
    %230 = tpu.matmul %227, %229, %cst_235 {dimension_numbers = #tpu.dot_dimension_numbers<[1], [0], [0], [1], [0, 0, 1, 1], [], []>} : vector<16x128xf32>, vector<128x128xf32>, vector<16x128xf32> -> vector<16x128xf32>
    %231 = arith.addf %222, %230 : vector<16x128xf32>
    %c20_236 = arith.constant 20 : index
    %c0_237 = arith.constant 0 : index
    %232 = tpu.strided_load %arg15[%c20_236, %c0_237] {strides = array<i32: 2, 1>} : memref<328x128xf32, #tpu.memory_space<vmem>>, vector<4x128xf32>
    %c40_238 = arith.constant 40 : index
    %c0_239 = arith.constant 0 : index
    %233 = tpu.strided_load %arg15[%c40_238, %c0_239] {strides = array<i32: 2, 1>} : memref<328x128xf32, #tpu.memory_space<vmem>>, vector<4x128xf32>
    %c60_240 = arith.constant 60 : index
    %c0_241 = arith.constant 0 : index
    %234 = tpu.strided_load %arg15[%c60_240, %c0_241] {strides = array<i32: 2, 1>} : memref<328x128xf32, #tpu.memory_space<vmem>>, vector<4x128xf32>
    %c80 = arith.constant 80 : index
    %c0_242 = arith.constant 0 : index
    %235 = tpu.strided_load %arg15[%c80, %c0_242] {strides = array<i32: 2, 1>} : memref<328x128xf32, #tpu.memory_space<vmem>>, vector<4x128xf32>
    %236 = tpu.concatenate %232, %233, %234, %235 in 0 : vector<4x128xf32>, vector<4x128xf32>, vector<4x128xf32>, vector<4x128xf32> -> vector<16x128xf32>
    %c6_243 = arith.constant 6 : index
    %c0_244 = arith.constant 0 : index
    %c0_245 = arith.constant 0 : index
    %237 = vector.load %arg4[%c6_243, %c0_244, %c0_245] : memref<9x128x128xf32, #tpu.memory_space<vmem>>, vector<1x128x128xf32>
    %238 = vector.shape_cast %237 : vector<1x128x128xf32> to vector<128x128xf32>
    %cst_246 = arith.constant dense<0.000000e+00> : vector<16x128xf32>
    %239 = tpu.matmul %236, %238, %cst_246 {dimension_numbers = #tpu.dot_dimension_numbers<[1], [0], [0], [1], [0, 0, 1, 1], [], []>} : vector<16x128xf32>, vector<128x128xf32>, vector<16x128xf32> -> vector<16x128xf32>
    %240 = arith.addf %231, %239 : vector<16x128xf32>
    %c21_247 = arith.constant 21 : index
    %c0_248 = arith.constant 0 : index
    %241 = tpu.strided_load %arg15[%c21_247, %c0_248] {strides = array<i32: 2, 1>} : memref<328x128xf32, #tpu.memory_space<vmem>>, vector<4x128xf32>
    %c41_249 = arith.constant 41 : index
    %c0_250 = arith.constant 0 : index
    %242 = tpu.strided_load %arg15[%c41_249, %c0_250] {strides = array<i32: 2, 1>} : memref<328x128xf32, #tpu.memory_space<vmem>>, vector<4x128xf32>
    %c61_251 = arith.constant 61 : index
    %c0_252 = arith.constant 0 : index
    %243 = tpu.strided_load %arg15[%c61_251, %c0_252] {strides = array<i32: 2, 1>} : memref<328x128xf32, #tpu.memory_space<vmem>>, vector<4x128xf32>
    %c81_253 = arith.constant 81 : index
    %c0_254 = arith.constant 0 : index
    %244 = tpu.strided_load %arg15[%c81_253, %c0_254] {strides = array<i32: 2, 1>} : memref<328x128xf32, #tpu.memory_space<vmem>>, vector<4x128xf32>
    %245 = tpu.concatenate %241, %242, %243, %244 in 0 : vector<4x128xf32>, vector<4x128xf32>, vector<4x128xf32>, vector<4x128xf32> -> vector<16x128xf32>
    %c7_255 = arith.constant 7 : index
    %c0_256 = arith.constant 0 : index
    %c0_257 = arith.constant 0 : index
    %246 = vector.load %arg4[%c7_255, %c0_256, %c0_257] : memref<9x128x128xf32, #tpu.memory_space<vmem>>, vector<1x128x128xf32>
    %247 = vector.shape_cast %246 : vector<1x128x128xf32> to vector<128x128xf32>
    %cst_258 = arith.constant dense<0.000000e+00> : vector<16x128xf32>
    %248 = tpu.matmul %245, %247, %cst_258 {dimension_numbers = #tpu.dot_dimension_numbers<[1], [0], [0], [1], [0, 0, 1, 1], [], []>} : vector<16x128xf32>, vector<128x128xf32>, vector<16x128xf32> -> vector<16x128xf32>
    %249 = arith.addf %240, %248 : vector<16x128xf32>
    %c22_259 = arith.constant 22 : index
    %c0_260 = arith.constant 0 : index
    %250 = tpu.strided_load %arg15[%c22_259, %c0_260] {strides = array<i32: 2, 1>} : memref<328x128xf32, #tpu.memory_space<vmem>>, vector<4x128xf32>
    %c42_261 = arith.constant 42 : index
    %c0_262 = arith.constant 0 : index
    %251 = tpu.strided_load %arg15[%c42_261, %c0_262] {strides = array<i32: 2, 1>} : memref<328x128xf32, #tpu.memory_space<vmem>>, vector<4x128xf32>
    %c62_263 = arith.constant 62 : index
    %c0_264 = arith.constant 0 : index
    %252 = tpu.strided_load %arg15[%c62_263, %c0_264] {strides = array<i32: 2, 1>} : memref<328x128xf32, #tpu.memory_space<vmem>>, vector<4x128xf32>
    %c82 = arith.constant 82 : index
    %c0_265 = arith.constant 0 : index
    %253 = tpu.strided_load %arg15[%c82, %c0_265] {strides = array<i32: 2, 1>} : memref<328x128xf32, #tpu.memory_space<vmem>>, vector<4x128xf32>
    %254 = tpu.concatenate %250, %251, %252, %253 in 0 : vector<4x128xf32>, vector<4x128xf32>, vector<4x128xf32>, vector<4x128xf32> -> vector<16x128xf32>
    %c8_266 = arith.constant 8 : index
    %c0_267 = arith.constant 0 : index
    %c0_268 = arith.constant 0 : index
    %255 = vector.load %arg4[%c8_266, %c0_267, %c0_268] : memref<9x128x128xf32, #tpu.memory_space<vmem>>, vector<1x128x128xf32>
    %256 = vector.shape_cast %255 : vector<1x128x128xf32> to vector<128x128xf32>
    %cst_269 = arith.constant dense<0.000000e+00> : vector<16x128xf32>
    %257 = tpu.matmul %254, %256, %cst_269 {dimension_numbers = #tpu.dot_dimension_numbers<[1], [0], [0], [1], [0, 0, 1, 1], [], []>} : vector<16x128xf32>, vector<128x128xf32>, vector<16x128xf32> -> vector<16x128xf32>
    %258 = arith.addf %249, %257 : vector<16x128xf32>
    %c0_270 = arith.constant 0 : index
    %c0_271 = arith.constant 0 : index
    %259 = vector.load %arg5[%c0_270, %c0_271] : memref<1x128xf32, #tpu.memory_space<vmem>>, vector<1x128xf32>
    %260 = vector.broadcast %259 : vector<1x128xf32> to vector<16x128xf32>
    %261 = arith.addf %258, %260 : vector<16x128xf32>
    %cst_272 = arith.constant 0.000000e+00 : f32
    %262 = vector.broadcast %cst_272 : f32 to vector<16x128xf32>
    %263 = arith.maximumf %261, %262 : vector<16x128xf32>
    %cst_273 = arith.constant 0.000000e+00 : f32
    %264 = vector.broadcast %cst_273 : f32 to vector<328x128xf32>
    %c0_274 = arith.constant 0 : index
    %c0_275 = arith.constant 0 : index
    %265 = vector.load %arg14[%c0_274, %c0_275] : memref<328x128xf32, #tpu.memory_space<vmem>>, vector<328x128xf32>
    tpu.vector_store %arg14[%c0_274, %c0_275], %264 {strides = array<i32>} : memref<328x128xf32, #tpu.memory_space<vmem>>, vector<328x128xf32>,
    %266 = vector.extract_strided_slice %263 {offsets = [0, 0], sizes = [4, 128], strides = [1, 1]} : vector<16x128xf32> to vector<4x128xf32>
    %c7_276 = arith.constant 7 : index
    %c0_277 = arith.constant 0 : index
    %267 = vector.load %arg14[%c7_276, %c0_277] : memref<328x128xf32, #tpu.memory_space<vmem>>, vector<4x128xf32>
    tpu.vector_store %arg14[%c7_276, %c0_277], %266 {strides = array<i32>} : memref<328x128xf32, #tpu.memory_space<vmem>>, vector<4x128xf32>,
    %268 = vector.extract_strided_slice %263 {offsets = [4, 0], sizes = [4, 128], strides = [1, 1]} : vector<16x128xf32> to vector<4x128xf32>
    %c13 = arith.constant 13 : index
    %c0_278 = arith.constant 0 : index
    %269 = vector.load %arg14[%c13, %c0_278] : memref<328x128xf32, #tpu.memory_space<vmem>>, vector<4x128xf32>
    tpu.vector_store %arg14[%c13, %c0_278], %268 {strides = array<i32>} : memref<328x128xf32, #tpu.memory_space<vmem>>, vector<4x128xf32>,
    %270 = vector.extract_strided_slice %263 {offsets = [8, 0], sizes = [4, 128], strides = [1, 1]} : vector<16x128xf32> to vector<4x128xf32>
    %c19_279 = arith.constant 19 : index
    %c0_280 = arith.constant 0 : index
    %271 = vector.load %arg14[%c19_279, %c0_280] : memref<328x128xf32, #tpu.memory_space<vmem>>, vector<4x128xf32>
    tpu.vector_store %arg14[%c19_279, %c0_280], %270 {strides = array<i32>} : memref<328x128xf32, #tpu.memory_space<vmem>>, vector<4x128xf32>,
    %272 = vector.extract_strided_slice %263 {offsets = [12, 0], sizes = [4, 128], strides = [1, 1]} : vector<16x128xf32> to vector<4x128xf32>
    %c25 = arith.constant 25 : index
    %c0_281 = arith.constant 0 : index
    %273 = vector.load %arg14[%c25, %c0_281] : memref<328x128xf32, #tpu.memory_space<vmem>>, vector<4x128xf32>
    tpu.vector_store %arg14[%c25, %c0_281], %272 {strides = array<i32>} : memref<328x128xf32, #tpu.memory_space<vmem>>, vector<4x128xf32>,
    %cst_282 = arith.constant 0.000000e+00 : f32
    %274 = vector.broadcast %cst_282 : f32 to vector<4x128xf32>
    %c0_283 = arith.constant 0 : index
    %c0_284 = arith.constant 0 : index
    %275 = tpu.strided_load %arg14[%c0_283, %c0_284] {strides = array<i32: 2, 1>} : memref<328x128xf32, #tpu.memory_space<vmem>>, vector<2x128xf32>
    %c12_285 = arith.constant 12 : index
    %c0_286 = arith.constant 0 : index
    %276 = tpu.strided_load %arg14[%c12_285, %c0_286] {strides = array<i32: 2, 1>} : memref<328x128xf32, #tpu.memory_space<vmem>>, vector<2x128xf32>
    %277 = tpu.concatenate %275, %276 in 0 : vector<2x128xf32>, vector<2x128xf32> -> vector<4x128xf32>
    %c0_287 = arith.constant 0 : index
    %c0_288 = arith.constant 0 : index
    %c0_289 = arith.constant 0 : index
    %278 = vector.load %arg6[%c0_287, %c0_288, %c0_289] : memref<9x128x128xf32, #tpu.memory_space<vmem>>, vector<1x128x128xf32>
    %279 = vector.shape_cast %278 : vector<1x128x128xf32> to vector<128x128xf32>
    %cst_290 = arith.constant dense<0.000000e+00> : vector<4x128xf32>
    %280 = tpu.matmul %277, %279, %cst_290 {dimension_numbers = #tpu.dot_dimension_numbers<[1], [0], [0], [1], [0, 0, 1, 1], [], []>} : vector<4x128xf32>, vector<128x128xf32>, vector<4x128xf32> -> vector<4x128xf32>
    %281 = arith.addf %274, %280 : vector<4x128xf32>
    %c1_291 = arith.constant 1 : index
    %c0_292 = arith.constant 0 : index
    %282 = tpu.strided_load %arg14[%c1_291, %c0_292] {strides = array<i32: 2, 1>} : memref<328x128xf32, #tpu.memory_space<vmem>>, vector<2x128xf32>
    %c13_293 = arith.constant 13 : index
    %c0_294 = arith.constant 0 : index
    %283 = tpu.strided_load %arg14[%c13_293, %c0_294] {strides = array<i32: 2, 1>} : memref<328x128xf32, #tpu.memory_space<vmem>>, vector<2x128xf32>
    %284 = tpu.concatenate %282, %283 in 0 : vector<2x128xf32>, vector<2x128xf32> -> vector<4x128xf32>
    %c1_295 = arith.constant 1 : index
    %c0_296 = arith.constant 0 : index
    %c0_297 = arith.constant 0 : index
    %285 = vector.load %arg6[%c1_295, %c0_296, %c0_297] : memref<9x128x128xf32, #tpu.memory_space<vmem>>, vector<1x128x128xf32>
    %286 = vector.shape_cast %285 : vector<1x128x128xf32> to vector<128x128xf32>
    %cst_298 = arith.constant dense<0.000000e+00> : vector<4x128xf32>
    %287 = tpu.matmul %284, %286, %cst_298 {dimension_numbers = #tpu.dot_dimension_numbers<[1], [0], [0], [1], [0, 0, 1, 1], [], []>} : vector<4x128xf32>, vector<128x128xf32>, vector<4x128xf32> -> vector<4x128xf32>
    %288 = arith.addf %281, %287 : vector<4x128xf32>
    %c2_299 = arith.constant 2 : index
    %c0_300 = arith.constant 0 : index
    %289 = tpu.strided_load %arg14[%c2_299, %c0_300] {strides = array<i32: 2, 1>} : memref<328x128xf32, #tpu.memory_space<vmem>>, vector<2x128xf32>
    %c14 = arith.constant 14 : index
    %c0_301 = arith.constant 0 : index
    %290 = tpu.strided_load %arg14[%c14, %c0_301] {strides = array<i32: 2, 1>} : memref<328x128xf32, #tpu.memory_space<vmem>>, vector<2x128xf32>
    %291 = tpu.concatenate %289, %290 in 0 : vector<2x128xf32>, vector<2x128xf32> -> vector<4x128xf32>
    %c2_302 = arith.constant 2 : index
    %c0_303 = arith.constant 0 : index
    %c0_304 = arith.constant 0 : index
    %292 = vector.load %arg6[%c2_302, %c0_303, %c0_304] : memref<9x128x128xf32, #tpu.memory_space<vmem>>, vector<1x128x128xf32>
    %293 = vector.shape_cast %292 : vector<1x128x128xf32> to vector<128x128xf32>
    %cst_305 = arith.constant dense<0.000000e+00> : vector<4x128xf32>
    %294 = tpu.matmul %291, %293, %cst_305 {dimension_numbers = #tpu.dot_dimension_numbers<[1], [0], [0], [1], [0, 0, 1, 1], [], []>} : vector<4x128xf32>, vector<128x128xf32>, vector<4x128xf32> -> vector<4x128xf32>
    %295 = arith.addf %288, %294 : vector<4x128xf32>
    %c6_306 = arith.constant 6 : index
    %c0_307 = arith.constant 0 : index
    %296 = tpu.strided_load %arg14[%c6_306, %c0_307] {strides = array<i32: 2, 1>} : memref<328x128xf32, #tpu.memory_space<vmem>>, vector<2x128xf32>
    %c18_308 = arith.constant 18 : index
    %c0_309 = arith.constant 0 : index
    %297 = tpu.strided_load %arg14[%c18_308, %c0_309] {strides = array<i32: 2, 1>} : memref<328x128xf32, #tpu.memory_space<vmem>>, vector<2x128xf32>
    %298 = tpu.concatenate %296, %297 in 0 : vector<2x128xf32>, vector<2x128xf32> -> vector<4x128xf32>
    %c3_310 = arith.constant 3 : index
    %c0_311 = arith.constant 0 : index
    %c0_312 = arith.constant 0 : index
    %299 = vector.load %arg6[%c3_310, %c0_311, %c0_312] : memref<9x128x128xf32, #tpu.memory_space<vmem>>, vector<1x128x128xf32>
    %300 = vector.shape_cast %299 : vector<1x128x128xf32> to vector<128x128xf32>
    %cst_313 = arith.constant dense<0.000000e+00> : vector<4x128xf32>
    %301 = tpu.matmul %298, %300, %cst_313 {dimension_numbers = #tpu.dot_dimension_numbers<[1], [0], [0], [1], [0, 0, 1, 1], [], []>} : vector<4x128xf32>, vector<128x128xf32>, vector<4x128xf32> -> vector<4x128xf32>
    %302 = arith.addf %295, %301 : vector<4x128xf32>
    %c7_314 = arith.constant 7 : index
    %c0_315 = arith.constant 0 : index
    %303 = tpu.strided_load %arg14[%c7_314, %c0_315] {strides = array<i32: 2, 1>} : memref<328x128xf32, #tpu.memory_space<vmem>>, vector<2x128xf32>
    %c19_316 = arith.constant 19 : index
    %c0_317 = arith.constant 0 : index
    %304 = tpu.strided_load %arg14[%c19_316, %c0_317] {strides = array<i32: 2, 1>} : memref<328x128xf32, #tpu.memory_space<vmem>>, vector<2x128xf32>
    %305 = tpu.concatenate %303, %304 in 0 : vector<2x128xf32>, vector<2x128xf32> -> vector<4x128xf32>
    %c4_318 = arith.constant 4 : index
    %c0_319 = arith.constant 0 : index
    %c0_320 = arith.constant 0 : index
    %306 = vector.load %arg6[%c4_318, %c0_319, %c0_320] : memref<9x128x128xf32, #tpu.memory_space<vmem>>, vector<1x128x128xf32>
    %307 = vector.shape_cast %306 : vector<1x128x128xf32> to vector<128x128xf32>
    %cst_321 = arith.constant dense<0.000000e+00> : vector<4x128xf32>
    %308 = tpu.matmul %305, %307, %cst_321 {dimension_numbers = #tpu.dot_dimension_numbers<[1], [0], [0], [1], [0, 0, 1, 1], [], []>} : vector<4x128xf32>, vector<128x128xf32>, vector<4x128xf32> -> vector<4x128xf32>
    %309 = arith.addf %302, %308 : vector<4x128xf32>
    %c8_322 = arith.constant 8 : index
    %c0_323 = arith.constant 0 : index
    %310 = tpu.strided_load %arg14[%c8_322, %c0_323] {strides = array<i32: 2, 1>} : memref<328x128xf32, #tpu.memory_space<vmem>>, vector<2x128xf32>
    %c20_324 = arith.constant 20 : index
    %c0_325 = arith.constant 0 : index
    %311 = tpu.strided_load %arg14[%c20_324, %c0_325] {strides = array<i32: 2, 1>} : memref<328x128xf32, #tpu.memory_space<vmem>>, vector<2x128xf32>
    %312 = tpu.concatenate %310, %311 in 0 : vector<2x128xf32>, vector<2x128xf32> -> vector<4x128xf32>
    %c5_326 = arith.constant 5 : index
    %c0_327 = arith.constant 0 : index
    %c0_328 = arith.constant 0 : index
    %313 = vector.load %arg6[%c5_326, %c0_327, %c0_328] : memref<9x128x128xf32, #tpu.memory_space<vmem>>, vector<1x128x128xf32>
    %314 = vector.shape_cast %313 : vector<1x128x128xf32> to vector<128x128xf32>
    %cst_329 = arith.constant dense<0.000000e+00> : vector<4x128xf32>
    %315 = tpu.matmul %312, %314, %cst_329 {dimension_numbers = #tpu.dot_dimension_numbers<[1], [0], [0], [1], [0, 0, 1, 1], [], []>} : vector<4x128xf32>, vector<128x128xf32>, vector<4x128xf32> -> vector<4x128xf32>
    %316 = arith.addf %309, %315 : vector<4x128xf32>
    %c12_330 = arith.constant 12 : index
    %c0_331 = arith.constant 0 : index
    %317 = tpu.strided_load %arg14[%c12_330, %c0_331] {strides = array<i32: 2, 1>} : memref<328x128xf32, #tpu.memory_space<vmem>>, vector<2x128xf32>
    %c24 = arith.constant 24 : index
    %c0_332 = arith.constant 0 : index
    %318 = tpu.strided_load %arg14[%c24, %c0_332] {strides = array<i32: 2, 1>} : memref<328x128xf32, #tpu.memory_space<vmem>>, vector<2x128xf32>
    %319 = tpu.concatenate %317, %318 in 0 : vector<2x128xf32>, vector<2x128xf32> -> vector<4x128xf32>
    %c6_333 = arith.constant 6 : index
    %c0_334 = arith.constant 0 : index
    %c0_335 = arith.constant 0 : index
    %320 = vector.load %arg6[%c6_333, %c0_334, %c0_335] : memref<9x128x128xf32, #tpu.memory_space<vmem>>, vector<1x128x128xf32>
    %321 = vector.shape_cast %320 : vector<1x128x128xf32> to vector<128x128xf32>
    %cst_336 = arith.constant dense<0.000000e+00> : vector<4x128xf32>
    %322 = tpu.matmul %319, %321, %cst_336 {dimension_numbers = #tpu.dot_dimension_numbers<[1], [0], [0], [1], [0, 0, 1, 1], [], []>} : vector<4x128xf32>, vector<128x128xf32>, vector<4x128xf32> -> vector<4x128xf32>
    %323 = arith.addf %316, %322 : vector<4x128xf32>
    %c13_337 = arith.constant 13 : index
    %c0_338 = arith.constant 0 : index
    %324 = tpu.strided_load %arg14[%c13_337, %c0_338] {strides = array<i32: 2, 1>} : memref<328x128xf32, #tpu.memory_space<vmem>>, vector<2x128xf32>
    %c25_339 = arith.constant 25 : index
    %c0_340 = arith.constant 0 : index
    %325 = tpu.strided_load %arg14[%c25_339, %c0_340] {strides = array<i32: 2, 1>} : memref<328x128xf32, #tpu.memory_space<vmem>>, vector<2x128xf32>
    %326 = tpu.concatenate %324, %325 in 0 : vector<2x128xf32>, vector<2x128xf32> -> vector<4x128xf32>
    %c7_341 = arith.constant 7 : index
    %c0_342 = arith.constant 0 : index
    %c0_343 = arith.constant 0 : index
    %327 = vector.load %arg6[%c7_341, %c0_342, %c0_343] : memref<9x128x128xf32, #tpu.memory_space<vmem>>, vector<1x128x128xf32>
    %328 = vector.shape_cast %327 : vector<1x128x128xf32> to vector<128x128xf32>
    %cst_344 = arith.constant dense<0.000000e+00> : vector<4x128xf32>
    %329 = tpu.matmul %326, %328, %cst_344 {dimension_numbers = #tpu.dot_dimension_numbers<[1], [0], [0], [1], [0, 0, 1, 1], [], []>} : vector<4x128xf32>, vector<128x128xf32>, vector<4x128xf32> -> vector<4x128xf32>
    %330 = arith.addf %323, %329 : vector<4x128xf32>
    %c14_345 = arith.constant 14 : index
    %c0_346 = arith.constant 0 : index
    %331 = tpu.strided_load %arg14[%c14_345, %c0_346] {strides = array<i32: 2, 1>} : memref<328x128xf32, #tpu.memory_space<vmem>>, vector<2x128xf32>
    %c26 = arith.constant 26 : index
    %c0_347 = arith.constant 0 : index
    %332 = tpu.strided_load %arg14[%c26, %c0_347] {strides = array<i32: 2, 1>} : memref<328x128xf32, #tpu.memory_space<vmem>>, vector<2x128xf32>
    %333 = tpu.concatenate %331, %332 in 0 : vector<2x128xf32>, vector<2x128xf32> -> vector<4x128xf32>
    %c8_348 = arith.constant 8 : index
    %c0_349 = arith.constant 0 : index
    %c0_350 = arith.constant 0 : index
    %334 = vector.load %arg6[%c8_348, %c0_349, %c0_350] : memref<9x128x128xf32, #tpu.memory_space<vmem>>, vector<1x128x128xf32>
    %335 = vector.shape_cast %334 : vector<1x128x128xf32> to vector<128x128xf32>
    %cst_351 = arith.constant dense<0.000000e+00> : vector<4x128xf32>
    %336 = tpu.matmul %333, %335, %cst_351 {dimension_numbers = #tpu.dot_dimension_numbers<[1], [0], [0], [1], [0, 0, 1, 1], [], []>} : vector<4x128xf32>, vector<128x128xf32>, vector<4x128xf32> -> vector<4x128xf32>
    %337 = arith.addf %330, %336 : vector<4x128xf32>
    %c0_352 = arith.constant 0 : index
    %c0_353 = arith.constant 0 : index
    %338 = vector.load %arg7[%c0_352, %c0_353] : memref<1x128xf32, #tpu.memory_space<vmem>>, vector<1x128xf32>
    %339 = vector.broadcast %338 : vector<1x128xf32> to vector<4x128xf32>
    %340 = arith.addf %337, %339 : vector<4x128xf32>
    %cst_354 = arith.constant 0.000000e+00 : f32
    %341 = vector.broadcast %cst_354 : f32 to vector<4x128xf32>
    %342 = arith.maximumf %340, %341 : vector<4x128xf32>
    %cst_355 = arith.constant 0.000000e+00 : f32
    %343 = vector.broadcast %cst_355 : f32 to vector<328x128xf32>
    %c0_356 = arith.constant 0 : index
    %c0_357 = arith.constant 0 : index
    %344 = vector.load %arg15[%c0_356, %c0_357] : memref<328x128xf32, #tpu.memory_space<vmem>>, vector<328x128xf32>
    tpu.vector_store %arg15[%c0_356, %c0_357], %343 {strides = array<i32>} : memref<328x128xf32, #tpu.memory_space<vmem>>, vector<328x128xf32>,
    %345 = vector.extract_strided_slice %342 {offsets = [0, 0], sizes = [2, 128], strides = [1, 1]} : vector<4x128xf32> to vector<2x128xf32>
    %c5_358 = arith.constant 5 : index
    %c0_359 = arith.constant 0 : index
    %346 = vector.load %arg15[%c5_358, %c0_359] : memref<328x128xf32, #tpu.memory_space<vmem>>, vector<2x128xf32>
    tpu.vector_store %arg15[%c5_358, %c0_359], %345 {strides = array<i32>} : memref<328x128xf32, #tpu.memory_space<vmem>>, vector<2x128xf32>,
    %347 = vector.extract_strided_slice %342 {offsets = [2, 0], sizes = [2, 128], strides = [1, 1]} : vector<4x128xf32> to vector<2x128xf32>
    %c9 = arith.constant 9 : index
    %c0_360 = arith.constant 0 : index
    %348 = vector.load %arg15[%c9, %c0_360] : memref<328x128xf32, #tpu.memory_space<vmem>>, vector<2x128xf32>
    tpu.vector_store %arg15[%c9, %c0_360], %347 {strides = array<i32>} : memref<328x128xf32, #tpu.memory_space<vmem>>, vector<2x128xf32>,
    %cst_361 = arith.constant 0.000000e+00 : f32
    %349 = vector.broadcast %cst_361 : f32 to vector<1x128xf32>
    %c0_362 = arith.constant 0 : index
    %c0_363 = arith.constant 0 : index
    %350 = vector.load %arg15[%c0_362, %c0_363] : memref<328x128xf32, #tpu.memory_space<vmem>>, vector<1x128xf32>
    %c0_364 = arith.constant 0 : index
    %c0_365 = arith.constant 0 : index
    %c0_366 = arith.constant 0 : index
    %351 = vector.load %arg8[%c0_364, %c0_365, %c0_366] : memref<9x128x128xf32, #tpu.memory_space<vmem>>, vector<1x128x128xf32>
    %352 = vector.shape_cast %351 : vector<1x128x128xf32> to vector<128x128xf32>
    %cst_367 = arith.constant dense<0.000000e+00> : vector<1x128xf32>
    %353 = tpu.matmul %350, %352, %cst_367 {dimension_numbers = #tpu.dot_dimension_numbers<[1], [0], [0], [1], [0, 0, 1, 1], [], []>} : vector<1x128xf32>, vector<128x128xf32>, vector<1x128xf32> -> vector<1x128xf32>
    %354 = arith.addf %349, %353 : vector<1x128xf32>
    %c1_368 = arith.constant 1 : index
    %c0_369 = arith.constant 0 : index
    %355 = vector.load %arg15[%c1_368, %c0_369] : memref<328x128xf32, #tpu.memory_space<vmem>>, vector<1x128xf32>
    %c1_370 = arith.constant 1 : index
    %c0_371 = arith.constant 0 : index
    %c0_372 = arith.constant 0 : index
    %356 = vector.load %arg8[%c1_370, %c0_371, %c0_372] : memref<9x128x128xf32, #tpu.memory_space<vmem>>, vector<1x128x128xf32>
    %357 = vector.shape_cast %356 : vector<1x128x128xf32> to vector<128x128xf32>
    %cst_373 = arith.constant dense<0.000000e+00> : vector<1x128xf32>
    %358 = tpu.matmul %355, %357, %cst_373 {dimension_numbers = #tpu.dot_dimension_numbers<[1], [0], [0], [1], [0, 0, 1, 1], [], []>} : vector<1x128xf32>, vector<128x128xf32>, vector<1x128xf32> -> vector<1x128xf32>
    %359 = arith.addf %354, %358 : vector<1x128xf32>
    %c2_374 = arith.constant 2 : index
    %c0_375 = arith.constant 0 : index
    %360 = vector.load %arg15[%c2_374, %c0_375] : memref<328x128xf32, #tpu.memory_space<vmem>>, vector<1x128xf32>
    %c2_376 = arith.constant 2 : index
    %c0_377 = arith.constant 0 : index
    %c0_378 = arith.constant 0 : index
    %361 = vector.load %arg8[%c2_376, %c0_377, %c0_378] : memref<9x128x128xf32, #tpu.memory_space<vmem>>, vector<1x128x128xf32>
    %362 = vector.shape_cast %361 : vector<1x128x128xf32> to vector<128x128xf32>
    %cst_379 = arith.constant dense<0.000000e+00> : vector<1x128xf32>
    %363 = tpu.matmul %360, %362, %cst_379 {dimension_numbers = #tpu.dot_dimension_numbers<[1], [0], [0], [1], [0, 0, 1, 1], [], []>} : vector<1x128xf32>, vector<128x128xf32>, vector<1x128xf32> -> vector<1x128xf32>
    %364 = arith.addf %359, %363 : vector<1x128xf32>
    %c4_380 = arith.constant 4 : index
    %c0_381 = arith.constant 0 : index
    %365 = vector.load %arg15[%c4_380, %c0_381] : memref<328x128xf32, #tpu.memory_space<vmem>>, vector<1x128xf32>
    %c3_382 = arith.constant 3 : index
    %c0_383 = arith.constant 0 : index
    %c0_384 = arith.constant 0 : index
    %366 = vector.load %arg8[%c3_382, %c0_383, %c0_384] : memref<9x128x128xf32, #tpu.memory_space<vmem>>, vector<1x128x128xf32>
    %367 = vector.shape_cast %366 : vector<1x128x128xf32> to vector<128x128xf32>
    %cst_385 = arith.constant dense<0.000000e+00> : vector<1x128xf32>
    %368 = tpu.matmul %365, %367, %cst_385 {dimension_numbers = #tpu.dot_dimension_numbers<[1], [0], [0], [1], [0, 0, 1, 1], [], []>} : vector<1x128xf32>, vector<128x128xf32>, vector<1x128xf32> -> vector<1x128xf32>
    %369 = arith.addf %364, %368 : vector<1x128xf32>
    %c5_386 = arith.constant 5 : index
    %c0_387 = arith.constant 0 : index
    %370 = vector.load %arg15[%c5_386, %c0_387] : memref<328x128xf32, #tpu.memory_space<vmem>>, vector<1x128xf32>
    %c4_388 = arith.constant 4 : index
    %c0_389 = arith.constant 0 : index
    %c0_390 = arith.constant 0 : index
    %371 = vector.load %arg8[%c4_388, %c0_389, %c0_390] : memref<9x128x128xf32, #tpu.memory_space<vmem>>, vector<1x128x128xf32>
    %372 = vector.shape_cast %371 : vector<1x128x128xf32> to vector<128x128xf32>
    %cst_391 = arith.constant dense<0.000000e+00> : vector<1x128xf32>
    %373 = tpu.matmul %370, %372, %cst_391 {dimension_numbers = #tpu.dot_dimension_numbers<[1], [0], [0], [1], [0, 0, 1, 1], [], []>} : vector<1x128xf32>, vector<128x128xf32>, vector<1x128xf32> -> vector<1x128xf32>
    %374 = arith.addf %369, %373 : vector<1x128xf32>
    %c6_392 = arith.constant 6 : index
    %c0_393 = arith.constant 0 : index
    %375 = vector.load %arg15[%c6_392, %c0_393] : memref<328x128xf32, #tpu.memory_space<vmem>>, vector<1x128xf32>
    %c5_394 = arith.constant 5 : index
    %c0_395 = arith.constant 0 : index
    %c0_396 = arith.constant 0 : index
    %376 = vector.load %arg8[%c5_394, %c0_395, %c0_396] : memref<9x128x128xf32, #tpu.memory_space<vmem>>, vector<1x128x128xf32>
    %377 = vector.shape_cast %376 : vector<1x128x128xf32> to vector<128x128xf32>
    %cst_397 = arith.constant dense<0.000000e+00> : vector<1x128xf32>
    %378 = tpu.matmul %375, %377, %cst_397 {dimension_numbers = #tpu.dot_dimension_numbers<[1], [0], [0], [1], [0, 0, 1, 1], [], []>} : vector<1x128xf32>, vector<128x128xf32>, vector<1x128xf32> -> vector<1x128xf32>
    %379 = arith.addf %374, %378 : vector<1x128xf32>
    %c8_398 = arith.constant 8 : index
    %c0_399 = arith.constant 0 : index
    %380 = vector.load %arg15[%c8_398, %c0_399] : memref<328x128xf32, #tpu.memory_space<vmem>>, vector<1x128xf32>
    %c6_400 = arith.constant 6 : index
    %c0_401 = arith.constant 0 : index
    %c0_402 = arith.constant 0 : index
    %381 = vector.load %arg8[%c6_400, %c0_401, %c0_402] : memref<9x128x128xf32, #tpu.memory_space<vmem>>, vector<1x128x128xf32>
    %382 = vector.shape_cast %381 : vector<1x128x128xf32> to vector<128x128xf32>
    %cst_403 = arith.constant dense<0.000000e+00> : vector<1x128xf32>
    %383 = tpu.matmul %380, %382, %cst_403 {dimension_numbers = #tpu.dot_dimension_numbers<[1], [0], [0], [1], [0, 0, 1, 1], [], []>} : vector<1x128xf32>, vector<128x128xf32>, vector<1x128xf32> -> vector<1x128xf32>
    %384 = arith.addf %379, %383 : vector<1x128xf32>
    %c9_404 = arith.constant 9 : index
    %c0_405 = arith.constant 0 : index
    %385 = vector.load %arg15[%c9_404, %c0_405] : memref<328x128xf32, #tpu.memory_space<vmem>>, vector<1x128xf32>
    %c7_406 = arith.constant 7 : index
    %c0_407 = arith.constant 0 : index
    %c0_408 = arith.constant 0 : index
    %386 = vector.load %arg8[%c7_406, %c0_407, %c0_408] : memref<9x128x128xf32, #tpu.memory_space<vmem>>, vector<1x128x128xf32>
    %387 = vector.shape_cast %386 : vector<1x128x128xf32> to vector<128x128xf32>
    %cst_409 = arith.constant dense<0.000000e+00> : vector<1x128xf32>
    %388 = tpu.matmul %385, %387, %cst_409 {dimension_numbers = #tpu.dot_dimension_numbers<[1], [0], [0], [1], [0, 0, 1, 1], [], []>} : vector<1x128xf32>, vector<128x128xf32>, vector<1x128xf32> -> vector<1x128xf32>
    %389 = arith.addf %384, %388 : vector<1x128xf32>
    %c10_410 = arith.constant 10 : index
    %c0_411 = arith.constant 0 : index
    %390 = vector.load %arg15[%c10_410, %c0_411] : memref<328x128xf32, #tpu.memory_space<vmem>>, vector<1x128xf32>
    %c8_412 = arith.constant 8 : index
    %c0_413 = arith.constant 0 : index
    %c0_414 = arith.constant 0 : index
    %391 = vector.load %arg8[%c8_412, %c0_413, %c0_414] : memref<9x128x128xf32, #tpu.memory_space<vmem>>, vector<1x128x128xf32>
    %392 = vector.shape_cast %391 : vector<1x128x128xf32> to vector<128x128xf32>
    %cst_415 = arith.constant dense<0.000000e+00> : vector<1x128xf32>
    %393 = tpu.matmul %390, %392, %cst_415 {dimension_numbers = #tpu.dot_dimension_numbers<[1], [0], [0], [1], [0, 0, 1, 1], [], []>} : vector<1x128xf32>, vector<128x128xf32>, vector<1x128xf32> -> vector<1x128xf32>
    %394 = arith.addf %389, %393 : vector<1x128xf32>
    %c0_416 = arith.constant 0 : index
    %c0_417 = arith.constant 0 : index
    %395 = vector.load %arg9[%c0_416, %c0_417] : memref<1x128xf32, #tpu.memory_space<vmem>>, vector<1x128xf32>
    %396 = arith.addf %394, %395 : vector<1x128xf32>
    %397 = arith.negf %396 : vector<1x128xf32>
    %398 = math.exp %397 : vector<1x128xf32>
    %cst_418 = arith.constant 1.000000e+00 : f32
    %399 = vector.broadcast %cst_418 : f32 to vector<1x128xf32>
    %400 = arith.addf %399, %398 : vector<1x128xf32>
    %401 = arith.divf %399, %400 : vector<1x128xf32>
    %cst_419 = arith.constant 0.000000e+00 : f32
    %402 = vector.broadcast %cst_419 : f32 to vector<1x128xf32>
    %c0_420 = arith.constant 0 : index
    %c0_421 = arith.constant 0 : index
    %403 = vector.load %arg10[%c0_420, %c0_421] : memref<128x128xf32, #tpu.memory_space<vmem>>, vector<128x128xf32>
    %cst_422 = arith.constant dense<0.000000e+00> : vector<1x128xf32>
    %404 = tpu.matmul %401, %403, %cst_422 {dimension_numbers = #tpu.dot_dimension_numbers<[1], [0], [0], [1], [0, 0, 1, 1], [], []>} : vector<1x128xf32>, vector<128x128xf32>, vector<1x128xf32> -> vector<1x128xf32>
    %405 = arith.addf %402, %404 : vector<1x128xf32>
    %c0_423 = arith.constant 0 : index
    %c0_424 = arith.constant 0 : index
    %406 = vector.load %arg11[%c0_423, %c0_424] : memref<1x128xf32, #tpu.memory_space<vmem>>, vector<1x128xf32>
    %407 = arith.addf %405, %406 : vector<1x128xf32>
    %cst_425 = arith.constant 0.000000e+00 : f32
    %408 = vector.broadcast %cst_425 : f32 to vector<1x128xf32>
    %409 = arith.maximumf %407, %408 : vector<1x128xf32>
    %410 = vector.extract_strided_slice %409 {offsets = [0, 0], sizes = [1, 4], strides = [1, 1]} : vector<1x128xf32> to vector<1x4xf32>
    %c0_426 = arith.constant 0 : index
    %c0_427 = arith.constant 0 : index
    %c0_428 = arith.constant 0 : index
    %411 = vector.load %arg12[%c0_426, %c0_427, %c0_428] : memref<1x1x4xf32, #tpu.memory_space<vmem>>, vector<1x1x4xf32>
    %412 = vector.shape_cast %411 : vector<1x1x4xf32> to vector<1x4xf32>
    %413 = vector.shape_cast %410 : vector<1x4xf32> to vector<1x1x4xf32>
    tpu.vector_store %arg12[%c0_426, %c0_427, %c0_428], %413 {strides = array<i32>} : memref<1x1x4xf32, #tpu.memory_space<vmem>>, vector<1x1x4xf32>,
    %414 = vector.extract_strided_slice %409 {offsets = [0, 4], sizes = [1, 4], strides = [1, 1]} : vector<1x128xf32> to vector<1x4xf32>
    %c0_429 = arith.constant 0 : index
    %c0_430 = arith.constant 0 : index
    %c0_431 = arith.constant 0 : index
    %415 = vector.load %arg13[%c0_429, %c0_430, %c0_431] : memref<1x1x4xf32, #tpu.memory_space<vmem>>, vector<1x1x4xf32>
    %416 = vector.shape_cast %415 : vector<1x1x4xf32> to vector<1x4xf32>
    %417 = vector.shape_cast %414 : vector<1x4xf32> to vector<1x1x4xf32>
    tpu.vector_store %arg13[%c0_429, %c0_430, %c0_431], %417 {strides = array<i32>} : memref<1x1x4xf32, #tpu.memory_space<vmem>>, vector<1x1x4xf32>,
    return
  }
  func.func @transform_0(%arg0: i32) -> (i32, i32, i32) {
    %c0_i32 = arith.constant 0 : i32
    %c0_i32_0 = arith.constant 0 : i32
    %c0_i32_1 = arith.constant 0 : i32
    return %arg0, %c0_i32, %c0_i32_0 : i32, i32, i32
  }
  func.func @transform_1(%arg0: i32) -> (i32, i32, i32) {
    %c0_i32 = arith.constant 0 : i32
    %c0_i32_0 = arith.constant 0 : i32
    %c0_i32_1 = arith.constant 0 : i32
    %c0_i32_2 = arith.constant 0 : i32
    return %c0_i32, %c0_i32_0, %c0_i32_1 : i32, i32, i32
  }
  func.func @transform_2(%arg0: i32) -> (i32, i32) {
    %c0_i32 = arith.constant 0 : i32
    %c0_i32_0 = arith.constant 0 : i32
    %c0_i32_1 = arith.constant 0 : i32
    return %c0_i32, %c0_i32_0 : i32, i32
  }
  func.func @transform_3(%arg0: i32) -> (i32, i32, i32) {
    %c0_i32 = arith.constant 0 : i32
    %c0_i32_0 = arith.constant 0 : i32
    %c0_i32_1 = arith.constant 0 : i32
    %c0_i32_2 = arith.constant 0 : i32
    return %c0_i32, %c0_i32_0, %c0_i32_1 : i32, i32, i32
  }
  func.func @transform_4(%arg0: i32) -> (i32, i32) {
    %c0_i32 = arith.constant 0 : i32
    %c0_i32_0 = arith.constant 0 : i32
    %c0_i32_1 = arith.constant 0 : i32
    return %c0_i32, %c0_i32_0 : i32, i32
  }
  func.func @transform_5(%arg0: i32) -> (i32, i32, i32) {
    %c0_i32 = arith.constant 0 : i32
    %c0_i32_0 = arith.constant 0 : i32
    %c0_i32_1 = arith.constant 0 : i32
    %c0_i32_2 = arith.constant 0 : i32
    return %c0_i32, %c0_i32_0, %c0_i32_1 : i32, i32, i32
  }
  func.func @transform_6(%arg0: i32) -> (i32, i32) {
    %c0_i32 = arith.constant 0 : i32
    %c0_i32_0 = arith.constant 0 : i32
    %c0_i32_1 = arith.constant 0 : i32
    return %c0_i32, %c0_i32_0 : i32, i32
  }
  func.func @transform_7(%arg0: i32) -> (i32, i32, i32) {
    %c0_i32 = arith.constant 0 : i32
    %c0_i32_0 = arith.constant 0 : i32
    %c0_i32_1 = arith.constant 0 : i32
    %c0_i32_2 = arith.constant 0 : i32
    return %c0_i32, %c0_i32_0, %c0_i32_1 : i32, i32, i32
  }
  func.func @transform_8(%arg0: i32) -> (i32, i32) {
    %c0_i32 = arith.constant 0 : i32
    %c0_i32_0 = arith.constant 0 : i32
    %c0_i32_1 = arith.constant 0 : i32
    return %c0_i32, %c0_i32_0 : i32, i32
  }
  func.func @transform_9(%arg0: i32) -> (i32, i32) {
    %c0_i32 = arith.constant 0 : i32
    %c0_i32_0 = arith.constant 0 : i32
    %c0_i32_1 = arith.constant 0 : i32
    return %c0_i32, %c0_i32_0 : i32, i32
  }
  func.func @transform_10(%arg0: i32) -> (i32, i32) {
    %c0_i32 = arith.constant 0 : i32
    %c0_i32_0 = arith.constant 0 : i32
    %c0_i32_1 = arith.constant 0 : i32
    return %c0_i32, %c0_i32_0 : i32, i32
  }
  func.func @transform_11(%arg0: i32) -> (i32, i32, i32) {
    %c0_i32 = arith.constant 0 : i32
    %c0_i32_0 = arith.constant 0 : i32
    %c0_i32_1 = arith.constant 0 : i32
    return %arg0, %c0_i32, %c0_i32_0 : i32, i32, i32
  }
  func.func @transform_12(%arg0: i32) -> (i32, i32, i32) {
    %c0_i32 = arith.constant 0 : i32
    %c0_i32_0 = arith.constant 0 : i32
    %c0_i32_1 = arith.constant 0 : i32
    return %arg0, %c0_i32, %c0_i32_0 : i32, i32, i32
  }
}

</mosaic_0001>

<bundles_post_ra>
// kernel: _lambda_.1
= control target key start
LH: loop header
LB: loop body
LE: loop exit
PB: predicated region body
PF: predicated region fallthrough
CT: control target
= control target key end

     0   :  { %s8478_s0 = inlined_call_operand.vmem [shape: f32[2,256,4], index: 0, kind: input, shape index: {}]   ;;  %s8479_s1 = inlined_call_operand.hbm [shape: f32[9,128,128], index: 1, kind: input, shape index: {}]   ;;  %s8480_s2 = inlined_call_operand.vmem [shape: f32[1,128], index: 2, kind: input, shape index: {}]   ;;  %s8481_s3 = inlined_call_operand.hbm [shape: f32[9,128,128], index: 3, kind: input, shape index: {}]   ;;  %s8482_s4 = inlined_call_operand.vmem [shape: f32[1,128], index: 4, kind: input, shape index: {}]   ;;  %s8483_s5 = inlined_call_operand.hbm [shape: f32[9,128,128], index: 5, kind: input, shape index: {}]   ;;  %s8484_s6 = inlined_call_operand.vmem [shape: f32[1,128], index: 6, kind: input, shape index: {}]   ;;  %s8485_s7 = inlined_call_operand.hbm [shape: f32[9,128,128], index: 7, kind: input, shape index: {}]   ;;  %s8486_s8 = inlined_call_operand.vmem [shape: f32[1,128], index: 8, kind: input, shape index: {}]   ;;  %s8487_s9 = inlined_call_operand.vmem [shape: f32[128,128], index: 9, kind: input, shape index: {}]   ;;  %s8488_s10 = inlined_call_operand.vmem [shape: f32[1,128], index: 10, kind: input, shape index: {}]   ;;  %s8489_s11 = inlined_call_operand.hbm [shape: f32[2,1,4], index: 11, kind: output, shape index: {0}]   ;;  %s8490_s12 = inlined_call_operand.hbm [shape: f32[2,1,4], index: 12, kind: output, shape index: {1}]  }
   0x1   :  { %8499 = sst [smem:[#allocation34_spill]] %s8478_s0 }
   0x2   :  { %18 = vsyncpa [#allocation5], 0 }
   0x3   :  { %19 = vsyncpa [#allocation8], 0 }
   0x4   :  { %20 = vsyncpa [#allocation11], 0 }
   0x5   :  { %21 = vsyncpa [#allocation6], 0 }
   0x6   :  { %23 = vsyncpa [#allocation6 + $0x1], 0 }
   0x7   :  { %24 = vsyncpa [#allocation14], 0 }
   0x8   :  { %26 = vsyncpa [#allocation14 + $0x1], 0  ;;  %s7374_s21 = smov 0   ;;  %s7376_s22 = smov 0  }
   0x9   :  { %s7378_s23 = smov 0   ;;  %s7380_s24 = smov 0  }
   0xa LB: > { %8500 = sst [smem:[#allocation20_spill]] %s7292_s23  ;;  %s7395_s25 = sadd.s32 4294967295, %s7296_s24   ;;  %s7296_s24 = sphi %s7380_s24, %s8531_s24   ;;  %s7292_s23 = sphi %s7378_s23, %s8533_s23   ;;  %s7288_s22 = sphi %s7376_s22, %s8535_s22   ;;  %s7284_s21 = sphi %s7374_s21, %s8534_s21  }
   0xb   : > { %s4892_s26 = sadd.s32 4294967294, %s7296_s24   ;;  %s7399_s27 = sadd.s32 1, %s7296_s24  }
   0xc   : > { %8501 = sst [smem:[#allocation21_spill]] %s7399_s27  ;;  %s275_s28 = sadd.s32 1, %s7292_s23 }
   0xd   : > { %s272_s29 = ssub.s32 %s7296_s24, %s7399_s27  ;;  %p285_p0 = scmp.ne.s32.totalorder %s7292_s23, %s7288_s22 }
   0xe   : > { %p273_p1 = scmp.eq.s32.totalorder %s272_s29, 0  ;;  %p286_p2 = scmp.eq.s32.totalorder %s7395_s25, 1 }
   0xf   : > { %p291_p3 = scmp.ne.s32.totalorder %s7288_s22, %s7284_s21  ;;  %p292_p4 = scmp.eq.s32.totalorder %s4892_s26, 1 }
  0x10   : > { %s7410_s30 = scalar_select %p273_p1, %s7292_s23, %s275_s28  }
  0x11   : > { %p7412_p5 = por %p286_p2, %p285_p0  ;;  %p7416_p6 = por %p292_p4, %p291_p3 }
  0x12   : > { %8502 = sst [smem:[#allocation22_spill]] %s7410_s30  ;;  %p4893_p7 = scmp.ge.s32.totalorder %s7296_s24, 1 }
  0x13   : > { %p325_p8 = scmp.lt.s32.totalorder %s7296_s24, 3  ;;  %p7032_p9 = scmp.eq.s32.totalorder %s7395_s25, 0 }
  0x14   : > { %s7298_s16 = smov [#allocation7]   ;;  %s7299_s19 = smov [#allocation4]  }
  0x15   : > { %p7423_p10 = pnand %p4893_p7, %p325_p8  ;;  %s353_s17 = sshll.u32 %s7298_s16, 4  ;;  %s354_s17 = int_to_ptr.vmem [resolvable:$true] %s353_s17 }
  0x16   : > { %s337_s20 = sshll.u32 %s7299_s19, 4  ;;  %s7300_s26 = smov [#allocation9]   ;;  %s338_s20 = int_to_ptr.vmem [resolvable:$true] %s337_s20 }
  0x17   : > { %p7012_p11 = pneg %p7423_p10  ;;  %s369_s28 = sshll.u32 %s7300_s26, 4  ;;  %s370_s28 = int_to_ptr.vmem [resolvable:$true] %s369_s28 }
  0x18   : > { %s7101_s29 = scalar_lea.vmem %s354_s17, 18432  ;;  %p7109_p3 = scmp.lt.s32.totalorder %s354_s17, %s354_s17 }
  0x19   : > { %p7431_p12 = pnand %p7032_p9, %p7012_p11  ;;  %p7102_p0 = scmp.ne.s32.totalorder %s354_s17, %s7101_s29 }
  0x1a   : > { %p7110_p4 = scmp.lt.s32.totalorder %s7101_s29, %s7101_s29 }
  0x1b   : > { %p7092_p13 = pneg %p7431_p12 }
  0x1c   : > { %p7111_p7 = por %p7110_p4, %p7109_p3 }
  0x1d   : > { %p7104_p1 = pnand %p7102_p0, %p7092_p13 }
  0x1f   : > { %p7105_p2 = pneg %p7104_p1 }
  0x21   : > { %p7112_p8 = pnand %p7111_p7, %p7105_p2 }
  0x23   : > { %7115 = shalt.err (!%p7112_p8)
}
  0x24   : > { %s7301_s16 = smov 128   ;;  %s7302_s19 = smov 8  }
  0x25   : > { %7018 = dma.hbm_to_vmem [thread:$0]  (!%p7431_p12), %s8481_s3, 18432, %s354_s17, [#allocation8], %s7301_s16, %s7301_s16, %s7302_s19  }
  0x26   : > { %s7127_s23 = scalar_lea.vmem %s338_s20, 18432  ;;  %p7135_p2 = scmp.lt.s32.totalorder %s338_s20, %s338_s20 }
  0x27   : > { %p7128_p11 = scmp.ne.s32.totalorder %s338_s20, %s7127_s23  ;;  %p7136_p3 = scmp.lt.s32.totalorder %s7127_s23, %s7127_s23 }
  0x29   : > { %p7130_p0 = pnand %p7128_p11, %p7092_p13  ;;  %p7137_p4 = por %p7136_p3, %p7135_p2 }
  0x2b   : > { %p7131_p1 = pneg %p7130_p0 }
  0x2d   : > { %p7138_p7 = pnand %p7137_p4, %p7131_p1 }
  0x2f   : > { %7141 = shalt.err (!%p7138_p7)
}
  0x30   : > { %7015 = dma.hbm_to_vmem [thread:$0]  (!%p7431_p12), %s8479_s1, 18432, %s338_s20, [#allocation5], %s7301_s16, %s7301_s16, %s7302_s19  }
  0x31   : > { %s7153_s30 = scalar_lea.vmem %s370_s28, 18432  ;;  %p7161_p2 = scmp.lt.s32.totalorder %s370_s28, %s370_s28 }
  0x32   : > { %p7154_p8 = scmp.ne.s32.totalorder %s370_s28, %s7153_s30  ;;  %p7162_p1 = scmp.lt.s32.totalorder %s7153_s30, %s7153_s30 }
  0x34   : > { %p7156_p11 = pnand %p7154_p8, %p7092_p13  ;;  %p7163_p3 = por %p7162_p1, %p7161_p2 }
  0x36   : > { %p7157_p0 = pneg %p7156_p11 }
  0x38   : > { %p7164_p4 = pnand %p7163_p3, %p7157_p0 }
  0x3a   : > { %7167 = shalt.err (!%p7164_p4)
}
  0x3b   : > { %7021 = dma.hbm_to_vmem [thread:$0]  (!%p7431_p12), %s8483_s5, 18432, %s370_s28, [#allocation8], %s7301_s16, %s7301_s16, %s7302_s19  }
  0x3c   : > { %s7303_s17 = smov [#allocation10]  }
  0x3d   : > { %s385_s20 = sshll.u32 %s7303_s17, 4  ;;  %s386_s20 = int_to_ptr.vmem [resolvable:$true] %s385_s20 }
  0x3e   : > { %s7179_s26 = scalar_lea.vmem %s386_s20, 18432  ;;  %p7187_p0 = scmp.lt.s32.totalorder %s386_s20, %s386_s20 }
  0x3f   : > { %p7180_p7 = scmp.ne.s32.totalorder %s386_s20, %s7179_s26  ;;  %p7188_p2 = scmp.lt.s32.totalorder %s7179_s26, %s7179_s26 }
  0x41   : > { %p7182_p8 = pnand %p7180_p7, %p7092_p13  ;;  %p7189_p1 = por %p7188_p2, %p7187_p0 }
  0x43   : > { %p7183_p11 = pneg %p7182_p8 }
  0x45   : > { %p7190_p3 = pnand %p7189_p1, %p7183_p11 }
  0x47   : > { %7193 = shalt.err (!%p7190_p3)
}
  0x48   : > { %7024 = dma.hbm_to_vmem [thread:$0]  (!%p7431_p12), %s8485_s7, 18432, %s386_s20, [#allocation11], %s7301_s16, %s7301_s16, %s7302_s19  }
  0x49   : > { %418 = sbr.rel (%p7423_p10) target bundleno = 1796 (0x704), region = 64 }
  0x4e   : > { %7263 = dma.done.wait (%p7032_p9), [#allocation5], 18432  }
  0x4f   : > { %7265 = vsyncadd (%p7032_p9), [#allocation5], 4294948864 }
  0x50   : > { %7267 = dma.done.wait (%p7032_p9), [#allocation8], 36864  }
  0x51   : > { %7269 = vsyncadd (%p7032_p9), [#allocation8], 4294930432 }
  0x52   : > { %7271 = dma.done.wait (%p7032_p9), [#allocation11], 18432  }
  0x53   : > { %7273 = vsyncadd (%p7032_p9), [#allocation11], 4294948864  ;;  %v7304_v0 = vmov 0.0   ;;  %p475_p9 = scmp.lt.s32.totalorder %s7395_s25, 1  ;;  %v649_v1 = vld [vmem:[#allocation4 + $0xf8] sm:$0xff]  ;;  %v648_v3 = vld [vmem:[#allocation4 + $0xf0] sm:$0xff] }
  0x54   : > { %2929 = vst [vmem:[#allocation2 + $0x138] sm:$0xff] %v7304_v0  ;;  %480 = vst [vmem:[#allocation2] sm:$0xff] %v7304_v0  ;;  %v616_v2 = vld [vmem:[#allocation4 + $0x78] sm:$0xff]  ;;  %5616 = vmatprep.subr.mxu0 %v649_v1  ;;  %v615_v4 = vld [vmem:[#allocation4 + $0x70] sm:$0xff]  ;;  %s8507_s0 = sld [smem:[#allocation34_spill]]  ;;  %vm553_vm0 = vcmask 31744  }
  0x55   : > { %481 = vst [vmem:[#allocation2 + $0x8] sm:$0xff] %v7304_v0  ;;  %482 = vst [vmem:[#allocation2 + $0x10] sm:$0xff] %v7304_v0  ;;  %5660 = vmatprep.subr.mxu1 %v616_v2  ;;  %s476_s15 = scalar_select %p475_p9, %s7395_s25, 1  ;;  %5617 = vmatpush3.msra.mxu0 %v649_v1  ;;  %v647_v5 = vld [vmem:[#allocation4 + $0xe8] sm:$0xff]  ;;  %v646_v7 = vld [vmem:[#allocation4 + $0xe0] sm:$0xff]  ;;  %vm1925_vm1 = vcmask 1043456  }
  0x56   : > { %483 = vst [vmem:[#allocation2 + $0x18] sm:$0xff] %v7304_v0  ;;  %484 = vst [vmem:[#allocation2 + $0x20] sm:$0xff] %v7304_v0  ;;  %5661 = vmatpush3.msra.mxu1 %v616_v2  ;;  %v614_v6 = vld [vmem:[#allocation4 + $0x68] sm:$0xff]  ;;  %5618 = vmatprep.subr.mxu0 %v648_v3  ;;  %v613_v8 = vld [vmem:[#allocation4 + $0x60] sm:$0xff]  ;;  %vm7305_vm2 = vmmov 0   ;;  %vm2941_vm3 = vcmask 1041408  }
  0x57   : > { %485 = vst [vmem:[#allocation2 + $0x28] sm:$0xff] %v7304_v0  ;;  %486 = vst [vmem:[#allocation2 + $0x30] sm:$0xff] %v7304_v0  ;;  %5662 = vmatprep.subr.mxu1 %v615_v4  ;;  %5619 = vmatpush3.msra.mxu0 %v648_v3  ;;  %s4914_s18 = sshll.u32 %s476_s15, 8  ;;  %v645_v9 = vld [vmem:[#allocation4 + $0xd8] sm:$0xff]  ;;  %v644_v11 = vld [vmem:[#allocation4 + $0xd0] sm:$0xff]  ;;  %s8397_s26 = sand.u32 1, %s7288_s22  }
  0x58   : > { %487 = vst [vmem:[#allocation2 + $0x38] sm:$0xff] %v7304_v0  ;;  %488 = vst [vmem:[#allocation2 + $0x40] sm:$0xff] %v7304_v0  ;;  %5663 = vmatpush3.msra.mxu1 %v615_v4  ;;  %5620 = vmatprep.subr.mxu0 %v647_v5  ;;  %v612_v10 = vld [vmem:[#allocation4 + $0x58] sm:$0xff]  ;;  %v611_v12 = vld [vmem:[#allocation4 + $0x50] sm:$0xff]  ;;  %s8498_s15 = sshll.u32 %s7395_s25, 4  ;;  %vm4731_vm4 = vcmask 24576  }
  0x59   : > { %489 = vst [vmem:[#allocation2 + $0x48] sm:$0xff] %v7304_v0  ;;  %490 = vst [vmem:[#allocation2 + $0x50] sm:$0xff] %v7304_v0  ;;  %5664 = vmatprep.subr.mxu1 %v614_v6  ;;  %5621 = vmatpush3.msra.mxu0 %v647_v5  ;;  %v643_v13 = vld [vmem:[#allocation4 + $0xc8] sm:$0xff]  ;;  %v642_v17 = vld [vmem:[#allocation4 + $0xc0] sm:$0xff]  ;;  %s8409_s23 = scalar_lea.hbm %s8489_s11, %s8498_s15  ;;  %s7306_s27 = smov 124  }
  0x5a   : > { %491 = vst [vmem:[#allocation2 + $0x58] sm:$0xff] %v7304_v0  ;;  %492 = vst [vmem:[#allocation2 + $0x60] sm:$0xff] %v7304_v0  ;;  %5665 = vmatpush3.msra.mxu1 %v614_v6  ;;  %5622 = vmatprep.subr.mxu0 %v646_v7  ;;  %s7552_s30 = scalar_lea.vmem %s8507_s0, %s4914_s18  ;;  %v610_v14 = vld [vmem:[#allocation4 + $0x48] sm:$0xff]  ;;  %v609_v18 = vld [vmem:[#allocation4 + $0x40] sm:$0xff]  ;;  %s468_s18 = scalar_lea.vmem [#allocation12], %s8397_s26 }
  0x5b   : > { %493 = vst [vmem:[#allocation2 + $0x68] sm:$0xff] %v7304_v0  ;;  %494 = vst [vmem:[#allocation2 + $0x70] sm:$0xff] %v7304_v0  ;;  %5666 = vmatprep.subr.mxu1 %v613_v8  ;;  %5623 = vmatpush3.msra.mxu0 %v646_v7  ;;  %v523_v15 = vld [vmem:[%s7552_s30 + $0x10] sm:$0xff]  ;;  %v524_v16 = vld [vmem:[%s7552_s30 + $0x18] sm:$0xff]  ;;  %s4755_s16 = sshll.u32 %s468_s18, 4  ;;  %s4739_s17 = scalar_lea.sflag [#allocation6], %s8397_s26  ;;  %s8411_s16 = int_to_ptr.vmem [resolvable:$true] %s4755_s16 }
  0x5c   : > { %495 = vst [vmem:[#allocation2 + $0x78] sm:$0xff] %v7304_v0  ;;  %496 = vst [vmem:[#allocation2 + $0x80] sm:$0xff] %v7304_v0  ;;  %5667 = vmatpush3.msra.mxu1 %v613_v8  ;;  %5624 = vmatprep.subr.mxu0 %v645_v9  ;;  %v641_v19 = vld [vmem:[#allocation4 + $0xb8] sm:$0xff]  ;;  %v640_v21 = vld [vmem:[#allocation4 + $0xb0] sm:$0xff]  ;;  %s7194_s20 = scalar_lea.vmem %s8411_s16, 16  ;;  %s7307_s28 = smov [#allocation12]  }
  0x5d   : > { %497 = vst [vmem:[#allocation2 + $0x88] sm:$0xff] %v7304_v0  ;;  %498 = vst [vmem:[#allocation2 + $0x90] sm:$0xff] %v7304_v0  ;;  %5668 = vmatprep.subr.mxu1 %v612_v10  ;;  %5625 = vmatpush3.msra.mxu0 %v645_v9  ;;  %v608_v20 = vld [vmem:[#allocation4 + $0x38] sm:$0xff]  ;;  %v607_v22 = vld [vmem:[#allocation4 + $0x30] sm:$0xff]  ;;  %p7195_p10 = scmp.ne.s32.totalorder %s8411_s16, %s7194_s20  ;;  %s7198_s29 = sshll.u32 %s7307_s28, 4  ;;  %s7199_s29 = int_to_ptr.vmem [resolvable:$false] %s7198_s29 }
  0x5e   : > { %499 = vst [vmem:[#allocation2 + $0x98] sm:$0xff] %v7304_v0  ;;  %500 = vst [vmem:[#allocation2 + $0xa0] sm:$0xff] %v7304_v0  ;;  %5669 = vmatpush3.msra.mxu1 %v612_v10  ;;  %5626 = vmatprep.subr.mxu0 %v644_v11  ;;  %v527_v23 = vld [vmem:[%s7552_s30 + $0x30] sm:$0xff]  ;;  %v639_v24 = vld [vmem:[#allocation4 + $0xa8] sm:$0xff]  ;;  %s7200_s19 = scalar_lea.vmem %s7199_s29, 32  ;;  %p7201_p4 = scmp.lt.s32.totalorder %s8411_s16, %s7199_s29 }
  0x5f   : > { %501 = vst [vmem:[#allocation2 + $0xa8] sm:$0xff] %v7304_v0  ;;  %502 = vst [vmem:[#allocation2 + $0xb0] sm:$0xff] %v7304_v0  ;;  %5670 = vmatprep.subr.mxu1 %v611_v12  ;;  %5627 = vmatpush3.msra.mxu0 %v644_v11  ;;  %v606_v25 = vld [vmem:[#allocation4 + $0x28] sm:$0xff]  ;;  %v531_v27 = vld [vmem:[%s7552_s30 + $0x50] sm:$0xff]  ;;  %p7196_p12 = pnand %p7195_p10, %p7412_p5  ;;  %p7202_p7 = scmp.lt.s32.totalorder %s7200_s19, %s7194_s20 }
  0x60   : > { %503 = vst [vmem:[#allocation2 + $0xb8] sm:$0xff] %v7304_v0  ;;  %504 = vst [vmem:[#allocation2 + $0xc0] sm:$0xff] %v7304_v0  ;;  %5671 = vmatpush3.msra.mxu1 %v611_v12  ;;  %5628 = vmatprep.subr.mxu0 %v643_v13  ;;  %v528_v26 = vld [vmem:[%s7552_s30 + $0x38] sm:$0xff]  ;;  %v638_v28 = vld [vmem:[#allocation4 + $0xa0] sm:$0xff] }
  0x61   : > { %505 = vst [vmem:[#allocation2 + $0xc8] sm:$0xff] %v7304_v0  ;;  %506 = vst [vmem:[#allocation2 + $0xd0] sm:$0xff] %v7304_v0  ;;  %5672 = vmatprep.subr.mxu1 %v610_v14  ;;  %5629 = vmatpush3.msra.mxu0 %v643_v13  ;;  %v605_v29 = vld [vmem:[#allocation4 + $0x20] sm:$0xff]  ;;  %v532_v30 = vld [vmem:[%s7552_s30 + $0x58] sm:$0xff]  ;;  %p7197_p13 = pneg %p7196_p12  ;;  %p7203_p8 = por %p7202_p7, %p7201_p4 }
  0x62   : > { %507 = vst [vmem:[#allocation2 + $0xd8] sm:$0xff] %v7304_v0  ;;  %508 = vst [vmem:[#allocation2 + $0xe0] sm:$0xff] %v7304_v0  ;;  %5673 = vmatpush3.msra.mxu1 %v610_v14  ;;  %5630 = vmatprep.subr.mxu0 %v642_v17  ;;  %v637_v31 = vld [vmem:[#allocation4 + $0x98] sm:$0xff]  ;;  %v535_v32 = vld [vmem:[%s7552_s30 + $0x70] sm:$0xff] }
  0x63   : > { %509 = vst [vmem:[#allocation2 + $0xe8] sm:$0xff] %v7304_v0  ;;  %510 = vst [vmem:[#allocation2 + $0xf0] sm:$0xff] %v7304_v0  ;;  %5674 = vmatprep.subr.mxu1 %v609_v18  ;;  %5631 = vmatpush3.msra.mxu0 %v642_v17  ;;  %v536_v33 = vld [vmem:[%s7552_s30 + $0x78] sm:$0xff]  ;;  %v604_v34 = vld [vmem:[#allocation4 + $0x18] sm:$0xff]  ;;  %p7204_p11 = pnand %p7203_p8, %p7197_p13 }
  0x64   : > { %511 = vst [vmem:[#allocation2 + $0xf8] sm:$0xff] %v7304_v0  ;;  %512 = vst [vmem:[#allocation2 + $0x100] sm:$0xff] %v7304_v0  ;;  %5675 = vmatpush3.msra.mxu1 %v609_v18  ;;  %5632 = vmatprep.subr.mxu0 %v641_v19  ;;  %v539_v35 = vld [vmem:[%s7552_s30 + $0x90] sm:$0xff]  ;;  %v540_v36 = vld [vmem:[%s7552_s30 + $0x98] sm:$0xff] }
  0x65   : > { %513 = vst [vmem:[#allocation2 + $0x108] sm:$0xff] %v7304_v0  ;;  %514 = vst [vmem:[#allocation2 + $0x110] sm:$0xff] %v7304_v0  ;;  %5676 = vmatprep.subr.mxu1 %v608_v20  ;;  %5633 = vmatpush3.msra.mxu0 %v641_v19  ;;  %v543_v37 = vld [vmem:[%s7552_s30 + $0xb0] sm:$0xff]  ;;  %v636_v38 = vld [vmem:[#allocation4 + $0x90] sm:$0xff] }
  0x66   : > { %515 = vst [vmem:[#allocation2 + $0x118] sm:$0xff] %v7304_v0  ;;  %516 = vst [vmem:[#allocation2 + $0x120] sm:$0xff] %v7304_v0  ;;  %5677 = vmatpush3.msra.mxu1 %v608_v20  ;;  %5634 = vmatprep.subr.mxu0 %v640_v21  ;;  %v603_v39 = vld [vmem:[#allocation4 + $0x10] sm:$0xff]  ;;  %v544_v40 = vld [vmem:[%s7552_s30 + $0xb8] sm:$0xff] }
  0x67   : > { %517 = vst [vmem:[#allocation2 + $0x128] sm:$0xff] %v7304_v0  ;;  %518 = vst [vmem:[#allocation2 + $0x130] sm:$0xff] %v7304_v0  ;;  %5678 = vmatprep.subr.mxu1 %v607_v22  ;;  %5635 = vmatpush3.msra.mxu0 %v640_v21  ;;  %v635_v41 = vld [vmem:[#allocation4 + $0x88] sm:$0xff]  ;;  %v547_v42 = vld [vmem:[%s7552_s30 + $0xd0] sm:$0xff] }
  0x68   : > { %1863 = vst [vmem:[#allocation3] sm:$0xff] %v7304_v0  ;;  %1864 = vst [vmem:[#allocation3 + $0x8] sm:$0xff] %v7304_v0  ;;  %5679 = vmatpush3.msra.mxu1 %v607_v22  ;;  %5636 = vmatprep.subr.mxu0 %v639_v24  ;;  %v548_v43 = vld [vmem:[%s7552_s30 + $0xd8] sm:$0xff]  ;;  %v634_v45 = vld [vmem:[#allocation4 + $0x80] sm:$0xff] }
  0x69   : > { %1865 = vst [vmem:[#allocation3 + $0x10] sm:$0xff] %v7304_v0  ;;  %1866 = vst [vmem:[#allocation3 + $0x18] sm:$0xff] %v7304_v0  ;;  %5680 = vmatprep.subr.mxu1 %v606_v25  ;;  %5637 = vmatpush3.msra.mxu0 %v639_v24  ;;  %v602_v44 = vld [vmem:[#allocation4 + $0x8] sm:$0xff]  ;;  %v601_v46 = vld [vmem:[#allocation4] sm:$0xff] }
  0x6a   : > { %1867 = vst [vmem:[#allocation3 + $0x20] sm:$0xff] %v7304_v0  ;;  %1868 = vst [vmem:[#allocation3 + $0x28] sm:$0xff] %v7304_v0  ;;  %5681 = vmatpush3.msra.mxu1 %v606_v25  ;;  %5638 = vmatprep.subr.mxu0 %v638_v28  ;;  %v618_v47 = vld [vmem:[#allocation2 + $0x1] ss:$2 sm:$0xff]  ;;  %v586_v48 = vld [vmem:[#allocation2] ss:$2 sm:$0xff] }
  0x6b   : > { %1869 = vst [vmem:[#allocation3 + $0x30] sm:$0xff] %v7304_v0  ;;  %1870 = vst [vmem:[#allocation3 + $0x38] sm:$0xff] %v7304_v0  ;;  %5682 = vmatprep.subr.mxu1 %v605_v29  ;;  %5639 = vmatpush3.msra.mxu0 %v638_v28  ;;  %v7582_v49 = vld [vmem:[#allocation2 + $0x2] ss:$2 sm:$0xff]  ;;  %v890_v4 = vld [vmem:[#allocation4 + $0x168] sm:$0xff] }
  0x6c   : > { %1871 = vst [vmem:[#allocation3 + $0x40] sm:$0xff] %v7304_v0  ;;  %1872 = vst [vmem:[#allocation3 + $0x48] sm:$0xff] %v7304_v0  ;;  %5683 = vmatpush3.msra.mxu1 %v605_v29  ;;  %5640 = vmatprep.subr.mxu0 %v637_v31  ;;  %v892_v53 = vld [vmem:[#allocation4 + $0x178] sm:$0xff]  ;;  %v521_v54 = vld [vmem:[%s7552_s30] sm:$0xff] }
  0x6d   : > { %1873 = vst [vmem:[#allocation3 + $0x50] sm:$0xff] %v7304_v0  ;;  %1874 = vst [vmem:[#allocation3 + $0x58] sm:$0xff] %v7304_v0  ;;  %5684 = vmatprep.subr.mxu1 %v604_v34  ;;  %5641 = vmatpush3.msra.mxu0 %v637_v31  ;;  %v522_v55 = vld [vmem:[%s7552_s30 + $0x8] sm:$0xff]  ;;  %v525_v56 = vld [vmem:[%s7552_s30 + $0x20] sm:$0xff] }
  0x6e   : > { %556 = vst.msk [vmem:[#allocation2 + $0x25] sm:$0xff] %vm553_vm0, %v523_v15  ;;  %557 = vst.msk [vmem:[#allocation2 + $0x2d] sm:$0xff] %vm553_vm0, %v524_v16  ;;  %5685 = vmatpush3.msra.mxu1 %v604_v34  ;;  %5642 = vmatprep.subr.mxu0 %v636_v38  ;;  %v891_v57 = vld [vmem:[#allocation4 + $0x170] sm:$0xff]  ;;  %v1038_v58 = vld [vmem:[#allocation4 + $0x1f8] sm:$0xff] }
  0x6f   : > { %560 = vst.msk [vmem:[#allocation2 + $0x49] sm:$0xff] %vm553_vm0, %v527_v23  ;;  %561 = vst.msk [vmem:[#allocation2 + $0x51] sm:$0xff] %vm553_vm0, %v528_v26  ;;  %5686 = vmatprep.subr.mxu1 %v603_v39  ;;  %5643 = vmatpush3.msra.mxu0 %v636_v38  ;;  %v1037_v59 = vld [vmem:[#allocation4 + $0x1f0] sm:$0xff]  ;;  %v526_v60 = vld [vmem:[%s7552_s30 + $0x28] sm:$0xff] }
  0x70   : > { %564 = vst.msk [vmem:[#allocation2 + $0x6d] sm:$0xff] %vm553_vm0, %v531_v27  ;;  %565 = vst.msk [vmem:[#allocation2 + $0x75] sm:$0xff] %vm553_vm0, %v532_v30  ;;  %5687 = vmatpush3.msra.mxu1 %v603_v39  ;;  %5644 = vmatprep.subr.mxu0 %v635_v41  ;;  %v1036_v5 = vld [vmem:[#allocation4 + $0x1e8] sm:$0xff]  ;;  %v529_v6 = vld [vmem:[%s7552_s30 + $0x40] sm:$0xff] }
  0x71   : > { %568 = vst.msk [vmem:[#allocation2 + $0x91] sm:$0xff] %vm553_vm0, %v535_v32  ;;  %569 = vst.msk [vmem:[#allocation2 + $0x99] sm:$0xff] %vm553_vm0, %v536_v33  ;;  %5688 = vmatprep.subr.mxu1 %v602_v44  ;;  %5645 = vmatpush3.msra.mxu0 %v635_v41  ;;  %v889_v7 = vld [vmem:[#allocation4 + $0x160] sm:$0xff]  ;;  %v530_v9 = vld [vmem:[%s7552_s30 + $0x48] sm:$0xff] }
  0x72   : > { %572 = vst.msk [vmem:[#allocation2 + $0xb5] sm:$0xff] %vm553_vm0, %v539_v35  ;;  %573 = vst.msk [vmem:[#allocation2 + $0xbd] sm:$0xff] %vm553_vm0, %v540_v36  ;;  %5689 = vmatpush3.msra.mxu1 %v602_v44  ;;  %5646 = vmatprep.subr.mxu0 %v634_v45  ;;  %v1035_v8 = vld [vmem:[#allocation4 + $0x1e0] sm:$0xff]  ;;  %v533_v10 = vld [vmem:[%s7552_s30 + $0x60] sm:$0xff] }
  0x73   : > { %576 = vst.msk [vmem:[#allocation2 + $0xd9] sm:$0xff] %vm553_vm0, %v543_v37  ;;  %577 = vst.msk [vmem:[#allocation2 + $0xe1] sm:$0xff] %vm553_vm0, %v544_v40  ;;  %5690 = vmatprep.subr.mxu1 %v601_v46  ;;  %5647 = vmatpush3.msra.mxu0 %v634_v45  ;;  %v534_v11 = vld [vmem:[%s7552_s30 + $0x68] sm:$0xff]  ;;  %v537_v20 = vld [vmem:[%s7552_s30 + $0x80] sm:$0xff] }
  0x74   : > { %580 = vst.msk [vmem:[#allocation2 + $0xfd] sm:$0xff] %vm553_vm0, %v547_v42  ;;  %581 = vst.msk [vmem:[#allocation2 + $0x105] sm:$0xff] %vm553_vm0, %v548_v43  ;;  %5648 = vmatprep.mubr.f32.mxu0 %v618_v47  ;;  %5691 = vmatpush3.msra.mxu1 %v601_v46  ;;  %v888_v15 = vld [vmem:[#allocation4 + $0x158] sm:$0xff]  ;;  %v887_v22 = vld [vmem:[#allocation4 + $0x150] sm:$0xff] }
  0x75   : > { %v7584_v50 = vld [vmem:[#allocation2 + $0x25] ss:$2 sm:$0xff]  ;;  %v7586_v51 = vld [vmem:[#allocation2 + $0x24] ss:$2 sm:$0xff]  ;;  %2890 = vst [vmem:[#allocation2] sm:$0xff] %v7304_v0  ;;  %2891 = vst [vmem:[#allocation2 + $0x8] sm:$0xff] %v7304_v0  ;;  %5692 = vmatprep.mubr.f32.mxu1 %v586_v48  ;;  %5704 = vmatprep.subr.mxu0 %v892_v53 }
  0x76   : > { %v7590_v52 = vld [vmem:[#allocation2 + $0x26] ss:$2 sm:$0xff]  ;;  %554 = vst.msk [vmem:[#allocation2 + $0x13] sm:$0xff] %vm553_vm0, %v521_v54  ;;  %555 = vst.msk [vmem:[#allocation2 + $0x1b] sm:$0xff] %vm553_vm0, %v522_v55  ;;  %v7600_v61 = vld [vmem:[#allocation2 + $0x49] ss:$2 sm:$0xff]  ;;  %5649 = vmatmul.mubr.f32.vlgmr.msra.gmra.mxu0 %v7584_v50  ;;  %5693 = vmatmul.mubr.f32.vlgmr.msra.gmra.mxu1 %v7586_v51 }
  0x77   : > { %2895 = vst [vmem:[#allocation2 + $0x28] sm:$0xff] %v7304_v0  ;;  %558 = vst.msk [vmem:[#allocation2 + $0x37] sm:$0xff] %vm553_vm0, %v525_v56  ;;  %v7602_v62 = vld [vmem:[#allocation2 + $0x48] ss:$2 sm:$0xff]  ;;  %v7604_v63 = vld [vmem:[#allocation2 + $0x6d] ss:$2 sm:$0xff]  ;;  %5748 = vmatprep.subr.mxu1 %v1038_v58  ;;  %5705 = vmatpush3.msra.mxu0 %v892_v53 }
  0x78   : > { %559 = vst.msk [vmem:[#allocation2 + $0x3f] sm:$0xff] %vm553_vm0, %v526_v60  ;;  %v7609_v1 = vld [vmem:[#allocation2 + $0x6c] ss:$2 sm:$0xff]  ;;  %5749 = vmatpush3.msra.mxu1 %v1038_v58  ;;  %562 = vst.msk [vmem:[#allocation2 + $0x5b] sm:$0xff] %vm553_vm0, %v529_v6  ;;  %5706 = vmatprep.subr.mxu0 %v891_v57  ;;  %v7623_v12 = vld [vmem:[#allocation2 + $0x91] ss:$2 sm:$0xff] }
  0x79   : > { %v7611_v2 = vld [vmem:[#allocation2 + $0x4a] ss:$2 sm:$0xff]  ;;  %5750 = vmatprep.subr.mxu1 %v1037_v59  ;;  %563 = vst.msk [vmem:[#allocation2 + $0x63] sm:$0xff] %vm553_vm0, %v530_v9  ;;  %566 = vst.msk [vmem:[#allocation2 + $0x7f] sm:$0xff] %vm553_vm0, %v533_v10  ;;  %5707 = vmatpush3.msra.mxu0 %v891_v57  ;;  %v7632_v16 = vld [vmem:[#allocation2 + $0xb5] ss:$2 sm:$0xff] }
  0x7a   : > { %v7613_v3 = vld [vmem:[#allocation2 + $0x6e] ss:$2 sm:$0xff]  ;;  %2899 = vst [vmem:[#allocation2 + $0x48] sm:$0xff] %v7304_v0  ;;  %2900 = vst [vmem:[#allocation2 + $0x50] sm:$0xff] %v7304_v0  ;;  %5751 = vmatpush3.msra.mxu1 %v1037_v59  ;;  %5708 = vmatprep.subr.mxu0 %v890_v4  ;;  %v1033_v23 = vld [vmem:[#allocation4 + $0x1d0] sm:$0xff] }
  0x7b   : > { %2904 = vst [vmem:[#allocation2 + $0x70] sm:$0xff] %v7304_v0  ;;  %v7625_v13 = vld [vmem:[#allocation2 + $0x90] ss:$2 sm:$0xff]  ;;  %567 = vst.msk [vmem:[#allocation2 + $0x87] sm:$0xff] %vm553_vm0, %v534_v11  ;;  %5752 = vmatprep.subr.mxu1 %v1036_v5  ;;  %v1034_v19 = vld [vmem:[#allocation4 + $0x1d8] sm:$0xff]  ;;  %5709 = vmatpush3.msra.mxu0 %v890_v4 }
  0x7c   : > { %v7630_v14 = vld [vmem:[#allocation2 + $0x92] ss:$2 sm:$0xff]  ;;  %v538_v21 = vld [vmem:[%s7552_s30 + $0x88] sm:$0xff]  ;;  %5753 = vmatpush3.msra.mxu1 %v1036_v5  ;;  %570 = vst.msk [vmem:[#allocation2 + $0xa3] sm:$0xff] %vm553_vm0, %v537_v20  ;;  %5710 = vmatprep.subr.mxu0 %v889_v7  ;;  %v7647_v26 = vld [vmem:[#allocation2 + $0xd9] ss:$2 sm:$0xff] }
  0x7d   : > { %v7634_v17 = vld [vmem:[#allocation2 + $0xb4] ss:$2 sm:$0xff]  ;;  %2908 = vst [vmem:[#allocation2 + $0x90] sm:$0xff] %v7304_v0  ;;  %2909 = vst [vmem:[#allocation2 + $0x98] sm:$0xff] %v7304_v0  ;;  %v542_v25 = vld [vmem:[%s7552_s30 + $0xa8] sm:$0xff]  ;;  %5754 = vmatprep.subr.mxu1 %v1035_v8  ;;  %5711 = vmatpush3.msra.mxu0 %v889_v7 }
  0x7e   : > { %v7638_v18 = vld [vmem:[#allocation2 + $0xb6] ss:$2 sm:$0xff]  ;;  %571 = vst.msk [vmem:[#allocation2 + $0xab] sm:$0xff] %vm553_vm0, %v538_v21  ;;  %575 = vst.msk [vmem:[#allocation2 + $0xcf] sm:$0xff] %vm553_vm0, %v542_v25  ;;  %5755 = vmatpush3.msra.mxu1 %v1035_v8  ;;  %v7655_v29 = vld [vmem:[#allocation2 + $0xfd] ss:$2 sm:$0xff]  ;;  %5712 = vmatprep.subr.mxu0 %v888_v15 }
  0x7f   : > { %2913 = vst [vmem:[#allocation2 + $0xb8] sm:$0xff] %v7304_v0  ;;  %v541_v24 = vld [vmem:[%s7552_s30 + $0xa0] sm:$0xff]  ;;  %5756 = vmatprep.subr.mxu1 %v1034_v19  ;;  %v546_v33 = vld [vmem:[%s7552_s30 + $0xc8] sm:$0xff]  ;;  %5713 = vmatpush3.msra.mxu0 %v888_v15  ;;  %v886_v35 = vld [vmem:[#allocation4 + $0x148] sm:$0xff] }
  0x80   : > { %v7649_v27 = vld [vmem:[#allocation2 + $0xd8] ss:$2 sm:$0xff]  ;;  %574 = vst.msk [vmem:[#allocation2 + $0xc7] sm:$0xff] %vm553_vm0, %v541_v24  ;;  %5757 = vmatpush3.msra.mxu1 %v1034_v19  ;;  %579 = vst.msk [vmem:[#allocation2 + $0xf3] sm:$0xff] %vm553_vm0, %v546_v33  ;;  %v550_v37 = vld [vmem:[%s7552_s30 + $0xe8] sm:$0xff]  ;;  %5714 = vmatprep.subr.mxu0 %v887_v22 }
  0x81   : > { %v7653_v28 = vld [vmem:[#allocation2 + $0xda] ss:$2 sm:$0xff]  ;;  %5758 = vmatprep.subr.mxu1 %v1033_v23  ;;  %583 = vst.msk [vmem:[#allocation2 + $0x117] sm:$0xff] %vm553_vm0, %v550_v37  ;;  %5715 = vmatpush3.msra.mxu0 %v887_v22  ;;  %v885_v38 = vld [vmem:[#allocation4 + $0x140] sm:$0xff]  ;;  %v7700_v60 = vld [vmem:[#allocation2 + $0x5b] ss:$2 sm:$0xff] }
  0x82   : > { %v7657_v30 = vld [vmem:[#allocation2 + $0xfc] ss:$2 sm:$0xff]  ;;  %2917 = vst [vmem:[#allocation2 + $0xd8] sm:$0xff] %v7304_v0  ;;  %2918 = vst [vmem:[#allocation2 + $0xe0] sm:$0xff] %v7304_v0  ;;  %5759 = vmatpush3.msra.mxu1 %v1033_v23  ;;  %v1031_v39 = vld [vmem:[#allocation4 + $0x1c0] sm:$0xff]  ;;  %5716 = vmatprep.subr.mxu0 %v886_v35 }
  0x83   : > { %v7661_v31 = vld [vmem:[#allocation2 + $0xfe] ss:$2 sm:$0xff]  ;;  %5717 = vmatpush3.msra.mxu0 %v886_v35  ;;  %5651 = vmatprep.mubr.f32.mxu0 %v7600_v61  ;;  %v7676_v46 = vld [vmem:[#allocation2 + $0x37] ss:$2 sm:$0xff] }
  0x84   : > { %2922 = vst [vmem:[#allocation2 + $0x100] sm:$0xff] %v7304_v0  ;;  %v545_v32 = vld [vmem:[%s7552_s30 + $0xc0] sm:$0xff]  ;;  %v1032_v36 = vld [vmem:[#allocation4 + $0x1c8] sm:$0xff]  ;;  %v884_v40 = vld [vmem:[#allocation4 + $0x138] sm:$0xff]  ;;  %5718 = vmatprep.subr.mxu0 %v885_v38  ;;  %5695 = vmatprep.mubr.f32.mxu1 %v7602_v62 }
  0x85   : > { %v549_v34 = vld [vmem:[%s7552_s30 + $0xe0] sm:$0xff]  ;;  %578 = vst.msk [vmem:[#allocation2 + $0xeb] sm:$0xff] %vm553_vm0, %v545_v32  ;;  %5760 = vmatprep.subr.mxu1 %v1032_v36  ;;  %5719 = vmatpush3.msra.mxu0 %v885_v38  ;;  %v1030_v42 = vld [vmem:[#allocation4 + $0x1b8] sm:$0xff]  ;;  %v882_v43 = vld [vmem:[#allocation4 + $0x128] sm:$0xff] }
  0x86   : > { %582 = vst.msk [vmem:[#allocation2 + $0x10f] sm:$0xff] %vm553_vm0, %v549_v34  ;;  %5761 = vmatpush3.msra.mxu1 %v1032_v36  ;;  %v883_v41 = vld [vmem:[#allocation4 + $0x130] sm:$0xff]  ;;  %5720 = vmatprep.subr.mxu0 %v884_v40  ;;  %v881_v54 = vld [vmem:[#allocation4 + $0x120] sm:$0xff]  ;;  %v1028_v55 = vld [vmem:[#allocation4 + $0x1a8] sm:$0xff] }
  0x87   : > { %5762 = vmatprep.subr.mxu1 %v1031_v39  ;;  %5721 = vmatpush3.msra.mxu0 %v884_v40  ;;  %v1029_v44 = vld [vmem:[#allocation4 + $0x1b0] sm:$0xff]  ;;  %v880_v6 = vld [vmem:[#allocation4 + $0x118] sm:$0xff]  ;;  %v1027_v7 = vld [vmem:[#allocation4 + $0x1a0] sm:$0xff] }
  0x88   : > { %5763 = vmatpush3.msra.mxu1 %v1031_v39  ;;  %v7674_v45 = vld [vmem:[#allocation2 + $0x36] ss:$2 sm:$0xff]  ;;  %5722 = vmatprep.subr.mxu0 %v883_v41  ;;  %v7680_v48 = vld [vmem:[#allocation2 + $0x13] ss:$2 sm:$0xff]  ;;  %v7716_v9 = vld [vmem:[#allocation2 + $0xc6] ss:$2 sm:$0xff] }
  0x89   : > { %5764 = vmatprep.subr.mxu1 %v1030_v42  ;;  %v7678_v47 = vld [vmem:[#allocation2 + $0x12] ss:$2 sm:$0xff]  ;;  %2896 = vst [vmem:[#allocation2 + $0x30] sm:$0xff] %v7304_v0  ;;  %5652 = vmatmul.mubr.f32.gmra.mxu0 %v7604_v63  ;;  %v7698_v59 = vld [vmem:[#allocation2 + $0x7f] ss:$2 sm:$0xff] }
  0x8a   : > { %v7683_v53 = vld [vmem:[#allocation2 + $0x14] ss:$2 sm:$0xff]  ;;  %5696 = vmatmul.mubr.f32.gmra.mxu1 %v7609_v1  ;;  %5723 = vmatpush3.msra.mxu0 %v883_v41  ;;  %v7718_v10 = vld [vmem:[#allocation2 + $0xc7] ss:$2 sm:$0xff]  ;;  %v7723_v15 = vld [vmem:[#allocation2 + $0xa4] ss:$2 sm:$0xff] }
  0x8b   : > { %2892 = vst [vmem:[#allocation2 + $0x10] sm:$0xff] %v7304_v0  ;;  %2893 = vst [vmem:[#allocation2 + $0x18] sm:$0xff] %v7304_v0  ;;  %v7690_v56 = vld [vmem:[#allocation2 + $0x38] ss:$2 sm:$0xff]  ;;  %5765 = vmatpush3.msra.mxu1 %v1030_v42  ;;  %5724 = vmatprep.subr.mxu0 %v882_v43  ;;  %v7720_v11 = vld [vmem:[#allocation2 + $0xa3] ss:$2 sm:$0xff] }
  0x8c   : > { %2894 = vst [vmem:[#allocation2 + $0x20] sm:$0xff] %v7304_v0  ;;  %v7692_v57 = vld [vmem:[#allocation2 + $0x5a] ss:$2 sm:$0xff]  ;;  %2897 = vst [vmem:[#allocation2 + $0x38] sm:$0xff] %v7304_v0  ;;  %5766 = vmatprep.subr.mxu1 %v1029_v44  ;;  %5725 = vmatpush3.msra.mxu0 %v882_v43  ;;  %v7738_v22 = vld [vmem:[#allocation2 + $0xea] ss:$2 sm:$0xff] }
  0x8d   : > { %v7694_v58 = vld [vmem:[#allocation2 + $0x7e] ss:$2 sm:$0xff]  ;;  %2898 = vst [vmem:[#allocation2 + $0x40] sm:$0xff] %v7304_v0  ;;  %5767 = vmatpush3.msra.mxu1 %v1029_v44  ;;  %5654 = vmatprep.mubr.f32.mxu0 %v7623_v12  ;;  %2914 = vst [vmem:[#allocation2 + $0xc0] sm:$0xff] %v7304_v0  ;;  %v7729_v20 = vld [vmem:[#allocation2 + $0x10e] ss:$2 sm:$0xff] }
  0x8e   : > { %2905 = vst [vmem:[#allocation2 + $0x78] sm:$0xff] %v7304_v0  ;;  %v7703_v4 = vld [vmem:[#allocation2 + $0x5c] ss:$2 sm:$0xff]  ;;  %5698 = vmatprep.mubr.f32.mxu1 %v7625_v13  ;;  %5726 = vmatprep.subr.mxu0 %v881_v54  ;;  %v7736_v21 = vld [vmem:[#allocation2 + $0x10f] ss:$2 sm:$0xff] }
  0x8f   : > { %v7705_v5 = vld [vmem:[#allocation2 + $0x80] ss:$2 sm:$0xff]  ;;  %2901 = vst [vmem:[#allocation2 + $0x58] sm:$0xff] %v7304_v0  ;;  %2902 = vst [vmem:[#allocation2 + $0x60] sm:$0xff] %v7304_v0  ;;  %5768 = vmatprep.subr.mxu1 %v1028_v55  ;;  %5655 = vmatmul.mubr.f32.gmra.mxu0 %v7632_v16  ;;  %v7740_v23 = vld [vmem:[#allocation2 + $0xeb] ss:$2 sm:$0xff] }
  0x90   : > { %2903 = vst [vmem:[#allocation2 + $0x68] sm:$0xff] %v7304_v0  ;;  %2906 = vst [vmem:[#allocation2 + $0x80] sm:$0xff] %v7304_v0  ;;  %v7714_v8 = vld [vmem:[#allocation2 + $0xa2] ss:$2 sm:$0xff]  ;;  %5699 = vmatmul.mubr.f32.gmra.mxu1 %v7634_v17  ;;  %5727 = vmatpush3.msra.mxu0 %v881_v54  ;;  %v878_v34 = vld [vmem:[#allocation4 + $0x108] sm:$0xff] }
  0x91   : > { %2907 = vst [vmem:[#allocation2 + $0x88] sm:$0xff] %v7304_v0  ;;  %v7725_v19 = vld [vmem:[#allocation2 + $0xc8] ss:$2 sm:$0xff]  ;;  %2910 = vst [vmem:[#allocation2 + $0xa0] sm:$0xff] %v7304_v0  ;;  %5769 = vmatpush3.msra.mxu1 %v1028_v55  ;;  %5728 = vmatprep.subr.mxu0 %v880_v6  ;;  %v879_v25 = vld [vmem:[#allocation4 + $0x110] sm:$0xff] }
  0x92   : > { %2911 = vst [vmem:[#allocation2 + $0xa8] sm:$0xff] %v7304_v0  ;;  %2912 = vst [vmem:[#allocation2 + $0xb0] sm:$0xff] %v7304_v0  ;;  %v7743_v24 = vld [vmem:[#allocation2 + $0xec] ss:$2 sm:$0xff]  ;;  %5770 = vmatprep.subr.mxu1 %v1027_v7  ;;  %5729 = vmatpush3.msra.mxu0 %v880_v6  ;;  %v1025_v35 = vld [vmem:[#allocation4 + $0x190] sm:$0xff] }
  0x93   : > { %2915 = vst [vmem:[#allocation2 + $0xc8] sm:$0xff] %v7304_v0  ;;  %2916 = vst [vmem:[#allocation2 + $0xd0] sm:$0xff] %v7304_v0  ;;  %v1026_v32 = vld [vmem:[#allocation4 + $0x198] sm:$0xff]  ;;  %v7748_v33 = vld [vmem:[#allocation2 + $0x110] ss:$2 sm:$0xff]  ;;  %5771 = vmatpush3.msra.mxu1 %v1027_v7  ;;  %5657 = vmatprep.mubr.f32.mxu0 %v7647_v26 }
  0x94   : > { %2923 = vst [vmem:[#allocation2 + $0x108] sm:$0xff] %v7304_v0  ;;  %2919 = vst [vmem:[#allocation2 + $0xe8] sm:$0xff] %v7304_v0  ;;  %5701 = vmatprep.mubr.f32.mxu1 %v7649_v27  ;;  %5730 = vmatprep.subr.mxu0 %v879_v25  ;;  %v877_v36 = vld [vmem:[#allocation4 + $0x100] sm:$0xff]  ;;  %v1024_v37 = vld [vmem:[#allocation4 + $0x188] sm:$0xff] }
  0x95   : > { %2920 = vst [vmem:[#allocation2 + $0xf0] sm:$0xff] %v7304_v0  ;;  %2921 = vst [vmem:[#allocation2 + $0xf8] sm:$0xff] %v7304_v0  ;;  %5772 = vmatprep.subr.mxu1 %v1026_v32  ;;  %5658 = vmatmul.mubr.f32.gmra.mxu0 %v7655_v29  ;;  %v1023_v38 = vld [vmem:[#allocation4 + $0x180] sm:$0xff]  ;;  %v1184_v39 = vld [vmem:[#allocation4 + $0x278] sm:$0xff] }
  0x96   : > { %2924 = vst [vmem:[#allocation2 + $0x110] sm:$0xff] %v7304_v0  ;;  %2925 = vst [vmem:[#allocation2 + $0x118] sm:$0xff] %v7304_v0  ;;  %5702 = vmatmul.mubr.f32.gmra.mxu1 %v7657_v30  ;;  %5731 = vmatpush3.msra.mxu0 %v879_v25  ;;  %v551_v40 = vld [vmem:[%s7552_s30 + $0xf0] sm:$0xff]  ;;  %v552_v41 = vld [vmem:[%s7552_s30 + $0xf8] sm:$0xff] }
  0x97   : > { %5773 = vmatpush3.msra.mxu1 %v1026_v32  ;;  %5732 = vmatprep.subr.mxu0 %v878_v34  ;;  %584 = vst.msk [vmem:[#allocation2 + $0x121] sm:$0xff] %vm553_vm0, %v551_v40  ;;  %585 = vst.msk [vmem:[#allocation2 + $0x129] sm:$0xff] %vm553_vm0, %v552_v41  ;;  %v1183_v42 = vld [vmem:[#allocation4 + $0x270] sm:$0xff]  ;;  %v1330_v43 = vld [vmem:[#allocation4 + $0x2f8] sm:$0xff] }
  0x98   : > { %5774 = vmatprep.subr.mxu1 %v1025_v35  ;;  %5733 = vmatpush3.msra.mxu0 %v878_v34  ;;  %v1329_v44 = vld [vmem:[#allocation4 + $0x2f0] sm:$0xff]  ;;  %v1181_v54 = vld [vmem:[#allocation4 + $0x260] sm:$0xff]  ;;  %v1328_v55 = vld [vmem:[#allocation4 + $0x2e8] sm:$0xff] }
  0x99   : > { %5775 = vmatpush3.msra.mxu1 %v1025_v35  ;;  %5734 = vmatprep.subr.mxu0 %v877_v36  ;;  %v1327_v25 = vld [vmem:[#allocation4 + $0x2e0] sm:$0xff]  ;;  %v1326_v32 = vld [vmem:[#allocation4 + $0x2d8] sm:$0xff]  ;;  %v1324_v35 = vld [vmem:[#allocation4 + $0x2c8] sm:$0xff] }
  0x9a   : > { %5776 = vmatprep.subr.mxu1 %v1024_v37  ;;  %5735 = vmatpush3.msra.mxu0 %v877_v36  ;;  %v1177_v34 = vld [vmem:[#allocation4 + $0x240] sm:$0xff]  ;;  %v1175_v36 = vld [vmem:[#allocation4 + $0x230] sm:$0xff]  ;;  %v1320_v40 = vld [vmem:[#allocation4 + $0x2a8] sm:$0xff] }
  0x9b   : > { %5736 = vmatprep.mubr.f32.mxu0 %v7582_v49  ;;  %5777 = vmatpush3.msra.mxu1 %v1024_v37  ;;  %v1182_v49 = vld [vmem:[#allocation4 + $0x268] sm:$0xff]  ;;  %v1322_v37 = vld [vmem:[#allocation4 + $0x2b8] sm:$0xff]  ;;  %v1319_v41 = vld [vmem:[#allocation4 + $0x2a0] sm:$0xff] }
  0x9c   : > { %5737 = vmatmul.mubr.f32.vlgmr.msra.gmra.mxu0 %v7590_v52  ;;  %5778 = vmatprep.subr.mxu1 %v1023_v38 }
  0x9d   : > { %5792 = vmatprep.subr.mxu0 %v1184_v39  ;;  %5779 = vmatpush3.msra.mxu1 %v1023_v38  ;;  %v1174_v38 = vld [vmem:[#allocation4 + $0x228] sm:$0xff] }
  0x9e   : > { %5780 = vmatprep.mubr.f32.mxu1 %v7678_v47  ;;  %5793 = vmatpush3.msra.mxu0 %v1184_v39  ;;  %v7766_v6 = vld [vmem:[#allocation2 + $0x120] ss:$2 sm:$0xff]  ;;  %v7768_v47 = vld [vmem:[#allocation2 + $0x121] ss:$2 sm:$0xff] }
  0x9f   : > { %5781 = vmatmul.mubr.f32.vlgmr.msra.gmra.mxu1 %v7674_v45  ;;  %5794 = vmatprep.subr.mxu0 %v1183_v42  ;;  %v7770_v7 = vld [vmem:[#allocation2 + $0x122] ss:$2 sm:$0xff] }
  0xa0   : > { %5836 = vmatprep.subr.mxu1 %v1330_v43  ;;  %5739 = vmatprep.mubr.f32.mxu0 %v7611_v2  ;;  %2926 = vst [vmem:[#allocation2 + $0x120] sm:$0xff] %v7304_v0  ;;  %2927 = vst [vmem:[#allocation2 + $0x128] sm:$0xff] %v7304_v0  ;;  %v1180_v45 = vld [vmem:[#allocation4 + $0x258] sm:$0xff]  ;;  %v1321_v39 = vld [vmem:[#allocation4 + $0x2b0] sm:$0xff] }
  0xa1   : > { %5795 = vmatpush3.msra.mxu0 %v1183_v42  ;;  %5837 = vmatpush3.msra.mxu1 %v1330_v43  ;;  %2928 = vst [vmem:[#allocation2 + $0x130] sm:$0xff] %v7304_v0  ;;  %v1178_v0 = vld [vmem:[#allocation4 + $0x248] sm:$0xff]  ;;  %v1171_v42 = vld [vmem:[#allocation4 + $0x210] sm:$0xff]  ;;  %v1318_v43 = vld [vmem:[#allocation4 + $0x298] sm:$0xff] }
  0xa2   : > { %5740 = vmatmul.mubr.f32.gmra.mxu0 %v7613_v3  ;;  %5796 = vmatprep.subr.mxu0 %v1182_v49 }
  0xa3   : > { %5838 = vmatprep.subr.mxu1 %v1329_v44  ;;  %5783 = vmatprep.mubr.f32.mxu1 %v7692_v57  ;;  %v1179_v57 = vld [vmem:[#allocation4 + $0x250] sm:$0xff] }
  0xa4   : > { %5797 = vmatpush3.msra.mxu0 %v1182_v49  ;;  %5839 = vmatpush3.msra.mxu1 %v1329_v44  ;;  %v1170_v49 = vld [vmem:[#allocation4 + $0x208] sm:$0xff]  ;;  %v1317_v44 = vld [vmem:[#allocation4 + $0x290] sm:$0xff] }
  0xa5   : > { %5798 = vmatprep.subr.mxu0 %v1181_v54  ;;  %5784 = vmatmul.mubr.f32.gmra.mxu1 %v7694_v58  ;;  %v1325_v58 = vld [vmem:[#allocation4 + $0x2d0] sm:$0xff] }
  0xa6   : > { %5840 = vmatprep.subr.mxu1 %v1328_v55  ;;  %5742 = vmatprep.mubr.f32.mxu0 %v7630_v14 }
  0xa7   : > { %5799 = vmatpush3.msra.mxu0 %v1181_v54  ;;  %5841 = vmatpush3.msra.mxu1 %v1328_v55  ;;  %v1169_v54 = vld [vmem:[#allocation4 + $0x200] sm:$0xff]  ;;  %v1316_v55 = vld [vmem:[#allocation4 + $0x288] sm:$0xff] }
  0xa8   : > { %5743 = vmatmul.mubr.f32.gmra.mxu0 %v7638_v18  ;;  %5800 = vmatprep.subr.mxu0 %v1180_v45 }
  0xa9   : > { %5842 = vmatprep.subr.mxu1 %v1327_v25  ;;  %5786 = vmatprep.mubr.f32.mxu1 %v7714_v8  ;;  %v1176_v8 = vld [vmem:[#allocation4 + $0x238] sm:$0xff] }
  0xaa   : > { %5801 = vmatpush3.msra.mxu0 %v1180_v45  ;;  %5843 = vmatpush3.msra.mxu1 %v1327_v25  ;;  %v1315_v45 = vld [vmem:[#allocation4 + $0x280] sm:$0xff]  ;;  %v1462_v25 = vld [vmem:[#allocation4 + $0x378] sm:$0xff] }
  0xab   : > { %5802 = vmatprep.subr.mxu0 %v1179_v57  ;;  %5787 = vmatmul.mubr.f32.gmra.mxu1 %v7716_v9  ;;  %v1323_v9 = vld [vmem:[#allocation4 + $0x2c0] sm:$0xff] }
  0xac   : > { %5844 = vmatprep.subr.mxu1 %v1326_v32  ;;  %5745 = vmatprep.mubr.f32.mxu0 %v7653_v28 }
  0xad   : > { %5803 = vmatpush3.msra.mxu0 %v1179_v57  ;;  %5845 = vmatpush3.msra.mxu1 %v1326_v32  ;;  %v1461_v57 = vld [vmem:[#allocation4 + $0x370] sm:$0xff]  ;;  %v1594_v32 = vld [vmem:[#allocation4 + $0x3f8] sm:$0xff] }
  0xae   : > { %5746 = vmatmul.mubr.f32.gmra.mxu0 %v7661_v31  ;;  %5804 = vmatprep.subr.mxu0 %v1178_v0 }
  0xaf   : > { %5846 = vmatprep.subr.mxu1 %v1325_v58  ;;  %5789 = vmatprep.mubr.f32.mxu1 %v7738_v22  ;;  %v1173_v22 = vld [vmem:[#allocation4 + $0x220] sm:$0xff] }
  0xb0   : > { %5805 = vmatpush3.msra.mxu0 %v1178_v0  ;;  %5847 = vmatpush3.msra.mxu1 %v1325_v58  ;;  %v1460_v0 = vld [vmem:[#allocation4 + $0x368] sm:$0xff]  ;;  %v1593_v58 = vld [vmem:[#allocation4 + $0x3f0] sm:$0xff] }
  0xb1   : > { %5806 = vmatprep.subr.mxu0 %v1177_v34  ;;  %5790 = vmatmul.mubr.f32.gmra.mxu1 %v7729_v20  ;;  %v1172_v20 = vld [vmem:[#allocation4 + $0x218] sm:$0xff] }
  0xb2   : > { %5848 = vmatprep.subr.mxu1 %v1324_v35  ;;  %5807 = vmatpush3.msra.mxu0 %v1177_v34  ;;  %v1586_v34 = vld [vmem:[#allocation4 + $0x3b8] sm:$0xff] }
  0xb3   : > { %5849 = vmatpush3.msra.mxu1 %v1324_v35  ;;  %5808 = vmatprep.subr.mxu0 %v1176_v8  ;;  %v1585_v35 = vld [vmem:[#allocation4 + $0x3b0] sm:$0xff] }
  0xb4   : > { %5850 = vmatprep.subr.mxu1 %v1323_v9  ;;  %5809 = vmatpush3.msra.mxu0 %v1176_v8  ;;  %v1584_v8 = vld [vmem:[#allocation4 + $0x3a8] sm:$0xff] }
  0xb5   : > { %5851 = vmatpush3.msra.mxu1 %v1323_v9  ;;  %5810 = vmatprep.subr.mxu0 %v1175_v36  ;;  %v1583_v9 = vld [vmem:[#allocation4 + $0x3a0] sm:$0xff] }
  0xb6   : > { %5852 = vmatprep.subr.mxu1 %v1322_v37  ;;  %5811 = vmatpush3.msra.mxu0 %v1175_v36  ;;  %v1449_v36 = vld [vmem:[#allocation4 + $0x310] sm:$0xff] }
  0xb7   : > { %5853 = vmatpush3.msra.mxu1 %v1322_v37  ;;  %5812 = vmatprep.subr.mxu0 %v1174_v38  ;;  %v1582_v37 = vld [vmem:[#allocation4 + $0x398] sm:$0xff] }
  0xb8   : > { %5854 = vmatprep.subr.mxu1 %v1321_v39  ;;  %5813 = vmatpush3.msra.mxu0 %v1174_v38  ;;  %v1448_v38 = vld [vmem:[#allocation4 + $0x308] sm:$0xff] }
  0xb9   : > { %5855 = vmatpush3.msra.mxu1 %v1321_v39  ;;  %5814 = vmatprep.subr.mxu0 %v1173_v22  ;;  %v1581_v39 = vld [vmem:[#allocation4 + $0x390] sm:$0xff] }
  0xba   : > { %5856 = vmatprep.subr.mxu1 %v1320_v40  ;;  %5815 = vmatpush3.msra.mxu0 %v1173_v22  ;;  %v1447_v22 = vld [vmem:[#allocation4 + $0x300] sm:$0xff] }
  0xbb   : > { %5857 = vmatpush3.msra.mxu1 %v1320_v40  ;;  %5816 = vmatprep.subr.mxu0 %v1172_v20  ;;  %v1580_v40 = vld [vmem:[#allocation4 + $0x388] sm:$0xff] }
  0xbc   : > { %5858 = vmatprep.subr.mxu1 %v1319_v41  ;;  %5817 = vmatpush3.msra.mxu0 %v1172_v20  ;;  %v1579_v20 = vld [vmem:[#allocation4 + $0x380] sm:$0xff] }
  0xbd   : > { %5859 = vmatpush3.msra.mxu1 %v1319_v41  ;;  %5818 = vmatprep.subr.mxu0 %v1171_v42  ;;  %v1726_v41 = vld [vmem:[#allocation4 + $0x478] sm:$0xff] }
  0xbe   : > { %5860 = vmatprep.subr.mxu1 %v1318_v43  ;;  %5819 = vmatpush3.msra.mxu0 %v1171_v42  ;;  %v1725_v42 = vld [vmem:[#allocation4 + $0x470] sm:$0xff] }
  0xbf   : > { %5861 = vmatpush3.msra.mxu1 %v1318_v43  ;;  %5820 = vmatprep.subr.mxu0 %v1170_v49  ;;  %v1724_v43 = vld [vmem:[#allocation4 + $0x468] sm:$0xff] }
  0xc0   : > { %5862 = vmatprep.subr.mxu1 %v1317_v44  ;;  %5821 = vmatpush3.msra.mxu0 %v1170_v49  ;;  %v1938_v49 = vld [vmem:[#allocation7 + $0x50] sm:$0xff] }
  0xc1   : > { %5863 = vmatpush3.msra.mxu1 %v1317_v44  ;;  %5822 = vmatprep.subr.mxu0 %v1169_v54  ;;  %v1970_v44 = vld [vmem:[#allocation7 + $0xc8] sm:$0xff] }
  0xc2   : > { %5864 = vmatprep.subr.mxu1 %v1316_v55  ;;  %5823 = vmatpush3.msra.mxu0 %v1169_v54  ;;  %v1937_v54 = vld [vmem:[#allocation7 + $0x48] sm:$0xff] }
  0xc3   : > { %5824 = vmatprep.mubr.f32.mxu0 %v7680_v48  ;;  %5865 = vmatpush3.msra.mxu1 %v1316_v55  ;;  %v1592_v48 = vld [vmem:[#allocation4 + $0x3e8] sm:$0xff]  ;;  %v1969_v55 = vld [vmem:[#allocation7 + $0xc0] sm:$0xff] }
  0xc4   : > { %5825 = vmatmul.mubr.f32.vlgmr.msra.gmra.mxu0 %v7676_v46  ;;  %5866 = vmatprep.subr.mxu1 %v1315_v45  ;;  %v1459_v46 = vld [vmem:[#allocation4 + $0x360] sm:$0xff] }
  0xc5   : > { %5880 = vmatprep.subr.mxu0 %v1462_v25  ;;  %5867 = vmatpush3.msra.mxu1 %v1315_v45  ;;  %v1936_v45 = vld [vmem:[#allocation7 + $0x40] sm:$0xff] }
  0xc6   : > { %5868 = vmatprep.mubr.f32.mxu1 %v7683_v53  ;;  %5881 = vmatpush3.msra.mxu0 %v1462_v25  ;;  %v1458_v53 = vld [vmem:[#allocation4 + $0x358] sm:$0xff] }
  0xc7   : > { %5869 = vmatmul.mubr.f32.vlgmr.msra.gmra.mxu1 %v7690_v56  ;;  %5882 = vmatprep.subr.mxu0 %v1461_v57  ;;  %v1591_v56 = vld [vmem:[#allocation4 + $0x3e0] sm:$0xff] }
  0xc8   : > { %5924 = vmatprep.subr.mxu1 %v1594_v32  ;;  %5827 = vmatprep.mubr.f32.mxu0 %v7700_v60  ;;  %v1590_v60 = vld [vmem:[#allocation4 + $0x3d8] sm:$0xff] }
  0xc9   : > { %5883 = vmatpush3.msra.mxu0 %v1461_v57  ;;  %5925 = vmatpush3.msra.mxu1 %v1594_v32  ;;  %v1968_v57 = vld [vmem:[#allocation7 + $0xb8] sm:$0xff] }
  0xca   : > { %5828 = vmatmul.mubr.f32.gmra.mxu0 %v7698_v59  ;;  %5884 = vmatprep.subr.mxu0 %v1460_v0  ;;  %v1457_v59 = vld [vmem:[#allocation4 + $0x350] sm:$0xff]  ;;  %v1935_v32 = vld [vmem:[#allocation7 + $0x38] sm:$0xff] }
  0xcb   : > { %5926 = vmatprep.subr.mxu1 %v1593_v58  ;;  %5871 = vmatprep.mubr.f32.mxu1 %v7703_v4  ;;  %v1456_v4 = vld [vmem:[#allocation4 + $0x348] sm:$0xff] }
  0xcc   : > { %5885 = vmatpush3.msra.mxu0 %v1460_v0  ;;  %5927 = vmatpush3.msra.mxu1 %v1593_v58  ;;  %v1967_v0 = vld [vmem:[#allocation7 + $0xb0] sm:$0xff] }
  0xcd   : > { %5886 = vmatprep.subr.mxu0 %v1459_v46  ;;  %5872 = vmatmul.mubr.f32.gmra.mxu1 %v7705_v5  ;;  %v1589_v5 = vld [vmem:[#allocation4 + $0x3d0] sm:$0xff] }
  0xce   : > { %5928 = vmatprep.subr.mxu1 %v1592_v48  ;;  %5830 = vmatprep.mubr.f32.mxu0 %v7720_v11  ;;  %v1588_v11 = vld [vmem:[#allocation4 + $0x3c8] sm:$0xff]  ;;  %v1934_v58 = vld [vmem:[#allocation7 + $0x30] sm:$0xff] }
  0xcf   : > { %5887 = vmatpush3.msra.mxu0 %v1459_v46  ;;  %5929 = vmatpush3.msra.mxu1 %v1592_v48  ;;  %v1966_v48 = vld [vmem:[#allocation7 + $0xa8] sm:$0xff] }
  0xd0   : > { %5831 = vmatmul.mubr.f32.gmra.mxu0 %v7718_v10  ;;  %5888 = vmatprep.subr.mxu0 %v1458_v53  ;;  %v1455_v10 = vld [vmem:[#allocation4 + $0x340] sm:$0xff] }
  0xd1   : > { %5930 = vmatprep.subr.mxu1 %v1591_v56  ;;  %5874 = vmatprep.mubr.f32.mxu1 %v7723_v15  ;;  %v1454_v15 = vld [vmem:[#allocation4 + $0x338] sm:$0xff] }
  0xd2   : > { %5889 = vmatpush3.msra.mxu0 %v1458_v53  ;;  %5931 = vmatpush3.msra.mxu1 %v1591_v56  ;;  %v1933_v53 = vld [vmem:[#allocation7 + $0x28] sm:$0xff] }
  0xd3   : > { %5890 = vmatprep.subr.mxu0 %v1457_v59  ;;  %5875 = vmatmul.mubr.f32.gmra.mxu1 %v7725_v19  ;;  %v1587_v19 = vld [vmem:[#allocation4 + $0x3c0] sm:$0xff] }
  0xd4   : > { %5932 = vmatprep.subr.mxu1 %v1590_v60  ;;  %5833 = vmatprep.mubr.f32.mxu0 %v7740_v23  ;;  %v1453_v23 = vld [vmem:[#allocation4 + $0x330] sm:$0xff] }
  0xd5   : > { %5891 = vmatpush3.msra.mxu0 %v1457_v59  ;;  %5933 = vmatpush3.msra.mxu1 %v1590_v60  ;;  %v1965_v59 = vld [vmem:[#allocation7 + $0xa0] sm:$0xff] }
  0xd6   : > { %5834 = vmatmul.mubr.f32.gmra.mxu0 %v7736_v21  ;;  %5892 = vmatprep.subr.mxu0 %v1456_v4  ;;  %v1452_v21 = vld [vmem:[#allocation4 + $0x328] sm:$0xff]  ;;  %v1932_v60 = vld [vmem:[#allocation7 + $0x20] sm:$0xff] }
  0xd7   : > { %5934 = vmatprep.subr.mxu1 %v1589_v5  ;;  %5877 = vmatprep.mubr.f32.mxu1 %v7743_v24  ;;  %v1451_v24 = vld [vmem:[#allocation4 + $0x320] sm:$0xff] }
  0xd8   : > { %5893 = vmatpush3.msra.mxu0 %v1456_v4  ;;  %5935 = vmatpush3.msra.mxu1 %v1589_v5  ;;  %v1964_v4 = vld [vmem:[#allocation7 + $0x98] sm:$0xff] }
  0xd9   : > { %5894 = vmatprep.subr.mxu0 %v1455_v10  ;;  %5878 = vmatmul.mubr.f32.gmra.mxu1 %v7748_v33  ;;  %v1450_v33 = vld [vmem:[#allocation4 + $0x318] sm:$0xff] }
  0xda   : > { %5936 = vmatprep.subr.mxu1 %v1588_v11  ;;  %5895 = vmatpush3.msra.mxu0 %v1455_v10  ;;  %v1931_v5 = vld [vmem:[#allocation7 + $0x18] sm:$0xff] }
  0xdb   : > { %5937 = vmatpush3.msra.mxu1 %v1588_v11  ;;  %5896 = vmatprep.subr.mxu0 %v1454_v15  ;;  %v7831_v10 = vld [vmem:[#allocation3 + $0x1] ss:$2 sm:$0xf]  ;;  %v7833_v11 = vld [vmem:[#allocation3] ss:$2 sm:$0xf] }
  0xdc   : > { %5938 = vmatprep.subr.mxu1 %v1587_v19  ;;  %5897 = vmatpush3.msra.mxu0 %v1454_v15  ;;  %8508 = vst [vmem:[#allocation23_spill] sm:$0xff] %v7831_v10  ;;  %8509 = vst [vmem:[#allocation24_spill] sm:$0xff] %v7833_v11  ;;  %v7835_v15 = vld [vmem:[#allocation3 + $0x2] ss:$2 sm:$0xf] }
  0xdd   : > { %5939 = vmatpush3.msra.mxu1 %v1587_v19  ;;  %5898 = vmatprep.subr.mxu0 %v1453_v23  ;;  %8510 = vst [vmem:[#allocation25_spill] sm:$0xff] %v7835_v15 }
  0xde   : > { %5940 = vmatprep.subr.mxu1 %v1586_v34  ;;  %5899 = vmatpush3.msra.mxu0 %v1453_v23  ;;  %v7839_v23 = vld [vmem:[#allocation2 + $0x138] sm:$0xff] }
  0xdf   : > { %5941 = vmatpush3.msra.mxu1 %v1586_v34  ;;  %5900 = vmatprep.subr.mxu0 %v1452_v21  ;;  %8511 = vst [vmem:[#allocation26_spill] sm:$0xff] %v7839_v23  ;;  %3794 = vst [vmem:[#allocation3] sm:$0xff] %v7839_v23  ;;  %v1963_v34 = vld [vmem:[#allocation7 + $0x90] sm:$0xff] }
  0xe0   : > { %5942 = vmatprep.subr.mxu1 %v1585_v35  ;;  %5901 = vmatpush3.msra.mxu0 %v1452_v21  ;;  %v1930_v21 = vld [vmem:[#allocation7 + $0x10] sm:$0xff] }
  0xe1   : > { %5943 = vmatpush3.msra.mxu1 %v1585_v35  ;;  %5902 = vmatprep.subr.mxu0 %v1451_v24  ;;  %v1962_v35 = vld [vmem:[#allocation7 + $0x88] sm:$0xff] }
  0xe2   : > { %5944 = vmatprep.subr.mxu1 %v1584_v8  ;;  %5903 = vmatpush3.msra.mxu0 %v1451_v24  ;;  %v1929_v24 = vld [vmem:[#allocation7 + $0x8] sm:$0xff] }
  0xe3   : > { %5945 = vmatpush3.msra.mxu1 %v1584_v8  ;;  %5904 = vmatprep.subr.mxu0 %v1450_v33  ;;  %v1961_v8 = vld [vmem:[#allocation7 + $0x80] sm:$0xff] }
  0xe4   : > { %5946 = vmatprep.subr.mxu1 %v1583_v9  ;;  %5905 = vmatpush3.msra.mxu0 %v1450_v33 }
  0xe5   : > { %5947 = vmatpush3.msra.mxu1 %v1583_v9  ;;  %5906 = vmatprep.subr.mxu0 %v1449_v36 }
  0xe6   : > { %5948 = vmatprep.subr.mxu1 %v1582_v37  ;;  %5907 = vmatpush3.msra.mxu0 %v1449_v36  ;;  %v1928_v36 = vld [vmem:[#allocation7] sm:$0xff] }
  0xe7   : > { %5949 = vmatpush3.msra.mxu1 %v1582_v37  ;;  %5908 = vmatprep.subr.mxu0 %v1448_v38  ;;  %v7844_v37 = vld [vmem:[#allocation7 + $0x178] sm:$0xff] }
  0xe8   : > { %5950 = vmatprep.subr.mxu1 %v1581_v39  ;;  %5909 = vmatpush3.msra.mxu0 %v1448_v38  ;;  %8512 = vst [vmem:[#allocation27_spill] sm:$0xff] %v7844_v37  ;;  %v7846_v38 = vld [vmem:[#allocation7 + $0x1f8] sm:$0xff] }
  0xe9   : > { %5951 = vmatpush3.msra.mxu1 %v1581_v39  ;;  %5910 = vmatprep.subr.mxu0 %v1447_v22  ;;  %8513 = vst [vmem:[#allocation28_spill] sm:$0xff] %v7846_v38 }
  0xea   : > { %5952 = vmatprep.subr.mxu1 %v1580_v40  ;;  %5911 = vmatpush3.msra.mxu0 %v1447_v22 }
  0xeb   : > { %5912 = vmatprep.mubr.f32.mxu0 %v7586_v51  ;;  %5953 = vmatpush3.msra.mxu1 %v1580_v40  ;;  %v1723_v51 = vld [vmem:[#allocation4 + $0x460] sm:$0xff] }
  0xec   : > { %5913 = vmatmul.mubr.f32.vlgmr.msra.gmra.mxu0 %v7602_v62  ;;  %5954 = vmatprep.subr.mxu1 %v1579_v20  ;;  %v1722_v62 = vld [vmem:[#allocation4 + $0x458] sm:$0xff] }
  0xed   : > { %5968 = vmatprep.subr.mxu0 %v1726_v41  ;;  %5955 = vmatpush3.msra.mxu1 %v1579_v20 }
  0xee   : > { %5956 = vmatprep.mubr.f32.mxu1 %v7584_v50  ;;  %5969 = vmatpush3.msra.mxu0 %v1726_v41  ;;  %v1721_v50 = vld [vmem:[#allocation4 + $0x450] sm:$0xff] }
  0xef   : > { %5957 = vmatmul.mubr.f32.vlgmr.msra.gmra.mxu1 %v7600_v61  ;;  %5970 = vmatprep.subr.mxu0 %v1725_v42  ;;  %v1720_v61 = vld [vmem:[#allocation4 + $0x448] sm:$0xff] }
  0xf0   : > { %5915 = vmatprep.mubr.f32.mxu0 %v7609_v1  ;;  %5971 = vmatpush3.msra.mxu0 %v1725_v42  ;;  %v1718_v1 = vld [vmem:[#allocation4 + $0x438] sm:$0xff] }
  0xf1   : > { %5959 = vmatprep.mubr.f32.mxu1 %v7604_v63  ;;  %5916 = vmatmul.mubr.f32.gmra.mxu0 %v7625_v13  ;;  %v1719_v63 = vld [vmem:[#allocation4 + $0x440] sm:$0xff]  ;;  %v1716_v13 = vld [vmem:[#allocation4 + $0x428] sm:$0xff] }
  0xf2   : > { %5972 = vmatprep.subr.mxu0 %v1724_v43  ;;  %5918 = vmatprep.mubr.f32.mxu0 %v7634_v17  ;;  %v1714_v17 = vld [vmem:[#allocation4 + $0x418] sm:$0xff] }
  0xf3   : > { %5973 = vmatpush3.msra.mxu0 %v1724_v43  ;;  %5960 = vmatmul.mubr.f32.gmra.mxu1 %v7623_v12  ;;  %v1717_v12 = vld [vmem:[#allocation4 + $0x430] sm:$0xff] }
  0xf4   : > { %5974 = vmatprep.subr.mxu0 %v1723_v51  ;;  %5962 = vmatprep.mubr.f32.mxu1 %v7632_v16  ;;  %v1715_v16 = vld [vmem:[#allocation4 + $0x420] sm:$0xff] }
  0xf5   : > { %5975 = vmatpush3.msra.mxu0 %v1723_v51 }
  0xf6   : > { %5919 = vmatmul.mubr.f32.gmra.mxu0 %v7649_v27  ;;  %5976 = vmatprep.subr.mxu0 %v1722_v62  ;;  %v1712_v27 = vld [vmem:[#allocation4 + $0x408] sm:$0xff] }
  0xf7   : > { %5977 = vmatpush3.msra.mxu0 %v1722_v62  ;;  %5963 = vmatmul.mubr.f32.gmra.mxu1 %v7647_v26  ;;  %v1713_v26 = vld [vmem:[#allocation4 + $0x410] sm:$0xff] }
  0xf8   : > { %5978 = vmatprep.subr.mxu0 %v1721_v50  ;;  %5921 = vmatprep.mubr.f32.mxu0 %v7657_v30  ;;  %v1943_v30 = vld [vmem:[#allocation7 + $0x78] sm:$0xff] }
  0xf9   : > { %5979 = vmatpush3.msra.mxu0 %v1721_v50  ;;  %5965 = vmatprep.mubr.f32.mxu1 %v7655_v29  ;;  %v1976_v29 = vld [vmem:[#allocation7 + $0xf8] sm:$0xff] }
  0xfa   : > { %5922 = vmatmul.mubr.f32.gmra.mxu0 %v7766_v6  ;;  %5980 = vmatprep.subr.mxu0 %v1720_v61  ;;  %v1975_v6 = vld [vmem:[#allocation7 + $0xf0] sm:$0xff] }
  0xfb   : > { %5981 = vmatpush3.msra.mxu0 %v1720_v61  ;;  %5966 = vmatmul.mubr.f32.gmra.mxu1 %v7768_v47  ;;  %v1942_v47 = vld [vmem:[#allocation7 + $0x70] sm:$0xff] }
  0xfc   : > { %5982 = vmatprep.subr.mxu0 %v1719_v63  ;;  %6000 = vmatprep.mubr.f32.mxu0 %v7590_v52  ;;  %v1711_v52 = vld [vmem:[#allocation4 + $0x400] sm:$0xff] }
  0xfd   : > { %5983 = vmatpush3.msra.mxu0 %v1719_v63  ;;  %6012 = vmatprep.subr.mxu1 %v1976_v29 }
  0xfe   : > { %5984 = vmatprep.subr.mxu0 %v1718_v1  ;;  %6013 = vmatpush3.msra.mxu1 %v1976_v29 }
  0xff   : > { %5985 = vmatpush3.msra.mxu0 %v1718_v1  ;;  %6014 = vmatprep.subr.mxu1 %v1975_v6 }
 0x100   : > { %5986 = vmatprep.subr.mxu0 %v1717_v12  ;;  %6015 = vmatpush3.msra.mxu1 %v1975_v6 }
 0x101   : > { %5987 = vmatpush3.msra.mxu0 %v1717_v12 }
 0x102   : > { %5988 = vmatprep.subr.mxu0 %v1716_v13 }
 0x103   : > { %5989 = vmatpush3.msra.mxu0 %v1716_v13 }
 0x104   : > { %5990 = vmatprep.subr.mxu0 %v1715_v16 }
 0x105   : > { %5991 = vmatpush3.msra.mxu0 %v1715_v16 }
 0x106   : > { %5992 = vmatprep.subr.mxu0 %v1714_v17 }
 0x107   : > { %5993 = vmatpush3.msra.mxu0 %v1714_v17 }
 0x108   : > { %5994 = vmatprep.subr.mxu0 %v1713_v26 }
 0x109   : > { %5995 = vmatpush3.msra.mxu0 %v1713_v26 }
 0x10a   : > { %5996 = vmatprep.subr.mxu0 %v1712_v27 }
 0x10b   : > { %5997 = vmatpush3.msra.mxu0 %v1712_v27 }
 0x10c   : > { %5998 = vmatprep.subr.mxu0 %v1711_v52 }
 0x10d   : > { %5999 = vmatpush3.msra.mxu0 %v1711_v52 }
 0x10e   : > { %6001 = vmatmul.mubr.f32.vlgmr.msra.gmra.mxu0 %v7611_v2  ;;  %6047 = vmatprep.subr.mxu0 %v1943_v30  ;;  %v1974_v2 = vld [vmem:[#allocation7 + $0xe8] sm:$0xff] }
 0x10f   : > { %6003 = vmatprep.mubr.f32.mxu0 %v7613_v3  ;;  %6048 = vmatpush3.msra.mxu0 %v1943_v30  ;;  %v1941_v3 = vld [vmem:[#allocation7 + $0x68] sm:$0xff] }
 0x110   : > { %6049 = vmatprep.subr.mxu0 %v1942_v47  ;;  %6016 = vmatprep.subr.mxu1 %v1974_v2 }
 0x111   : > { %6050 = vmatpush3.msra.mxu0 %v1942_v47  ;;  %6017 = vmatpush3.msra.mxu1 %v1974_v2 }
 0x112   : > { %6004 = vmatmul.mubr.f32.gmra.mxu0 %v7630_v14  ;;  %v1973_v14 = vld [vmem:[#allocation7 + $0xe0] sm:$0xff]  ;;  %6051 = vmatprep.subr.mxu0 %v1941_v3 }
 0x113   : > { %6006 = vmatprep.mubr.f32.mxu0 %v7638_v18  ;;  %v1940_v18 = vld [vmem:[#allocation7 + $0x60] sm:$0xff]  ;;  %6052 = vmatpush3.msra.mxu0 %v1941_v3 }
 0x114   : > { %6018 = vmatprep.subr.mxu1 %v1973_v14  ;;  %6053 = vmatprep.subr.mxu0 %v1940_v18 }
 0x115   : > { %6019 = vmatpush3.msra.mxu1 %v1973_v14  ;;  %6054 = vmatpush3.msra.mxu0 %v1940_v18 }
 0x116   : > { %6007 = vmatmul.mubr.f32.gmra.mxu0 %v7653_v28  ;;  %v1972_v28 = vld [vmem:[#allocation7 + $0xd8] sm:$0xff] }
 0x117   : > { %6009 = vmatprep.mubr.f32.mxu0 %v7661_v31  ;;  %v1939_v31 = vld [vmem:[#allocation7 + $0x58] sm:$0xff]  ;;  %6020 = vmatprep.subr.mxu1 %v1972_v28 }
 0x118   : > { %6055 = vmatprep.subr.mxu0 %v1939_v31  ;;  %6021 = vmatpush3.msra.mxu1 %v1972_v28 }
 0x119   : > { %6056 = vmatpush3.msra.mxu0 %v1939_v31 }
 0x11a   : > { %6010 = vmatmul.mubr.f32.gmra.mxu0 %v7770_v7  ;;  %v1971_v7 = vld [vmem:[#allocation7 + $0xd0] sm:$0xff]  ;;  %6057 = vmatprep.subr.mxu0 %v1938_v49 }
 0x11b   : > { %6022 = vmatprep.subr.mxu1 %v1971_v7  ;;  %6058 = vmatpush3.msra.mxu0 %v1938_v49 }
 0x11c   : > { %6023 = vmatpush3.msra.mxu1 %v1971_v7  ;;  %6059 = vmatprep.subr.mxu0 %v1937_v54 }
 0x11d   : > { %6024 = vmatprep.subr.mxu1 %v1970_v44  ;;  %6060 = vmatpush3.msra.mxu0 %v1937_v54 }
 0x11e   : > { %6025 = vmatpush3.msra.mxu1 %v1970_v44  ;;  %6061 = vmatprep.subr.mxu0 %v1936_v45 }
 0x11f   : > { %6026 = vmatprep.subr.mxu1 %v1969_v55  ;;  %6062 = vmatpush3.msra.mxu0 %v1936_v45 }
 0x120   : > { %6027 = vmatpush3.msra.mxu1 %v1969_v55  ;;  %6063 = vmatprep.subr.mxu0 %v1935_v32 }
 0x121   : > { %6028 = vmatprep.subr.mxu1 %v1968_v57  ;;  %6064 = vmatpush3.msra.mxu0 %v1935_v32 }
 0x122   : > { %6029 = vmatpush3.msra.mxu1 %v1968_v57  ;;  %6065 = vmatprep.subr.mxu0 %v1934_v58 }
 0x123   : > { %6030 = vmatprep.subr.mxu1 %v1967_v0  ;;  %6066 = vmatpush3.msra.mxu0 %v1934_v58 }
 0x124   : > { %6031 = vmatpush3.msra.mxu1 %v1967_v0  ;;  %6067 = vmatprep.subr.mxu0 %v1933_v53 }
 0x125   : > { %6032 = vmatprep.subr.mxu1 %v1966_v48  ;;  %6068 = vmatpush3.msra.mxu0 %v1933_v53 }
 0x126   : > { %6033 = vmatpush3.msra.mxu1 %v1966_v48  ;;  %6069 = vmatprep.subr.mxu0 %v1932_v60 }
 0x127   : > { %6034 = vmatprep.subr.mxu1 %v1965_v59  ;;  %6070 = vmatpush3.msra.mxu0 %v1932_v60 }
 0x128   : > { %6035 = vmatpush3.msra.mxu1 %v1965_v59  ;;  %6071 = vmatprep.subr.mxu0 %v1931_v5 }
 0x129   : > { %6036 = vmatprep.subr.mxu1 %v1964_v4  ;;  %6072 = vmatpush3.msra.mxu0 %v1931_v5 }
 0x12a   : > { %6037 = vmatpush3.msra.mxu1 %v1964_v4  ;;  %6073 = vmatprep.subr.mxu0 %v1930_v21 }
 0x12b   : > { %6038 = vmatprep.subr.mxu1 %v1963_v34  ;;  %6074 = vmatpush3.msra.mxu0 %v1930_v21 }
 0x12c   : > { %6039 = vmatpush3.msra.mxu1 %v1963_v34  ;;  %6075 = vmatprep.subr.mxu0 %v1929_v24 }
 0x12d   : > { %6040 = vmatprep.subr.mxu1 %v1962_v35  ;;  %6076 = vmatpush3.msra.mxu0 %v1929_v24 }
 0x12e   : > { %6041 = vmatpush3.msra.mxu1 %v1962_v35  ;;  %6077 = vmatprep.subr.mxu0 %v1928_v36 }
 0x12f   : > { %6042 = vmatprep.subr.mxu1 %v1961_v8  ;;  %6078 = vmatpush3.msra.mxu0 %v1928_v36 }
 0x130   : > { %6043 = vmatpush3.msra.mxu1 %v1961_v8  ;;  %6117 = vmatprep.subr.mxu0 %v7846_v38 }
 0x131   : > { %6082 = vmatprep.subr.mxu1 %v7844_v37 }
 0x136   : > { %v7825_v25 = vpop.f32.mrf.mxu0  ;;  %v5694_v33 = vpop.f32.mrf.mxu1 }
 0x137   : > { %v827_v5 = vadd.f32 %v5694_v33, %v7825_v25 }
 0x138   : > { %v7827_v46 = vpop.f32.mrf.mxu0  ;;  %v821_v39 = vpop.f32.mrf.mxu1 }
 0x139   : > { %v822_v35 = vadd.f32 %v821_v39, %v7827_v46 }
 0x149   : > { %v7829_v56 = vpop.f32.mrf.mxu0 }
 0x14a   : > { %v5697_v40 = vpop.f32.mrf.mxu1 }
 0x14b   : > { %v7837_v19 = vpop.f32.mrf.mxu0  ;;  %v837_v8 = vadd.f32 %v5697_v40, %v7829_v56 }
 0x14c   : > { %v831_v41 = vpop.f32.mrf.mxu1 }
 0x14d   : > { %v832_v37 = vadd.f32 %v831_v41, %v7837_v19 }
 0x14f   : > { %v7842_v9 = vpop.f32.mrf.mxu0 }
 0x150   : > { %v5700_v43 = vpop.f32.mrf.mxu1 }
 0x151   : > { %v736_v22 = vpop.f32.mrf.mxu0  ;;  %v847_v10 = vadd.f32 %v5700_v43, %v7842_v9 }
 0x152   : > { %v841_v62 = vpop.f32.mrf.mxu1 }
 0x153   : > { %v842_v25 = vadd.f32 %v841_v62, %v736_v22 }
 0x155   : > { %v7850_v20 = vpop.f32.mrf.mxu0 }
 0x156   : > { %v5703_v61 = vpop.f32.mrf.mxu1 }
 0x157   : > { %v7852_v42 = vpop.f32.mrf.mxu0  ;;  %v857_v56 = vadd.f32 %v5703_v61, %v7850_v20 }
 0x158   : > { %8514 = vst [vmem:[#allocation29_spill] sm:$0xff] %v7852_v42  ;;  %v851_v1 = vpop.f32.mrf.mxu1 }
 0x15c   : > { %v5738_v51 = vpop.f32.mrf.mxu0 }
 0x15d   : > { %v999_v24 = vadd.f32 %v5738_v51, %v827_v5 }
 0x15e   : > { %v959_v50 = vpop.f32.mrf.mxu0 }
 0x15f   : > { %v5782_v12 = vpop.f32.mrf.mxu1  ;;  %v998_v36 = vadd.f32 %v959_v50, %v822_v35  ;;  %v8519_v19 = vld [vmem:[#allocation29_spill] sm:$0xff] }
 0x160   : > { %v1145_v23 = vadd.f32 %v5782_v12, %v999_v24  ;;  %v852_v41 = vadd.f32 %v851_v1, %v8519_v19 }
 0x161   : > { %v1105_v16 = vpop.f32.mrf.mxu1 }
 0x162   : > { %v5741_v63 = vpop.f32.mrf.mxu0 }
 0x163   : > { %v1001_v11 = vadd.f32 %v5741_v63, %v837_v8 }
 0x164   : > { %v969_v13 = vpop.f32.mrf.mxu0 }
 0x165   : > { %v5785_v26 = vpop.f32.mrf.mxu1 }
 0x166   : > { %v1147_v46 = vadd.f32 %v5785_v26, %v1001_v11 }
 0x167   : > { %v1115_v52 = vpop.f32.mrf.mxu1 }
 0x168   : > { %v5744_v17 = vpop.f32.mrf.mxu0 }
 0x169   : > { %v1003_v33 = vadd.f32 %v5744_v17, %v847_v10 }
 0x16a   : > { %v979_v27 = vpop.f32.mrf.mxu0 }
 0x16b   : > { %v5788_v30 = vpop.f32.mrf.mxu1  ;;  %v1002_v40 = vadd.f32 %v979_v27, %v842_v25 }
 0x16c   : > { %v1149_v63 = vadd.f32 %v5788_v30, %v1003_v33 }
 0x16d   : > { %v1125_v2 = vpop.f32.mrf.mxu1 }
 0x16e   : > { %v5747_v29 = vpop.f32.mrf.mxu0  ;;  %v1148_v10 = vadd.f32 %v1125_v2, %v1002_v40  ;;  %v4906_v2 = vld [vmem:[%s8480_s2] ss:$0 sm:$0xff] }
 0x16f   : > { %v1005_v12 = vadd.f32 %v5747_v29, %v857_v56 }
 0x170   : > { %v989_v6 = vpop.f32.mrf.mxu0 }
 0x171   : > { %v5791_v14 = vpop.f32.mrf.mxu1  ;;  %v1004_v62 = vadd.f32 %v989_v6, %v852_v41 }
 0x172   : > { %v1151_v17 = vadd.f32 %v5791_v14, %v1005_v12 }
 0x173   : > { %v7854_v28 = vpop.f32.mrf.mxu1 }
 0x174   : > { %8515 = vst [vmem:[#allocation30_spill] sm:$0xff] %v7854_v28 }
 0x17b   : > { %v8520_v1 = vld [vmem:[#allocation30_spill] sm:$0xff] }
 0x17c   : > { %v1150_v30 = vadd.f32 %v8520_v1, %v1004_v62  ;;  %v8525_v1 = vld [vmem:[#allocation24_spill] sm:$0xff] }
 0x184   : > { %v5826_v47 = vpop.f32.mrf.mxu0 }
 0x186   : > { %v1251_v3 = vpop.f32.mrf.mxu0 }
 0x187   : > { %v5870_v31 = vpop.f32.mrf.mxu1 }
 0x189   : > { %v1397_v49 = vpop.f32.mrf.mxu1 }
 0x18a   : > { %v5829_v18 = vpop.f32.mrf.mxu0 }
 0x18b   : > { %v1293_v5 = vadd.f32 %v5829_v18, %v1147_v46 }
 0x18c   : > { %v1261_v7 = vpop.f32.mrf.mxu0 }
 0x18d   : > { %v5873_v54 = vpop.f32.mrf.mxu1 }
 0x18e   : > { %v1439_v11 = vadd.f32 %v5873_v54, %v1293_v5 }
 0x18f   : > { %v1407_v45 = vpop.f32.mrf.mxu1 }
 0x190   : > { %v5832_v44 = vpop.f32.mrf.mxu0 }
 0x192   : > { %v1271_v55 = vpop.f32.mrf.mxu0 }
 0x193   : > { %v5876_v32 = vpop.f32.mrf.mxu1  ;;  %v1294_v20 = vadd.f32 %v1271_v55, %v1148_v10 }
 0x195   : > { %v1417_v48 = vpop.f32.mrf.mxu1 }
 0x196   : > { %v5835_v57 = vpop.f32.mrf.mxu0 }
 0x198   : > { %v7856_v0 = vpop.f32.mrf.mxu0 }
 0x199   : > { %8516 = vst [vmem:[#allocation31_spill] sm:$0xff] %v7856_v0  ;;  %v7858_v59 = vpop.f32.mrf.mxu1  ;;  %v1291_v0 = vadd.f32 %v5826_v47, %v1145_v23 }
 0x19a   : > { %8517 = vst [vmem:[#allocation32_spill] sm:$0xff] %v7858_v59  ;;  %v1144_v59 = vadd.f32 %v1105_v16, %v998_v36 }
 0x19b   : > { %v7860_v4 = vpop.f32.mrf.mxu1  ;;  %v1437_v50 = vadd.f32 %v5870_v31, %v1291_v0 }
 0x19c   : > { %8518 = vst [vmem:[#allocation33_spill] sm:$0xff] %v7860_v4  ;;  %v1000_v4 = vadd.f32 %v969_v13, %v832_v37  ;;  %v1290_v39 = vadd.f32 %v1251_v3, %v1144_v59  ;;  %v1295_v13 = vadd.f32 %v5832_v44, %v1149_v63  ;;  %v1297_v3 = vadd.f32 %v5835_v57, %v1151_v17 }
 0x19e   : > { %v1146_v51 = vadd.f32 %v1115_v52, %v1000_v4  ;;  %v1436_v37 = vadd.f32 %v1397_v49, %v1290_v39  ;;  %v1441_v29 = vadd.f32 %v5876_v32, %v1295_v13  ;;  %v1440_v49 = vadd.f32 %v1417_v48, %v1294_v20 }
 0x1a0   : > { %v1292_v23 = vadd.f32 %v1261_v7, %v1146_v51  ;;  %v8521_v14 = vld [vmem:[#allocation31_spill] sm:$0xff] }
 0x1a1   : > { %v1296_v44 = vadd.f32 %v8521_v14, %v1150_v30  ;;  %v8522_v59 = vld [vmem:[#allocation32_spill] sm:$0xff] }
 0x1a2   : > { %v1438_v27 = vadd.f32 %v1407_v45, %v1292_v23  ;;  %v1443_v32 = vadd.f32 %v8522_v59, %v1297_v3 }
 0x1ac   : > { %v5914_v58 = vpop.f32.mrf.mxu0 }
 0x1ad   : > { %v1569_v22 = vadd.f32 %v5914_v58, %v1437_v50 }
 0x1ae   : > { %v1529_v53 = vpop.f32.mrf.mxu0 }
 0x1af   : > { %v5958_v34 = vpop.f32.mrf.mxu1  ;;  %v1568_v16 = vadd.f32 %v1529_v53, %v1436_v37 }
 0x1b0   : > { %v1701_v52 = vadd.f32 %v5958_v34, %v1569_v22 }
 0x1b1   : > { %v5917_v60 = vpop.f32.mrf.mxu0  ;;  %v1661_v15 = vpop.f32.mrf.mxu1 }
 0x1b2   : > { %v1571_v47 = vadd.f32 %v5917_v60, %v1439_v11  ;;  %v1700_v6 = vadd.f32 %v1661_v15, %v1568_v16  ;;  %v8523_v15 = vld [vmem:[#allocation33_spill] sm:$0xff] }
 0x1b3   : > { %v1539_v21 = vpop.f32.mrf.mxu0  ;;  %v5961_v28 = vpop.f32.mrf.mxu1 }
 0x1b4   : > { %v1570_v31 = vadd.f32 %v1539_v21, %v1438_v27  ;;  %v1703_v0 = vadd.f32 %v5961_v28, %v1571_v47  ;;  %v1442_v21 = vadd.f32 %v8523_v15, %v1296_v44 }
 0x1b5   : > { %v1671_v9 = vpop.f32.mrf.mxu1 }
 0x1b6   : > { %v5920_v38 = vpop.f32.mrf.mxu0  ;;  %v1702_v4 = vadd.f32 %v1671_v9, %v1570_v31 }
 0x1b7   : > { %v5964_v61 = vpop.f32.mrf.mxu1  ;;  %v1573_v54 = vadd.f32 %v5920_v38, %v1441_v29 }
 0x1b8   : > { %v1549_v42 = vpop.f32.mrf.mxu0 }
 0x1b9   : > { %v1681_v55 = vpop.f32.mrf.mxu1  ;;  %v1572_v57 = vadd.f32 %v1549_v42, %v1440_v49  ;;  %v1705_v8 = vadd.f32 %v5964_v61, %v1573_v54 }
 0x1ba   : > { %v5923_v43 = vpop.f32.mrf.mxu0 }
 0x1bb   : > { %v5967_v48 = vpop.f32.mrf.mxu1  ;;  %v1575_v25 = vadd.f32 %v5923_v43, %v1443_v32  ;;  %v1704_v46 = vadd.f32 %v1681_v55, %v1572_v57 }
 0x1bc   : > { %v1559_v26 = vpop.f32.mrf.mxu0 }
 0x1bd   : > { %v1574_v56 = vadd.f32 %v1559_v26, %v1442_v21  ;;  %v1691_v50 = vpop.f32.mrf.mxu1  ;;  %v1707_v19 = vadd.f32 %v5967_v48, %v1575_v25  ;;  %v2157_v25 = vld [vmem:[#allocation7 + $0x168] sm:$0xff] }
 0x1bf   : > { %v1706_v43 = vadd.f32 %v1691_v50, %v1574_v56  ;;  %v8528_v56 = vld [vmem:[#allocation28_spill] sm:$0xff] }
 0x1ce   : > { %v6002_v18 = vpop.f32.mrf.mxu0 }
 0x1cf   : > { %v1833_v7 = vadd.f32 %v6002_v18, %v1701_v52  ;;  %v8524_v52 = vld [vmem:[#allocation23_spill] sm:$0xff] }
 0x1d0   : > { %v1793_v45 = vpop.f32.mrf.mxu0 }
 0x1d1   : > { %v1848_v58 = vadd.f32 %v4906_v2, %v1833_v7  ;;  %v1832_v53 = vadd.f32 %v1793_v45, %v1700_v6 }
 0x1d2   : > { %v6005_v60 = vpop.f32.mrf.mxu0 }
 0x1d3   : > { %v1856_v34 = vmax.f32 %v1848_v58, 0.0  ;;  %v1847_v35 = vadd.f32 %v4906_v2, %v1832_v53  ;;  %v1835_v24 = vadd.f32 %v6005_v60, %v1703_v0  ;;  %v2158_v60 = vld [vmem:[#allocation7 + $0x170] sm:$0xff] }
 0x1d4   : > { %v1803_v36 = vpop.f32.mrf.mxu0 }
 0x1d5   : > { %1905 = vst [vmem:[#allocation3 + $0x15] sm:$0xff] %v1856_v34  ;;  %v1855_v38 = vmax.f32 %v1847_v35, 0.0  ;;  %v1850_v33 = vadd.f32 %v4906_v2, %v1835_v24  ;;  %v1834_v28 = vadd.f32 %v1803_v36, %v1702_v4  ;;  %v2268_v34 = vld [vmem:[#allocation7 + $0x1f0] sm:$0xff] }
 0x1d6   : > { %v6008_v39 = vpop.f32.mrf.mxu0 }
 0x1d7   : > { %1904 = vst [vmem:[#allocation3 + $0xb] sm:$0xff] %v1855_v38  ;;  %v1858_v42 = vmax.f32 %v1850_v33, 0.0  ;;  %v1849_v40 = vadd.f32 %v4906_v2, %v1834_v28  ;;  %v1837_v51 = vadd.f32 %v6008_v39, %v1705_v8  ;;  %v2267_v38 = vld [vmem:[#allocation7 + $0x1e8] sm:$0xff] }
 0x1d8   : > { %v1813_v5 = vpop.f32.mrf.mxu0  ;;  %v8527_v39 = vld [vmem:[#allocation27_spill] sm:$0xff] }
 0x1d9   : > { %1907 = vst [vmem:[#allocation3 + $0x29] sm:$0xff] %v1858_v42  ;;  %v1857_v41 = vmax.f32 %v1849_v40, 0.0  ;;  %v1852_v63 = vadd.f32 %v4906_v2, %v1837_v51  ;;  %v1836_v12 = vadd.f32 %v1813_v5, %v1704_v46  ;;  %v8529_v42 = vld [vmem:[#allocation25_spill] sm:$0xff] }
 0x1da   : > { %v6011_v9 = vpop.f32.mrf.mxu0 }
 0x1db   : > { %1906 = vst [vmem:[#allocation3 + $0x1f] sm:$0xff] %v1857_v41  ;;  %v1860_v37 = vmax.f32 %v1852_v63, 0.0  ;;  %v1851_v23 = vadd.f32 %v4906_v2, %v1836_v12  ;;  %v1839_v22 = vadd.f32 %v6011_v9, %v1707_v19 }
 0x1dc   : > { %v1823_v10 = vpop.f32.mrf.mxu0  ;;  %v1947_v62 = vld [vmem:[#allocation3 + $0x15] ss:$2 sm:$0xf]  ;;  %v1914_v13 = vld [vmem:[#allocation3 + $0x14] ss:$2 sm:$0xf] }
 0x1dd   : > { %1909 = vst [vmem:[#allocation3 + $0x3d] sm:$0xff] %v1860_v37  ;;  %v1859_v11 = vmax.f32 %v1851_v23, 0.0  ;;  %v1854_v16 = vadd.f32 %v4906_v2, %v1839_v22  ;;  %v1838_v17 = vadd.f32 %v1823_v10, %v1706_v43  ;;  %v1953_v20 = vrot.slane %v1947_v62, 4  ;;  %v2130_v18 = vld [vmem:[#allocation3 + $0x16] ss:$2 sm:$0xf] }
 0x1de   : > { %v1920_v61 = vrot.slane %v1914_v13, 4  ;;  %v2238_v31 = vld [vmem:[#allocation3 + $0xa] ss:$2 sm:$0xf]  ;;  %v2136_v4 = vrot.slane %v2130_v18, 4 }
 0x1df   : > { %1908 = vst [vmem:[#allocation3 + $0x33] sm:$0xff] %v1859_v11  ;;  %v1862_v26 = vmax.f32 %v1854_v16, 0.0  ;;  %v1853_v27 = vadd.f32 %v4906_v2, %v1838_v17  ;;  %v1958_v47 = vsel %vm1925_vm1, %v8524_v52, %v1953_v20  ;;  %v8526_v2 = vld [vmem:[#allocation26_spill] sm:$0xff]  ;;  %v7888_v45 = vld [vmem:[#allocation3 + $0xc] ss:$2 sm:$0xf] }
 0x1e0   : > { %6044 = vmatprep.mubr.f32.mxu1 %v1958_v47  ;;  %v1926_v30 = vsel %vm1925_vm1, %v8525_v1, %v1920_v61  ;;  %v1949_v29 = vld [vmem:[#allocation3 + $0x29] ss:$2 sm:$0xf]  ;;  %v1916_v3 = vld [vmem:[#allocation3 + $0x28] ss:$2 sm:$0xf]  ;;  %v2141_v40 = vsel %vm1925_vm1, %v8529_v42, %v2136_v4 }
 0x1e1   : > { %1911 = vst [vmem:[#allocation3 + $0x51] sm:$0xff] %v1862_v26  ;;  %v1861_v6 = vmax.f32 %v1853_v27, 0.0  ;;  %6079 = vmatprep.mubr.f32.mxu0 %v1926_v30  ;;  %v7880_v7 = vld [vmem:[#allocation3 + $0x2a] ss:$2 sm:$0xf]  ;;  %v2570_v49 = vrot.slane %v1916_v3, 4 }
 0x1e2   : > { %v2674_v14 = vrot.slane %v1949_v29, 4  ;;  %v2240_v44 = vld [vmem:[#allocation3 + $0x1e] ss:$2 sm:$0xf]  ;;  %3799 = vst [vmem:[#allocation3 + $0x28] sm:$0xff] %v8526_v2  ;;  %v2778_v15 = vrot.slane %v7880_v7, 4 }
 0x1e3   : > { %v7883_v54 = vld [vmem:[#allocation3 + $0x1f] ss:$2 sm:$0xf]  ;;  %1910 = vst [vmem:[#allocation3 + $0x47] sm:$0xff] %v1861_v6  ;;  %v7891_v0 = vsel %vm1925_vm1, %v1914_v13, %v2570_v49  ;;  %v2246_v35 = vrot.slane %v2240_v44, 4  ;;  %v2156_v43 = vld [vmem:[#allocation7 + $0x160] sm:$0xff] }
 0x1e4   : > { %v7885_v55 = vld [vmem:[#allocation3 + $0xb] ss:$2 sm:$0xf]  ;;  %3797 = vst [vmem:[#allocation3 + $0x18] sm:$0xff] %v8526_v2  ;;  %v7894_v58 = vsel %vm1925_vm1, %v1947_v62, %v2674_v14  ;;  %v7909_v46 = vsel %vm1925_vm1, %v2130_v18, %v2778_v15  ;;  %v2155_v11 = vld [vmem:[#allocation7 + $0x158] sm:$0xff]  ;;  %v2154_v26 = vld [vmem:[#allocation7 + $0x150] sm:$0xff] }
 0x1e5   : > { %v1951_v53 = vld [vmem:[#allocation3 + $0x3d] ss:$2 sm:$0xf]  ;;  %v1918_v59 = vld [vmem:[#allocation3 + $0x3c] ss:$2 sm:$0xf]  ;;  %v2251_v5 = vsel %vm1925_vm1, %v2238_v31, %v2246_v35 }
 0x1e6   : > { %3796 = vst [vmem:[#allocation3 + $0x10] sm:$0xff] %v8526_v2  ;;  %3795 = vst [vmem:[#allocation3 + $0x8] sm:$0xff] %v8526_v2  ;;  %v1956_v32 = vrot.slane %v1951_v53, 4  ;;  %v1923_v57 = vrot.slane %v1918_v59, 4  ;;  %v2266_v37 = vld [vmem:[#allocation7 + $0x1e0] sm:$0xff]  ;;  %v2265_v16 = vld [vmem:[#allocation7 + $0x1d8] sm:$0xff] }
 0x1e7   : > { %v7898_v24 = vld [vmem:[#allocation3 + $0x3e] ss:$2 sm:$0xf]  ;;  %v7903_v48 = vld [vmem:[#allocation3 + $0x32] ss:$2 sm:$0xf] }
 0x1e8   : > { %v1959_v21 = vsel %vm1925_vm1, %v1949_v29, %v1956_v32  ;;  %v1927_v8 = vsel %vm1925_vm1, %v1916_v3, %v1923_v57  ;;  %v7905_v36 = vld [vmem:[#allocation3 + $0x20] ss:$2 sm:$0xf]  ;;  %v2352_v33 = vld [vmem:[#allocation3 + $0x33] ss:$2 sm:$0xf] }
 0x1e9   : > { %6045 = vmatmul.mubr.f32.vlgmr.msra.gmra.mxu1 %v1959_v21  ;;  %6080 = vmatmul.mubr.f32.vlgmr.msra.gmra.mxu0 %v1927_v8  ;;  %3798 = vst [vmem:[#allocation3 + $0x20] sm:$0xff] %v8526_v2  ;;  %v2462_v28 = vld [vmem:[#allocation3 + $0x34] ss:$2 sm:$0xf]  ;;  %v2152_v30 = vld [vmem:[#allocation7 + $0x140] sm:$0xff]  ;;  %v2151_v3 = vld [vmem:[#allocation7 + $0x138] sm:$0xff] }
 0x1ea   : > { %6083 = vmatpush3.msra.mxu1 %v8527_v39  ;;  %6118 = vmatpush3.msra.mxu0 %v8528_v56  ;;  %3800 = vst [vmem:[#allocation3 + $0x30] sm:$0xff] %v8526_v2  ;;  %3801 = vst [vmem:[#allocation3 + $0x38] sm:$0xff] %v8526_v2  ;;  %v2568_v51 = vld [vmem:[#allocation3 + $0x50] ss:$2 sm:$0xf]  ;;  %v2264_v27 = vld [vmem:[#allocation7 + $0x1d0] sm:$0xff] }
 0x1eb   : > { %v2672_v50 = vld [vmem:[#allocation3 + $0x51] ss:$2 sm:$0xf]  ;;  %6084 = vmatprep.subr.mxu1 %v2158_v60  ;;  %6114 = vmatprep.mubr.f32.mxu1 %v2141_v40  ;;  %v7918_v19 = vld [vmem:[#allocation3 + $0x46] ss:$2 sm:$0xf] }
 0x1ec   : > { %v2354_v41 = vld [vmem:[#allocation3 + $0x47] ss:$2 sm:$0xf]  ;;  %6119 = vmatprep.subr.mxu0 %v2268_v34  ;;  %6149 = vmatprep.mubr.f32.mxu0 %v2251_v5  ;;  %v2464_v12 = vld [vmem:[#allocation3 + $0x48] ss:$2 sm:$0xf] }
 0x1ed   : > { %v2359_v63 = vrot.slane %v2354_v41, 4  ;;  %3802 = vst [vmem:[#allocation3 + $0x40] sm:$0xff] %v8526_v2  ;;  %v2573_v9 = vrot.slane %v2568_v51, 4  ;;  %6085 = vmatpush3.msra.mxu1 %v2158_v60  ;;  %6120 = vmatpush3.msra.mxu0 %v2268_v34  ;;  %v2469_v23 = vrot.slane %v2464_v12, 4  ;;  %3803 = vst [vmem:[#allocation3 + $0x48] sm:$0xff] %v8526_v2  ;;  %v2677_v22 = vrot.slane %v2672_v50, 4 }
 0x1ee   : > { %6086 = vmatprep.subr.mxu1 %v2157_v25  ;;  %6121 = vmatprep.subr.mxu0 %v2267_v38  ;;  %v2776_v13 = vld [vmem:[#allocation3 + $0x52] ss:$2 sm:$0xf]  ;;  %v2262_v29 = vld [vmem:[#allocation7 + $0x1c0] sm:$0xff]  ;;  %v2261_v18 = vld [vmem:[#allocation7 + $0x1b8] sm:$0xff]  ;;  %v2139_v15 = vrot.slane %v7898_v24, 4 }
 0x1ef   : > { %v7923_v10 = vsel %vm1925_vm1, %v2352_v33, %v2359_v63  ;;  %v7926_v62 = vsel %vm1925_vm1, %v1918_v59, %v2573_v9  ;;  %6087 = vmatpush3.msra.mxu1 %v2157_v25  ;;  %6122 = vmatpush3.msra.mxu0 %v2267_v38  ;;  %v7929_v17 = vsel %vm1925_vm1, %v2462_v28, %v2469_v23  ;;  %v2781_v61 = vrot.slane %v2776_v13, 4  ;;  %v2153_v47 = vld [vmem:[#allocation7 + $0x148] sm:$0xff]  ;;  %v2150_v6 = vld [vmem:[#allocation7 + $0x130] sm:$0xff]  ;;  %v2148_v44 = vld [vmem:[#allocation7 + $0x120] sm:$0xff] }
 0x1f0   : > { %v7932_v20 = vsel %vm1925_vm1, %v1951_v53, %v2677_v22  ;;  %3804 = vst [vmem:[#allocation3 + $0x50] sm:$0xff] %v8526_v2  ;;  %3805 = vst [vmem:[#allocation3 + $0x58] sm:$0xff] %v8526_v2  ;;  %6088 = vmatprep.subr.mxu1 %v2156_v43  ;;  %6123 = vmatprep.subr.mxu0 %v2266_v37  ;;  %v2263_v1 = vld [vmem:[#allocation7 + $0x1c8] sm:$0xff]  ;;  %v2260_v31 = vld [vmem:[#allocation7 + $0x1b0] sm:$0xff]  ;;  %v2249_v21 = vrot.slane %v7918_v19, 4  ;;  %v2356_v8 = vrot.slane %v7883_v54, 4 }
 0x1f1   : > { %6089 = vmatpush3.msra.mxu1 %v2156_v43  ;;  %6124 = vmatpush3.msra.mxu0 %v2266_v37  ;;  %v7938_v52 = vsel %vm1925_vm1, %v7898_v24, %v2781_v61  ;;  %v2149_v49 = vld [vmem:[#allocation7 + $0x128] sm:$0xff]  ;;  %v2258_v2 = vld [vmem:[#allocation7 + $0x1a0] sm:$0xff]  ;;  %v2147_v53 = vld [vmem:[#allocation7 + $0x118] sm:$0xff]  ;;  %v2466_v33 = vrot.slane %v7905_v36, 4  ;;  %v2142_v28 = vsel %vm1925_vm1, %v7880_v7, %v2139_v15 }
 0x1f2   : > { %6090 = vmatprep.subr.mxu1 %v2155_v11  ;;  %6125 = vmatprep.subr.mxu0 %v2265_v16  ;;  %v2259_v14 = vld [vmem:[#allocation7 + $0x1a8] sm:$0xff]  ;;  %v2257_v59 = vld [vmem:[#allocation7 + $0x198] sm:$0xff]  ;;  %v2146_v32 = vld [vmem:[#allocation7 + $0x110] sm:$0xff]  ;;  %v2252_v24 = vsel %vm1925_vm1, %v7903_v48, %v2249_v21  ;;  %v2361_v54 = vsel %vm1925_vm1, %v7885_v55, %v2356_v8 }
 0x1f3   : > { %6091 = vmatpush3.msra.mxu1 %v2155_v11  ;;  %6126 = vmatpush3.msra.mxu0 %v2265_v16  ;;  %v2256_v57 = vld [vmem:[#allocation7 + $0x190] sm:$0xff]  ;;  %v2145_v60 = vld [vmem:[#allocation7 + $0x108] sm:$0xff]  ;;  %v2144_v34 = vld [vmem:[#allocation7 + $0x100] sm:$0xff]  ;;  %v2471_v36 = vsel %vm1925_vm1, %v7888_v45, %v2466_v33 }
 0x1f4   : > { %6092 = vmatprep.subr.mxu1 %v2154_v26  ;;  %6127 = vmatprep.subr.mxu0 %v2264_v27  ;;  %v2255_v4 = vld [vmem:[#allocation7 + $0x188] sm:$0xff]  ;;  %v2254_v35 = vld [vmem:[#allocation7 + $0x180] sm:$0xff]  ;;  %v2379_v25 = vld [vmem:[#allocation7 + $0x278] sm:$0xff] }
 0x1f5   : > { %6093 = vmatpush3.msra.mxu1 %v2154_v26  ;;  %6128 = vmatpush3.msra.mxu0 %v2264_v27  ;;  %v2489_v38 = vld [vmem:[#allocation7 + $0x2f8] sm:$0xff]  ;;  %v2378_v39 = vld [vmem:[#allocation7 + $0x270] sm:$0xff]  ;;  %v2377_v7 = vld [vmem:[#allocation7 + $0x268] sm:$0xff] }
 0x1f6   : > { %6094 = vmatprep.subr.mxu1 %v2153_v47  ;;  %6129 = vmatprep.subr.mxu0 %v2263_v1  ;;  %v2488_v56 = vld [vmem:[#allocation7 + $0x2f0] sm:$0xff]  ;;  %v2487_v42 = vld [vmem:[#allocation7 + $0x2e8] sm:$0xff]  ;;  %v2376_v48 = vld [vmem:[#allocation7 + $0x260] sm:$0xff] }
 0x1f7   : > { %6095 = vmatpush3.msra.mxu1 %v2153_v47  ;;  %6130 = vmatpush3.msra.mxu0 %v2263_v1  ;;  %v2486_v40 = vld [vmem:[#allocation7 + $0x2e0] sm:$0xff]  ;;  %v2375_v55 = vld [vmem:[#allocation7 + $0x258] sm:$0xff]  ;;  %v2374_v45 = vld [vmem:[#allocation7 + $0x250] sm:$0xff] }
 0x1f8   : > { %6096 = vmatprep.subr.mxu1 %v2152_v30  ;;  %6131 = vmatprep.subr.mxu0 %v2262_v29  ;;  %v2485_v51 = vld [vmem:[#allocation7 + $0x2d8] sm:$0xff]  ;;  %v2484_v50 = vld [vmem:[#allocation7 + $0x2d0] sm:$0xff]  ;;  %v2373_v5 = vld [vmem:[#allocation7 + $0x248] sm:$0xff] }
 0x1f9   : > { %6097 = vmatpush3.msra.mxu1 %v2152_v30  ;;  %6132 = vmatpush3.msra.mxu0 %v2262_v29  ;;  %v2483_v19 = vld [vmem:[#allocation7 + $0x2c8] sm:$0xff]  ;;  %v2372_v41 = vld [vmem:[#allocation7 + $0x240] sm:$0xff]  ;;  %v2371_v12 = vld [vmem:[#allocation7 + $0x238] sm:$0xff] }
 0x1fa   : > { %6098 = vmatprep.subr.mxu1 %v2151_v3  ;;  %6133 = vmatprep.subr.mxu0 %v2261_v18  ;;  %v2482_v63 = vld [vmem:[#allocation7 + $0x2c0] sm:$0xff]  ;;  %v2481_v9 = vld [vmem:[#allocation7 + $0x2b8] sm:$0xff]  ;;  %v2370_v43 = vld [vmem:[#allocation7 + $0x230] sm:$0xff] }
 0x1fb   : > { %6099 = vmatpush3.msra.mxu1 %v2151_v3  ;;  %6134 = vmatpush3.msra.mxu0 %v2261_v18  ;;  %v2480_v37 = vld [vmem:[#allocation7 + $0x2b0] sm:$0xff]  ;;  %v2369_v23 = vld [vmem:[#allocation7 + $0x228] sm:$0xff]  ;;  %v2368_v13 = vld [vmem:[#allocation7 + $0x220] sm:$0xff] }
 0x1fc   : > { %6100 = vmatprep.subr.mxu1 %v2150_v6  ;;  %6135 = vmatprep.subr.mxu0 %v2260_v31  ;;  %v2479_v22 = vld [vmem:[#allocation7 + $0x2a8] sm:$0xff]  ;;  %v2478_v11 = vld [vmem:[#allocation7 + $0x2a0] sm:$0xff]  ;;  %v2367_v16 = vld [vmem:[#allocation7 + $0x218] sm:$0xff] }
 0x1fd   : > { %6101 = vmatpush3.msra.mxu1 %v2150_v6  ;;  %6136 = vmatpush3.msra.mxu0 %v2260_v31  ;;  %v2477_v61 = vld [vmem:[#allocation7 + $0x298] sm:$0xff]  ;;  %v2366_v26 = vld [vmem:[#allocation7 + $0x210] sm:$0xff]  ;;  %v2365_v47 = vld [vmem:[#allocation7 + $0x208] sm:$0xff] }
 0x1fe   : > { %6102 = vmatprep.subr.mxu1 %v2149_v49  ;;  %6137 = vmatprep.subr.mxu0 %v2259_v14  ;;  %v2476_v27 = vld [vmem:[#allocation7 + $0x290] sm:$0xff]  ;;  %v2475_v1 = vld [vmem:[#allocation7 + $0x288] sm:$0xff]  ;;  %v2364_v30 = vld [vmem:[#allocation7 + $0x200] sm:$0xff] }
 0x1ff   : > { %6103 = vmatpush3.msra.mxu1 %v2149_v49  ;;  %6138 = vmatpush3.msra.mxu0 %v2259_v14  ;;  %v2474_v29 = vld [vmem:[#allocation7 + $0x280] sm:$0xff]  ;;  %v2593_v3 = vld [vmem:[#allocation7 + $0x378] sm:$0xff]  ;;  %v2592_v6 = vld [vmem:[#allocation7 + $0x370] sm:$0xff] }
 0x200   : > { %6104 = vmatprep.subr.mxu1 %v2148_v44  ;;  %6139 = vmatprep.subr.mxu0 %v2258_v2  ;;  %v2697_v18 = vld [vmem:[#allocation7 + $0x3f8] sm:$0xff]  ;;  %v2696_v31 = vld [vmem:[#allocation7 + $0x3f0] sm:$0xff]  ;;  %v2591_v49 = vld [vmem:[#allocation7 + $0x368] sm:$0xff] }
 0x201   : > { %6105 = vmatpush3.msra.mxu1 %v2148_v44  ;;  %6140 = vmatpush3.msra.mxu0 %v2258_v2  ;;  %v2695_v14 = vld [vmem:[#allocation7 + $0x3e8] sm:$0xff]  ;;  %v2590_v44 = vld [vmem:[#allocation7 + $0x360] sm:$0xff]  ;;  %v2693_v2 = vld [vmem:[#allocation7 + $0x3d8] sm:$0xff] }
 0x202   : > { %6106 = vmatprep.subr.mxu1 %v2147_v53  ;;  %6141 = vmatprep.subr.mxu0 %v2257_v59  ;;  %v2583_v15 = vld [vmem:[#allocation7 + $0x328] sm:$0xff]  ;;  %v2582_v8 = vld [vmem:[#allocation7 + $0x320] sm:$0xff]  ;;  %v2685_v33 = vld [vmem:[#allocation7 + $0x398] sm:$0xff] }
 0x203   : > { %6107 = vmatpush3.msra.mxu1 %v2147_v53  ;;  %6142 = vmatpush3.msra.mxu0 %v2257_v59  ;;  %v2587_v53 = vld [vmem:[#allocation7 + $0x348] sm:$0xff] }
 0x204   : > { %6108 = vmatprep.subr.mxu1 %v2146_v32  ;;  %6143 = vmatprep.subr.mxu0 %v2256_v57  ;;  %v2691_v59 = vld [vmem:[#allocation7 + $0x3c8] sm:$0xff] }
 0x205   : > { %6109 = vmatpush3.msra.mxu1 %v2146_v32  ;;  %6144 = vmatpush3.msra.mxu0 %v2256_v57  ;;  %v2586_v32 = vld [vmem:[#allocation7 + $0x340] sm:$0xff]  ;;  %v2687_v21 = vld [vmem:[#allocation7 + $0x3a8] sm:$0xff] }
 0x206   : > { %6110 = vmatprep.subr.mxu1 %v2145_v60  ;;  %6145 = vmatprep.subr.mxu0 %v2255_v4  ;;  %v2690_v57 = vld [vmem:[#allocation7 + $0x3c0] sm:$0xff] }
 0x207   : > { %6111 = vmatpush3.msra.mxu1 %v2145_v60  ;;  %6146 = vmatpush3.msra.mxu0 %v2255_v4  ;;  %v2585_v60 = vld [vmem:[#allocation7 + $0x338] sm:$0xff] }
 0x208   : > { %6112 = vmatprep.subr.mxu1 %v2144_v34  ;;  %6147 = vmatprep.subr.mxu0 %v2254_v35  ;;  %v2689_v4 = vld [vmem:[#allocation7 + $0x3b8] sm:$0xff] }
 0x209   : > { %6113 = vmatpush3.msra.mxu1 %v2144_v34  ;;  %6148 = vmatpush3.msra.mxu0 %v2254_v35  ;;  %v2584_v34 = vld [vmem:[#allocation7 + $0x330] sm:$0xff] }
 0x20a   : > { %6115 = vmatmul.mubr.f32.vlgmr.msra.gmra.mxu1 %v2142_v28  ;;  %6150 = vmatmul.mubr.f32.vlgmr.msra.gmra.mxu0 %v2252_v24  ;;  %v2688_v35 = vld [vmem:[#allocation7 + $0x3b0] sm:$0xff] }
 0x20b   : > { %6152 = vmatprep.subr.mxu1 %v2379_v25  ;;  %6187 = vmatprep.subr.mxu0 %v2489_v38  ;;  %v2580_v28 = vld [vmem:[#allocation7 + $0x310] sm:$0xff] }
 0x20c   : > { %6153 = vmatpush3.msra.mxu1 %v2379_v25  ;;  %6184 = vmatprep.mubr.f32.mxu1 %v2361_v54  ;;  %v2686_v25 = vld [vmem:[#allocation7 + $0x3a0] sm:$0xff]  ;;  %v2684_v24 = vld [vmem:[#allocation7 + $0x390] sm:$0xff]  ;;  %v2579_v54 = vld [vmem:[#allocation7 + $0x308] sm:$0xff] }
 0x20d   : > { %6188 = vmatpush3.msra.mxu0 %v2489_v38  ;;  %6219 = vmatprep.mubr.f32.mxu0 %v2471_v36  ;;  %v2581_v38 = vld [vmem:[#allocation7 + $0x318] sm:$0xff]  ;;  %v2682_v36 = vld [vmem:[#allocation7 + $0x380] sm:$0xff] }
 0x20e   : > { %6154 = vmatprep.subr.mxu1 %v2378_v39  ;;  %6189 = vmatprep.subr.mxu0 %v2488_v56 }
 0x20f   : > { %6155 = vmatpush3.msra.mxu1 %v2378_v39  ;;  %6190 = vmatpush3.msra.mxu0 %v2488_v56  ;;  %v2683_v39 = vld [vmem:[#allocation7 + $0x388] sm:$0xff]  ;;  %v2578_v56 = vld [vmem:[#allocation7 + $0x300] sm:$0xff] }
 0x210   : > { %6156 = vmatprep.subr.mxu1 %v2377_v7  ;;  %6191 = vmatprep.subr.mxu0 %v2487_v42 }
 0x211   : > { %6157 = vmatpush3.msra.mxu1 %v2377_v7  ;;  %6192 = vmatpush3.msra.mxu0 %v2487_v42  ;;  %v2801_v7 = vld [vmem:[#allocation7 + $0x478] sm:$0xff]  ;;  %v2800_v42 = vld [vmem:[#allocation7 + $0x470] sm:$0xff] }
 0x212   : > { %6158 = vmatprep.subr.mxu1 %v2376_v48  ;;  %6193 = vmatprep.subr.mxu0 %v2486_v40 }
 0x213   : > { %6159 = vmatpush3.msra.mxu1 %v2376_v48  ;;  %6194 = vmatpush3.msra.mxu0 %v2486_v40  ;;  %v2799_v48 = vld [vmem:[#allocation7 + $0x468] sm:$0xff] }
 0x214   : > { %6160 = vmatprep.subr.mxu1 %v2375_v55  ;;  %6195 = vmatprep.subr.mxu0 %v2485_v51  ;;  %v7959_v40 = vld [vmem:[#allocation2 + $0x138] sm:$0xff] }
 0x215   : > { %6161 = vmatpush3.msra.mxu1 %v2375_v55  ;;  %6196 = vmatpush3.msra.mxu0 %v2485_v51  ;;  %v2798_v55 = vld [vmem:[#allocation7 + $0x460] sm:$0xff]  ;;  %v2797_v51 = vld [vmem:[#allocation7 + $0x458] sm:$0xff] }
 0x216   : > { %6162 = vmatprep.subr.mxu1 %v2374_v45  ;;  %6197 = vmatprep.subr.mxu0 %v2484_v50 }
 0x217   : > { %6163 = vmatpush3.msra.mxu1 %v2374_v45  ;;  %6198 = vmatpush3.msra.mxu0 %v2484_v50  ;;  %v2793_v45 = vld [vmem:[#allocation7 + $0x438] sm:$0xff]  ;;  %v2792_v50 = vld [vmem:[#allocation7 + $0x430] sm:$0xff] }
 0x218   : > { %6164 = vmatprep.subr.mxu1 %v2373_v5  ;;  %6199 = vmatprep.subr.mxu0 %v2483_v19 }
 0x219   : > { %6165 = vmatpush3.msra.mxu1 %v2373_v5  ;;  %6200 = vmatpush3.msra.mxu0 %v2483_v19  ;;  %v2791_v5 = vld [vmem:[#allocation7 + $0x428] sm:$0xff]  ;;  %v2790_v19 = vld [vmem:[#allocation7 + $0x420] sm:$0xff] }
 0x21a   : > { %6166 = vmatprep.subr.mxu1 %v2372_v41  ;;  %6201 = vmatprep.subr.mxu0 %v2482_v63 }
 0x21b   : > { %6167 = vmatpush3.msra.mxu1 %v2372_v41  ;;  %6202 = vmatpush3.msra.mxu0 %v2482_v63  ;;  %v2789_v41 = vld [vmem:[#allocation7 + $0x418] sm:$0xff]  ;;  %v2788_v63 = vld [vmem:[#allocation7 + $0x410] sm:$0xff] }
 0x21c   : > { %6168 = vmatprep.subr.mxu1 %v2371_v12  ;;  %6203 = vmatprep.subr.mxu0 %v2481_v9 }
 0x21d   : > { %6169 = vmatpush3.msra.mxu1 %v2371_v12  ;;  %6204 = vmatpush3.msra.mxu0 %v2481_v9  ;;  %v2787_v12 = vld [vmem:[#allocation7 + $0x408] sm:$0xff]  ;;  %v2786_v9 = vld [vmem:[#allocation7 + $0x400] sm:$0xff] }
 0x21e   : > { %6170 = vmatprep.subr.mxu1 %v2370_v43  ;;  %6205 = vmatprep.subr.mxu0 %v2480_v37 }
 0x21f   : > { %6171 = vmatpush3.msra.mxu1 %v2370_v43  ;;  %6206 = vmatpush3.msra.mxu0 %v2480_v37  ;;  %v2982_v43 = vld [vmem:[#allocation9 + $0xf8] sm:$0xff] }
 0x220   : > { %6172 = vmatprep.subr.mxu1 %v2369_v23  ;;  %6207 = vmatprep.subr.mxu0 %v2479_v22  ;;  %v2958_v37 = vld [vmem:[#allocation9 + $0x78] sm:$0xff] }
 0x221   : > { %6173 = vmatpush3.msra.mxu1 %v2369_v23  ;;  %6208 = vmatpush3.msra.mxu0 %v2479_v22  ;;  %v2981_v23 = vld [vmem:[#allocation9 + $0xf0] sm:$0xff] }
 0x222   : > { %6174 = vmatprep.subr.mxu1 %v2368_v13  ;;  %6209 = vmatprep.subr.mxu0 %v2478_v11  ;;  %v2957_v22 = vld [vmem:[#allocation9 + $0x70] sm:$0xff] }
 0x223   : > { %6175 = vmatpush3.msra.mxu1 %v2368_v13  ;;  %6210 = vmatpush3.msra.mxu0 %v2478_v11  ;;  %v2980_v13 = vld [vmem:[#allocation9 + $0xe8] sm:$0xff] }
 0x224   : > { %6176 = vmatprep.subr.mxu1 %v2367_v16  ;;  %6211 = vmatprep.subr.mxu0 %v2477_v61  ;;  %v2956_v11 = vld [vmem:[#allocation9 + $0x68] sm:$0xff] }
 0x225   : > { %6177 = vmatpush3.msra.mxu1 %v2367_v16  ;;  %6212 = vmatpush3.msra.mxu0 %v2477_v61  ;;  %v2955_v16 = vld [vmem:[#allocation9 + $0x60] sm:$0xff]  ;;  %v2978_v61 = vld [vmem:[#allocation9 + $0xd8] sm:$0xff] }
 0x226   : > { %6178 = vmatprep.subr.mxu1 %v2366_v26  ;;  %6213 = vmatprep.subr.mxu0 %v2476_v27 }
 0x227   : > { %6179 = vmatpush3.msra.mxu1 %v2366_v26  ;;  %6214 = vmatpush3.msra.mxu0 %v2476_v27  ;;  %v2954_v26 = vld [vmem:[#allocation9 + $0x58] sm:$0xff]  ;;  %v2977_v27 = vld [vmem:[#allocation9 + $0xd0] sm:$0xff] }
 0x228   : > { %6180 = vmatprep.subr.mxu1 %v2365_v47  ;;  %6215 = vmatprep.subr.mxu0 %v2475_v1 }
 0x229   : > { %6181 = vmatpush3.msra.mxu1 %v2365_v47  ;;  %6216 = vmatpush3.msra.mxu0 %v2475_v1  ;;  %v2953_v47 = vld [vmem:[#allocation9 + $0x50] sm:$0xff]  ;;  %v2976_v1 = vld [vmem:[#allocation9 + $0xc8] sm:$0xff] }
 0x22a   : > { %6182 = vmatprep.subr.mxu1 %v2364_v30  ;;  %6217 = vmatprep.subr.mxu0 %v2474_v29 }
 0x22b   : > { %6183 = vmatpush3.msra.mxu1 %v2364_v30  ;;  %6218 = vmatpush3.msra.mxu0 %v2474_v29  ;;  %v2952_v30 = vld [vmem:[#allocation9 + $0x48] sm:$0xff]  ;;  %v2975_v29 = vld [vmem:[#allocation9 + $0xc0] sm:$0xff] }
 0x22c   : > { %6185 = vmatmul.mubr.f32.vlgmr.msra.gmra.mxu1 %v7923_v10  ;;  %6220 = vmatmul.mubr.f32.vlgmr.msra.gmra.mxu0 %v7929_v17  ;;  %v2694_v10 = vld [vmem:[#allocation7 + $0x3e0] sm:$0xff]  ;;  %v2589_v17 = vld [vmem:[#allocation7 + $0x358] sm:$0xff] }
 0x22d   : > { %6222 = vmatprep.subr.mxu1 %v2593_v3  ;;  %6257 = vmatprep.subr.mxu0 %v2697_v18 }
 0x22e   : > { %6223 = vmatpush3.msra.mxu1 %v2593_v3  ;;  %6254 = vmatprep.mubr.f32.mxu1 %v7891_v0  ;;  %v2588_v0 = vld [vmem:[#allocation7 + $0x350] sm:$0xff]  ;;  %v2951_v3 = vld [vmem:[#allocation9 + $0x40] sm:$0xff] }
 0x22f   : > { %6258 = vmatpush3.msra.mxu0 %v2697_v18  ;;  %6289 = vmatprep.mubr.f32.mxu0 %v7894_v58  ;;  %v2692_v58 = vld [vmem:[#allocation7 + $0x3d0] sm:$0xff]  ;;  %v2974_v18 = vld [vmem:[#allocation9 + $0xb8] sm:$0xff] }
 0x230   : > { %6224 = vmatprep.subr.mxu1 %v2592_v6  ;;  %6259 = vmatprep.subr.mxu0 %v2696_v31 }
 0x231   : > { %6225 = vmatpush3.msra.mxu1 %v2592_v6  ;;  %6260 = vmatpush3.msra.mxu0 %v2696_v31  ;;  %v2950_v6 = vld [vmem:[#allocation9 + $0x38] sm:$0xff]  ;;  %v2973_v31 = vld [vmem:[#allocation9 + $0xb0] sm:$0xff] }
 0x232   : > { %6226 = vmatprep.subr.mxu1 %v2591_v49  ;;  %6261 = vmatprep.subr.mxu0 %v2695_v14 }
 0x233   : > { %6227 = vmatpush3.msra.mxu1 %v2591_v49  ;;  %6262 = vmatpush3.msra.mxu0 %v2695_v14  ;;  %v2949_v49 = vld [vmem:[#allocation9 + $0x30] sm:$0xff]  ;;  %v2972_v14 = vld [vmem:[#allocation9 + $0xa8] sm:$0xff] }
 0x234   : > { %6228 = vmatprep.subr.mxu1 %v2590_v44  ;;  %6263 = vmatprep.subr.mxu0 %v2694_v10 }
 0x235   : > { %6229 = vmatpush3.msra.mxu1 %v2590_v44  ;;  %6264 = vmatpush3.msra.mxu0 %v2694_v10  ;;  %v2948_v44 = vld [vmem:[#allocation9 + $0x28] sm:$0xff]  ;;  %v2971_v10 = vld [vmem:[#allocation9 + $0xa0] sm:$0xff] }
 0x236   : > { %6230 = vmatprep.subr.mxu1 %v2589_v17  ;;  %6265 = vmatprep.subr.mxu0 %v2693_v2 }
 0x237   : > { %6231 = vmatpush3.msra.mxu1 %v2589_v17  ;;  %6266 = vmatpush3.msra.mxu0 %v2693_v2  ;;  %v2947_v17 = vld [vmem:[#allocation9 + $0x20] sm:$0xff]  ;;  %v2970_v2 = vld [vmem:[#allocation9 + $0x98] sm:$0xff] }
 0x238   : > { %6232 = vmatprep.subr.mxu1 %v2588_v0  ;;  %6267 = vmatprep.subr.mxu0 %v2692_v58 }
 0x239   : > { %6233 = vmatpush3.msra.mxu1 %v2588_v0  ;;  %6268 = vmatpush3.msra.mxu0 %v2692_v58  ;;  %v2946_v0 = vld [vmem:[#allocation9 + $0x18] sm:$0xff]  ;;  %v2969_v58 = vld [vmem:[#allocation9 + $0x90] sm:$0xff] }
 0x23a   : > { %6234 = vmatprep.subr.mxu1 %v2587_v53  ;;  %6269 = vmatprep.subr.mxu0 %v2691_v59 }
 0x23b   : > { %6235 = vmatpush3.msra.mxu1 %v2587_v53  ;;  %6270 = vmatpush3.msra.mxu0 %v2691_v59  ;;  %v2945_v53 = vld [vmem:[#allocation9 + $0x10] sm:$0xff]  ;;  %v2968_v59 = vld [vmem:[#allocation9 + $0x88] sm:$0xff] }
 0x23c   : > { %6236 = vmatprep.subr.mxu1 %v2586_v32  ;;  %6271 = vmatprep.subr.mxu0 %v2690_v57 }
 0x23d   : > { %6237 = vmatpush3.msra.mxu1 %v2586_v32  ;;  %6272 = vmatpush3.msra.mxu0 %v2690_v57  ;;  %v2944_v32 = vld [vmem:[#allocation9 + $0x8] sm:$0xff]  ;;  %v2967_v57 = vld [vmem:[#allocation9 + $0x80] sm:$0xff] }
 0x23e   : > { %6238 = vmatprep.subr.mxu1 %v2585_v60  ;;  %6273 = vmatprep.subr.mxu0 %v2689_v4 }
 0x23f   : > { %6239 = vmatpush3.msra.mxu1 %v2585_v60  ;;  %6274 = vmatpush3.msra.mxu0 %v2689_v4  ;;  %v2943_v60 = vld [vmem:[#allocation9] sm:$0xff] }
 0x240   : > { %6240 = vmatprep.subr.mxu1 %v2584_v34  ;;  %6275 = vmatprep.subr.mxu0 %v2688_v35 }
 0x241   : > { %6241 = vmatpush3.msra.mxu1 %v2584_v34  ;;  %6276 = vmatpush3.msra.mxu0 %v2688_v35 }
 0x242   : > { %6242 = vmatprep.subr.mxu1 %v2583_v15  ;;  %6277 = vmatprep.subr.mxu0 %v2687_v21 }
 0x243   : > { %6243 = vmatpush3.msra.mxu1 %v2583_v15  ;;  %6278 = vmatpush3.msra.mxu0 %v2687_v21 }
 0x244   : > { %6244 = vmatprep.subr.mxu1 %v2582_v8  ;;  %6279 = vmatprep.subr.mxu0 %v2686_v25 }
 0x245   : > { %6245 = vmatpush3.msra.mxu1 %v2582_v8  ;;  %6280 = vmatpush3.msra.mxu0 %v2686_v25 }
 0x246   : > { %6246 = vmatprep.subr.mxu1 %v2581_v38  ;;  %6281 = vmatprep.subr.mxu0 %v2685_v33 }
 0x247   : > { %6247 = vmatpush3.msra.mxu1 %v2581_v38  ;;  %6282 = vmatpush3.msra.mxu0 %v2685_v33 }
 0x248   : > { %6248 = vmatprep.subr.mxu1 %v2580_v28  ;;  %6283 = vmatprep.subr.mxu0 %v2684_v24 }
 0x249   : > { %6249 = vmatpush3.msra.mxu1 %v2580_v28  ;;  %6284 = vmatpush3.msra.mxu0 %v2684_v24 }
 0x24a   : > { %6250 = vmatprep.subr.mxu1 %v2579_v54  ;;  %6285 = vmatprep.subr.mxu0 %v2683_v39 }
 0x24b   : > { %6251 = vmatpush3.msra.mxu1 %v2579_v54  ;;  %6286 = vmatpush3.msra.mxu0 %v2683_v39 }
 0x24c   : > { %6252 = vmatprep.subr.mxu1 %v2578_v56  ;;  %6287 = vmatprep.subr.mxu0 %v2682_v36 }
 0x24d   : > { %6253 = vmatpush3.msra.mxu1 %v2578_v56  ;;  %6288 = vmatpush3.msra.mxu0 %v2682_v36 }
 0x24e   : > { %6255 = vmatmul.mubr.f32.vlgmr.msra.gmra.mxu1 %v7926_v62  ;;  %6290 = vmatmul.mubr.f32.vlgmr.msra.gmra.mxu0 %v7932_v20  ;;  %v2796_v62 = vld [vmem:[#allocation7 + $0x450] sm:$0xff]  ;;  %v2795_v20 = vld [vmem:[#allocation7 + $0x448] sm:$0xff] }
 0x24f   : > { %6292 = vmatprep.subr.mxu1 %v2801_v7  ;;  %6324 = vmatprep.mubr.f32.mxu1 %v7909_v46  ;;  %v2794_v46 = vld [vmem:[#allocation7 + $0x440] sm:$0xff] }
 0x250   : > { %6293 = vmatpush3.msra.mxu1 %v2801_v7  ;;  %6327 = vmatprep.subr.mxu0 %v7959_v40 }
 0x251   : > { %6294 = vmatprep.subr.mxu1 %v2800_v42  ;;  %6328 = vmatpush3.msra.mxu0 %v2982_v43 }
 0x252   : > { %6295 = vmatpush3.msra.mxu1 %v2800_v42  ;;  %6329 = vmatprep.subr.mxu0 %v7959_v40 }
 0x253   : > { %6296 = vmatprep.subr.mxu1 %v2799_v48  ;;  %6330 = vmatpush3.msra.mxu0 %v2981_v23 }
 0x254   : > { %6297 = vmatpush3.msra.mxu1 %v2799_v48  ;;  %6331 = vmatprep.subr.mxu0 %v7959_v40 }
 0x255   : > { %6298 = vmatprep.subr.mxu1 %v2798_v55  ;;  %6332 = vmatpush3.msra.mxu0 %v2980_v13 }
 0x256   : > { %6299 = vmatpush3.msra.mxu1 %v2798_v55  ;;  %6333 = vmatprep.subr.mxu0 %v7959_v40 }
 0x257   : > { %6300 = vmatprep.subr.mxu1 %v2797_v51  ;;  %6359 = vmatprep.mubr.msk.f32.mxu0 %vm7305_vm2, %v7959_v40 }
 0x258   : > { %6301 = vmatpush3.msra.mxu1 %v2797_v51 }
 0x259   : > { %6302 = vmatprep.subr.mxu1 %v2796_v62 }
 0x25a   : > { %6303 = vmatpush3.msra.mxu1 %v2796_v62 }
 0x25b   : > { %6304 = vmatprep.subr.mxu1 %v2795_v20 }
 0x25c   : > { %6305 = vmatpush3.msra.mxu1 %v2795_v20 }
 0x25d   : > { %6306 = vmatprep.subr.mxu1 %v2794_v46 }
 0x25e   : > { %6307 = vmatpush3.msra.mxu1 %v2794_v46 }
 0x25f   : > { %6308 = vmatprep.subr.mxu1 %v2793_v45 }
 0x260   : > { %6309 = vmatpush3.msra.mxu1 %v2793_v45 }
 0x261   : > { %6310 = vmatprep.subr.mxu1 %v2792_v50 }
 0x262   : > { %6311 = vmatpush3.msra.mxu1 %v2792_v50 }
 0x263   : > { %6312 = vmatprep.subr.mxu1 %v2791_v5 }
 0x264   : > { %6313 = vmatpush3.msra.mxu1 %v2791_v5 }
 0x265   : > { %6314 = vmatprep.subr.mxu1 %v2790_v19 }
 0x266   : > { %6315 = vmatpush3.msra.mxu1 %v2790_v19 }
 0x267   : > { %6316 = vmatprep.subr.mxu1 %v2789_v41 }
 0x268   : > { %6317 = vmatpush3.msra.mxu1 %v2789_v41 }
 0x269   : > { %6318 = vmatprep.subr.mxu1 %v2788_v63 }
 0x26a   : > { %6319 = vmatpush3.msra.mxu1 %v2788_v63 }
 0x26b   : > { %6320 = vmatprep.subr.mxu1 %v2787_v12 }
 0x26c   : > { %6321 = vmatpush3.msra.mxu1 %v2787_v12 }
 0x26d   : > { %6322 = vmatprep.subr.mxu1 %v2786_v9 }
 0x26e   : > { %6323 = vmatpush3.msra.mxu1 %v2786_v9  ;;  %v4907_v9 = vld [vmem:[%s8482_s4] ss:$0 sm:$0xff] }
 0x26f   : > { %6325 = vmatmul.mubr.f32.vlgmr.msra.gmra.mxu1 %v7938_v52  ;;  %6362 = vmatprep.subr.mxu1 %v7959_v40  ;;  %v2979_v52 = vld [vmem:[#allocation9 + $0xe0] sm:$0xff] }
 0x270   : > { %6363 = vmatpush3.msra.mxu1 %v2958_v37  ;;  %6334 = vmatpush3.msra.mxu0 %v2979_v52 }
 0x271   : > { %6364 = vmatprep.subr.mxu1 %v7959_v40  ;;  %6335 = vmatprep.subr.mxu0 %v7959_v40 }
 0x272   : > { %6365 = vmatpush3.msra.mxu1 %v2957_v22  ;;  %6336 = vmatpush3.msra.mxu0 %v2978_v61  ;;  %v2959_v61 = vld [vmem:[#allocation2 + $0x1] ss:$2 sm:$0x3] }
 0x273   : > { %6366 = vmatprep.subr.mxu1 %v7959_v40  ;;  %6337 = vmatprep.subr.mxu0 %v7959_v40 }
 0x274   : > { %6367 = vmatpush3.msra.mxu1 %v2956_v11  ;;  %6338 = vmatpush3.msra.mxu0 %v2977_v27 }
 0x275   : > { %6368 = vmatprep.subr.mxu1 %v7959_v40  ;;  %6339 = vmatprep.subr.mxu0 %v7959_v40 }
 0x276   : > { %6369 = vmatpush3.msra.mxu1 %v2955_v16  ;;  %6340 = vmatpush3.msra.mxu0 %v2976_v1 }
 0x277   : > { %6370 = vmatprep.subr.mxu1 %v7959_v40  ;;  %6341 = vmatprep.subr.mxu0 %v7959_v40 }
 0x278   : > { %6371 = vmatpush3.msra.mxu1 %v2954_v26  ;;  %6342 = vmatpush3.msra.mxu0 %v2975_v29  ;;  %v2935_v26 = vld [vmem:[#allocation2] ss:$2 sm:$0x3]  ;;  %v3146_v29 = vld [vmem:[#allocation9 + $0x178] sm:$0xff] }
 0x279   : > { %6372 = vmatprep.subr.mxu1 %v7959_v40  ;;  %6343 = vmatprep.subr.mxu0 %v7959_v40 }
 0x27a   : > { %6373 = vmatpush3.msra.mxu1 %v2953_v47  ;;  %6344 = vmatpush3.msra.mxu0 %v2974_v18 }
 0x27b   : > { %6374 = vmatprep.subr.mxu1 %v7959_v40  ;;  %6345 = vmatprep.subr.mxu0 %v7959_v40 }
 0x27c   : > { %6375 = vmatpush3.msra.mxu1 %v2952_v30  ;;  %6346 = vmatpush3.msra.mxu0 %v2973_v31  ;;  %v3145_v31 = vld [vmem:[#allocation9 + $0x170] sm:$0xff] }
 0x27d   : > { %6376 = vmatprep.subr.mxu1 %v7959_v40  ;;  %6347 = vmatprep.subr.mxu0 %v7959_v40 }
 0x27e   : > { %6377 = vmatpush3.msra.mxu1 %v2951_v3  ;;  %6348 = vmatpush3.msra.mxu0 %v2972_v14  ;;  %v3241_v3 = vld [vmem:[#allocation9 + $0x1f8] sm:$0xff] }
 0x27f   : > { %6378 = vmatprep.subr.mxu1 %v7959_v40  ;;  %6349 = vmatprep.subr.mxu0 %v7959_v40 }
 0x280   : > { %6379 = vmatpush3.msra.mxu1 %v2950_v6  ;;  %6350 = vmatpush3.msra.mxu0 %v2971_v10 }
 0x281   : > { %6380 = vmatprep.subr.mxu1 %v7959_v40  ;;  %6351 = vmatprep.subr.mxu0 %v7959_v40 }
 0x282   : > { %6381 = vmatpush3.msra.mxu1 %v2949_v49  ;;  %6352 = vmatpush3.msra.mxu0 %v2970_v2  ;;  %v3240_v49 = vld [vmem:[#allocation9 + $0x1f0] sm:$0xff] }
 0x283   : > { %6382 = vmatprep.subr.mxu1 %v7959_v40  ;;  %6353 = vmatprep.subr.mxu0 %v7959_v40 }
 0x284   : > { %6383 = vmatpush3.msra.mxu1 %v2948_v44  ;;  %6354 = vmatpush3.msra.mxu0 %v2969_v58  ;;  %v3144_v58 = vld [vmem:[#allocation9 + $0x168] sm:$0xff] }
 0x285   : > { %6384 = vmatprep.subr.mxu1 %v7959_v40  ;;  %6355 = vmatprep.subr.mxu0 %v7959_v40 }
 0x286   : > { %6385 = vmatpush3.msra.mxu1 %v2947_v17  ;;  %6356 = vmatpush3.msra.mxu0 %v2968_v59 }
 0x287   : > { %6386 = vmatprep.subr.mxu1 %v7959_v40  ;;  %6357 = vmatprep.subr.mxu0 %v7959_v40 }
 0x288   : > { %6387 = vmatpush3.msra.mxu1 %v2946_v0  ;;  %6358 = vmatpush3.msra.mxu0 %v2967_v57 }
 0x289   : > { %6388 = vmatprep.subr.mxu1 %v7959_v40  ;;  %6394 = vmatprep.mubr.msk.f32.mxu1 %vm7305_vm2, %v7959_v40 }
 0x28a   : > { %6389 = vmatpush3.msra.mxu1 %v2945_v53  ;;  %6397 = vmatprep.subr.mxu0 %v7959_v40  ;;  %v3239_v53 = vld [vmem:[#allocation9 + $0x1e8] sm:$0xff] }
 0x28b   : > { %6390 = vmatprep.subr.mxu1 %v7959_v40 }
 0x28c   : > { %6391 = vmatpush3.msra.mxu1 %v2944_v32 }
 0x28d   : > { %6392 = vmatprep.subr.mxu1 %v7959_v40 }
 0x28e   : > { %6393 = vmatpush3.msra.mxu1 %v2943_v60  ;;  %v3143_v60 = vld [vmem:[#allocation9 + $0x160] sm:$0xff] }
 0x28f   : > { %6432 = vmatprep.subr.mxu1 %v7959_v40 }
 0x2a9   : > { %v6046_v4 = vpop.f32.mrf.mxu1  ;;  %v6081_v34 = vpop.f32.mrf.mxu0 }
 0x2aa   : > { %v2124_v8 = vadd.f32 %v6081_v34, %v6046_v4  ;;  %v3238_v4 = vld [vmem:[#allocation9 + $0x1e0] sm:$0xff] }
 0x2ab   : > { %v2043_v35 = vpop.f32.mrf.mxu1  ;;  %v2118_v21 = vpop.f32.mrf.mxu0 }
 0x2ac   : > { %v2119_v38 = vadd.f32 %v2118_v21, %v2043_v35  ;;  %v3142_v35 = vld [vmem:[#allocation9 + $0x158] sm:$0xff]  ;;  %v3141_v21 = vld [vmem:[#allocation9 + $0x150] sm:$0xff] }
 0x2ca   : > { %v6116_v15 = vpop.f32.mrf.mxu1  ;;  %v6151_v28 = vpop.f32.mrf.mxu0 }
 0x2cb   : > { %v2236_v33 = vadd.f32 %v6116_v15, %v2124_v8  ;;  %v3237_v15 = vld [vmem:[#allocation9 + $0x1d8] sm:$0xff]  ;;  %v3236_v8 = vld [vmem:[#allocation9 + $0x1d0] sm:$0xff] }
 0x2cc   : > { %v2226_v25 = vpop.f32.mrf.mxu1  ;;  %v2336_v56 = vpop.f32.mrf.mxu0 }
 0x2cd   : > { %v2235_v54 = vadd.f32 %v2226_v25, %v2119_v38  ;;  %v2346_v39 = vadd.f32 %v6151_v28, %v2236_v33  ;;  %v3140_v25 = vld [vmem:[#allocation9 + $0x148] sm:$0xff]  ;;  %v3139_v33 = vld [vmem:[#allocation9 + $0x140] sm:$0xff] }
 0x2ce   : > { %v3235_v38 = vld [vmem:[#allocation9 + $0x1c8] sm:$0xff]  ;;  %v3234_v28 = vld [vmem:[#allocation9 + $0x1c0] sm:$0xff] }
 0x2cf   : > { %v2345_v7 = vadd.f32 %v2336_v56, %v2235_v54  ;;  %v3233_v54 = vld [vmem:[#allocation9 + $0x1b8] sm:$0xff]  ;;  %v3232_v56 = vld [vmem:[#allocation9 + $0x1b0] sm:$0xff] }
 0x2ec   : > { %v6186_v24 = vpop.f32.mrf.mxu1  ;;  %v6221_v48 = vpop.f32.mrf.mxu0 }
 0x2ed   : > { %v2456_v42 = vadd.f32 %v6186_v24, %v2346_v39  ;;  %v3138_v24 = vld [vmem:[#allocation9 + $0x138] sm:$0xff]  ;;  %v3137_v39 = vld [vmem:[#allocation9 + $0x130] sm:$0xff] }
 0x2ee   : > { %v2446_v36 = vpop.f32.mrf.mxu1  ;;  %v2556_v20 = vpop.f32.mrf.mxu0 }
 0x2ef   : > { %v2455_v51 = vadd.f32 %v2446_v36, %v2345_v7  ;;  %v2566_v62 = vadd.f32 %v6221_v48, %v2456_v42  ;;  %v3136_v36 = vld [vmem:[#allocation9 + $0x128] sm:$0xff]  ;;  %v3135_v42 = vld [vmem:[#allocation9 + $0x120] sm:$0xff] }
 0x2f0   : > { %v3231_v7 = vld [vmem:[#allocation9 + $0x1a8] sm:$0xff]  ;;  %v3230_v48 = vld [vmem:[#allocation9 + $0x1a0] sm:$0xff] }
 0x2f1   : > { %v2565_v45 = vadd.f32 %v2556_v20, %v2455_v51  ;;  %v3229_v51 = vld [vmem:[#allocation9 + $0x198] sm:$0xff]  ;;  %v3228_v20 = vld [vmem:[#allocation9 + $0x190] sm:$0xff] }
 0x30e   : > { %v6256_v55 = vpop.f32.mrf.mxu1  ;;  %v6291_v5 = vpop.f32.mrf.mxu0 }
 0x30f   : > { %v2670_v50 = vadd.f32 %v6256_v55, %v2566_v62  ;;  %v3134_v55 = vld [vmem:[#allocation9 + $0x118] sm:$0xff]  ;;  %v3133_v62 = vld [vmem:[#allocation9 + $0x110] sm:$0xff] }
 0x310   : > { %v2660_v46 = vpop.f32.mrf.mxu1  ;;  %v2764_v63 = vpop.f32.mrf.mxu0 }
 0x311   : > { %v2669_v19 = vadd.f32 %v2660_v46, %v2565_v45  ;;  %v2774_v41 = vadd.f32 %v6291_v5, %v2670_v50  ;;  %v3132_v45 = vld [vmem:[#allocation9 + $0x108] sm:$0xff]  ;;  %v3131_v5 = vld [vmem:[#allocation9 + $0x100] sm:$0xff] }
 0x312   : > { %v3227_v50 = vld [vmem:[#allocation9 + $0x188] sm:$0xff] }
 0x313   : > { %v2773_v43 = vadd.f32 %v2764_v63, %v2669_v19  ;;  %v3123_v19 = vld [vmem:[#allocation2 + $0x2] ss:$2 sm:$0x3] }
 0x32f   : > { %v6326_v12 = vpop.f32.mrf.mxu1 }
 0x330   : > { %v2878_v37 = vadd.f32 %v6326_v12, %v2774_v41  ;;  %v3226_v12 = vld [vmem:[#allocation9 + $0x180] sm:$0xff] }
 0x331   : > { %v2868_v23 = vpop.f32.mrf.mxu1 }
 0x332   : > { %v2887_v22 = vadd.f32 %v4907_v9, %v2878_v37  ;;  %v2877_v13 = vadd.f32 %v2868_v23, %v2773_v43  ;;  %v3336_v23 = vld [vmem:[#allocation9 + $0x278] sm:$0xff] }
 0x334   : > { %v2889_v11 = vmax.f32 %v2887_v22, 0.0  ;;  %v2886_v52 = vadd.f32 %v4907_v9, %v2877_v13  ;;  %v3431_v22 = vld [vmem:[#allocation9 + $0x2f8] sm:$0xff]  ;;  %v3335_v13 = vld [vmem:[#allocation9 + $0x270] sm:$0xff] }
 0x336   : > { %2933 = vst [vmem:[#allocation2 + $0x13] ss:$6 sps:$4 sm:$0xff] %v2889_v11   ;;  %v2888_v16 = vmax.f32 %v2886_v52, 0.0  ;;  %v3430_v11 = vld [vmem:[#allocation9 + $0x2f0] sm:$0xff]  ;;  %v3334_v52 = vld [vmem:[#allocation9 + $0x268] sm:$0xff] }
 0x338   : > { %2931 = vst [vmem:[#allocation2 + $0x7] ss:$6 sps:$4 sm:$0xff] %v2888_v16   ;;  %v3429_v16 = vld [vmem:[#allocation9 + $0x2e8] sm:$0xff] }
 0x33d   : > { %v3504_v44 = vld [vmem:[#allocation2 + $0x18] ss:$2 sm:$0x3]  ;;  %v3598_v10 = vld [vmem:[#allocation2 + $0x19] ss:$2 sm:$0x3] }
 0x33e   : > { %v3506_v17 = vrot.slane %v3504_v44, 6  ;;  %v3600_v2 = vrot.slane %v3598_v10, 6  ;;  %v3692_v0 = vld [vmem:[#allocation2 + $0x1a] ss:$2 sm:$0x3]  ;;  %v3422_v44 = vld [vmem:[#allocation9 + $0x2b0] sm:$0xff] }
 0x33f   : > { %v2961_v27 = vld [vmem:[#allocation2 + $0xd] ss:$2 sm:$0x3]  ;;  %v2937_v47 = vld [vmem:[#allocation2 + $0xc] ss:$2 sm:$0x3] }
 0x340   : > { %v2963_v1 = vrot.slane %v2961_v27, 6  ;;  %v2939_v30 = vrot.slane %v2937_v47, 6  ;;  %v8005_v14 = vld [vmem:[#allocation2 + $0xe] ss:$2 sm:$0x3]  ;;  %v3694_v59 = vrot.slane %v3692_v0, 6  ;;  %v8010_v32 = vsel %vm2941_vm3, %v2937_v47, %v3506_v17 }
 0x341   : > { %v8013_v57 = vsel %vm2941_vm3, %v2961_v27, %v3600_v2  ;;  %v3220_v46 = vld [vmem:[#allocation2 + $0x12] ss:$2 sm:$0x3]  ;;  %v3127_v41 = vrot.slane %v8005_v14, 6  ;;  %v3332_v27 = vld [vmem:[#allocation9 + $0x258] sm:$0xff]  ;;  %v3326_v10 = vld [vmem:[#allocation9 + $0x228] sm:$0xff] }
 0x342   : > { %v2965_v18 = vsel %vm2941_vm3, %v2959_v61, %v2963_v1  ;;  %v2942_v6 = vsel %vm2941_vm3, %v2935_v26, %v2939_v30  ;;  %v8019_v34 = vsel %vm2941_vm3, %v8005_v14, %v3694_v59  ;;  %v3222_v63 = vrot.slane %v3220_v46, 6  ;;  %v3219_v9 = vld [vmem:[#allocation2 + $0x6] ss:$2 sm:$0x3]  ;;  %v3333_v61 = vld [vmem:[#allocation9 + $0x260] sm:$0xff]  ;;  %v3421_v17 = vld [vmem:[#allocation9 + $0x2a8] sm:$0xff] }
 0x343   : > { %6360 = vmatmul.mubr.f32.vlgmr.msra.gmra.mxu0 %v2965_v18  ;;  %6395 = vmatmul.mubr.f32.vlgmr.msra.gmra.mxu1 %v2942_v6  ;;  %v3129_v43 = vsel %vm2941_vm3, %v3123_v19, %v3127_v41  ;;  %v3428_v26 = vld [vmem:[#allocation9 + $0x2e0] sm:$0xff]  ;;  %v3427_v47 = vld [vmem:[#allocation9 + $0x2d8] sm:$0xff]  ;;  %v3331_v1 = vld [vmem:[#allocation9 + $0x250] sm:$0xff] }
 0x344   : > { %6398 = vmatpush3.msra.mxu0 %v3146_v29  ;;  %6433 = vmatpush3.msra.mxu1 %v3241_v3  ;;  %v3224_v37 = vsel %vm2941_vm3, %v3219_v9, %v3222_v63  ;;  %v3426_v30 = vld [vmem:[#allocation9 + $0x2d0] sm:$0xff]  ;;  %v3330_v29 = vld [vmem:[#allocation9 + $0x248] sm:$0xff]  ;;  %v3329_v18 = vld [vmem:[#allocation9 + $0x240] sm:$0xff] }
 0x345   : > { %6399 = vmatprep.subr.mxu0 %v7959_v40  ;;  %6434 = vmatprep.subr.mxu1 %v7959_v40  ;;  %v3425_v3 = vld [vmem:[#allocation9 + $0x2c8] sm:$0xff]  ;;  %v3424_v6 = vld [vmem:[#allocation9 + $0x2c0] sm:$0xff]  ;;  %v3327_v14 = vld [vmem:[#allocation9 + $0x230] sm:$0xff] }
 0x346   : > { %6400 = vmatpush3.msra.mxu0 %v3145_v31  ;;  %6435 = vmatpush3.msra.mxu1 %v3240_v49  ;;  %v3328_v31 = vld [vmem:[#allocation9 + $0x238] sm:$0xff]  ;;  %v3325_v2 = vld [vmem:[#allocation9 + $0x220] sm:$0xff]  ;;  %v3323_v59 = vld [vmem:[#allocation9 + $0x210] sm:$0xff] }
 0x347   : > { %6401 = vmatprep.subr.mxu0 %v7959_v40  ;;  %6436 = vmatprep.subr.mxu1 %v7959_v40  ;;  %v3423_v49 = vld [vmem:[#allocation9 + $0x2b8] sm:$0xff]  ;;  %v3420_v0 = vld [vmem:[#allocation9 + $0x2a0] sm:$0xff]  ;;  %v3613_v19 = vld [vmem:[#allocation9 + $0x3c8] sm:$0xff] }
 0x348   : > { %6402 = vmatpush3.msra.mxu0 %v3144_v58  ;;  %6437 = vmatpush3.msra.mxu1 %v3239_v53  ;;  %v3324_v58 = vld [vmem:[#allocation9 + $0x218] sm:$0xff]  ;;  %v3518_v41 = vld [vmem:[#allocation9 + $0x340] sm:$0xff] }
 0x349   : > { %6403 = vmatprep.subr.mxu0 %v7959_v40  ;;  %6438 = vmatprep.subr.mxu1 %v7959_v40  ;;  %v3419_v53 = vld [vmem:[#allocation9 + $0x298] sm:$0xff]  ;;  %v3612_v63 = vld [vmem:[#allocation9 + $0x3c0] sm:$0xff] }
 0x34a   : > { %6404 = vmatpush3.msra.mxu0 %v3143_v60  ;;  %6439 = vmatpush3.msra.mxu1 %v3238_v4  ;;  %v3418_v60 = vld [vmem:[#allocation9 + $0x290] sm:$0xff]  ;;  %v3315_v4 = vld [vmem:[#allocation2 + $0x13] ss:$2 sm:$0x3]  ;;  %v3615_v46 = vld [vmem:[#allocation9 + $0x3d8] sm:$0xff] }
 0x34b   : > { %6405 = vmatprep.subr.mxu0 %v7959_v40  ;;  %6440 = vmatprep.subr.mxu1 %v7959_v40  ;;  %v3611_v9 = vld [vmem:[#allocation9 + $0x3b8] sm:$0xff] }
 0x34c   : > { %6406 = vmatpush3.msra.mxu0 %v3142_v35  ;;  %6441 = vmatpush3.msra.mxu1 %v3237_v15  ;;  %v3410_v35 = vld [vmem:[#allocation2 + $0x14] ss:$2 sm:$0x3]  ;;  %v3322_v15 = vld [vmem:[#allocation9 + $0x208] sm:$0xff] }
 0x34d   : > { %6407 = vmatprep.subr.mxu0 %v7959_v40  ;;  %6442 = vmatprep.subr.mxu1 %v7959_v40 }
 0x34e   : > { %6408 = vmatpush3.msra.mxu0 %v3141_v21  ;;  %6443 = vmatpush3.msra.mxu1 %v3236_v8  ;;  %v3417_v21 = vld [vmem:[#allocation9 + $0x288] sm:$0xff]  ;;  %v3321_v8 = vld [vmem:[#allocation9 + $0x200] sm:$0xff] }
 0x34f   : > { %6409 = vmatprep.subr.mxu0 %v7959_v40  ;;  %6444 = vmatprep.subr.mxu1 %v7959_v40 }
 0x350   : > { %6410 = vmatpush3.msra.mxu0 %v3140_v25  ;;  %6445 = vmatpush3.msra.mxu1 %v3235_v38  ;;  %v3416_v25 = vld [vmem:[#allocation9 + $0x280] sm:$0xff]  ;;  %v3317_v38 = vrot.slane %v3315_v4, 6  ;;  %v3704_v4 = vld [vmem:[#allocation9 + $0x430] sm:$0xff] }
 0x351   : > { %6411 = vmatprep.subr.mxu0 %v7959_v40  ;;  %6446 = vmatprep.subr.mxu1 %v7959_v40 }
 0x352   : > { %6412 = vmatpush3.msra.mxu0 %v3139_v33  ;;  %6447 = vmatpush3.msra.mxu1 %v3234_v28  ;;  %v3412_v33 = vrot.slane %v3410_v35, 6  ;;  %v3314_v28 = vld [vmem:[#allocation2 + $0x7] ss:$2 sm:$0x3] }
 0x353   : > { %6413 = vmatprep.subr.mxu0 %v7959_v40  ;;  %6448 = vmatprep.subr.mxu1 %v7959_v40  ;;  %v3862_v35 = vld [vmem:[#allocation10 + $0xb0] sm:$0xff] }
 0x354   : > { %6414 = vmatpush3.msra.mxu0 %v3138_v24  ;;  %6449 = vmatpush3.msra.mxu1 %v3233_v54  ;;  %v3409_v24 = vld [vmem:[#allocation2 + $0x8] ss:$2 sm:$0x3]  ;;  %v3319_v54 = vsel %vm2941_vm3, %v3314_v28, %v3317_v38  ;;  %v3700_v28 = vld [vmem:[#allocation9 + $0x410] sm:$0xff] }
 0x355   : > { %6415 = vmatprep.subr.mxu0 %v7959_v40  ;;  %6450 = vmatprep.subr.mxu1 %v7959_v40  ;;  %v3701_v38 = vld [vmem:[#allocation9 + $0x418] sm:$0xff] }
 0x356   : > { %6416 = vmatpush3.msra.mxu0 %v3137_v39  ;;  %6451 = vmatpush3.msra.mxu1 %v3232_v56  ;;  %v3414_v39 = vsel %vm2941_vm3, %v3409_v24, %v3412_v33  ;;  %v3525_v56 = vld [vmem:[#allocation9 + $0x378] sm:$0xff]  ;;  %v3858_v24 = vld [vmem:[#allocation10 + $0x90] sm:$0xff] }
 0x357   : > { %6417 = vmatprep.subr.mxu0 %v7959_v40  ;;  %6452 = vmatprep.subr.mxu1 %v7959_v40  ;;  %v3859_v33 = vld [vmem:[#allocation10 + $0x98] sm:$0xff] }
 0x358   : > { %6418 = vmatpush3.msra.mxu0 %v3136_v36  ;;  %6453 = vmatpush3.msra.mxu1 %v3231_v7  ;;  %v3619_v36 = vld [vmem:[#allocation9 + $0x3f8] sm:$0xff]  ;;  %v3524_v7 = vld [vmem:[#allocation9 + $0x370] sm:$0xff] }
 0x359   : > { %6419 = vmatprep.subr.mxu0 %v7959_v40  ;;  %6454 = vmatprep.subr.mxu1 %v7959_v40 }
 0x35a   : > { %6420 = vmatpush3.msra.mxu0 %v3135_v42  ;;  %6455 = vmatpush3.msra.mxu1 %v3230_v48  ;;  %v3618_v42 = vld [vmem:[#allocation9 + $0x3f0] sm:$0xff]  ;;  %v3523_v48 = vld [vmem:[#allocation9 + $0x368] sm:$0xff] }
 0x35b   : > { %6421 = vmatprep.subr.mxu0 %v7959_v40  ;;  %6456 = vmatprep.subr.mxu1 %v7959_v40 }
 0x35c   : > { %6422 = vmatpush3.msra.mxu0 %v3134_v55  ;;  %6457 = vmatpush3.msra.mxu1 %v3229_v51  ;;  %v3617_v55 = vld [vmem:[#allocation9 + $0x3e8] sm:$0xff]  ;;  %v3522_v51 = vld [vmem:[#allocation9 + $0x360] sm:$0xff] }
 0x35d   : > { %6423 = vmatprep.subr.mxu0 %v7959_v40  ;;  %6458 = vmatprep.subr.mxu1 %v7959_v40 }
 0x35e   : > { %6424 = vmatpush3.msra.mxu0 %v3133_v62  ;;  %6459 = vmatpush3.msra.mxu1 %v3228_v20  ;;  %v3616_v62 = vld [vmem:[#allocation9 + $0x3e0] sm:$0xff]  ;;  %v3521_v20 = vld [vmem:[#allocation9 + $0x358] sm:$0xff] }
 0x35f   : > { %6425 = vmatprep.subr.mxu0 %v7959_v40  ;;  %6460 = vmatprep.subr.mxu1 %v7959_v40 }
 0x360   : > { %6426 = vmatpush3.msra.mxu0 %v3132_v45  ;;  %6461 = vmatpush3.msra.mxu1 %v3227_v50  ;;  %v3520_v45 = vld [vmem:[#allocation9 + $0x350] sm:$0xff] }
 0x361   : > { %6427 = vmatprep.subr.mxu0 %v7959_v40  ;;  %6462 = vmatprep.subr.mxu1 %v7959_v40  ;;  %v3614_v50 = vld [vmem:[#allocation9 + $0x3d0] sm:$0xff] }
 0x362   : > { %6428 = vmatpush3.msra.mxu0 %v3131_v5  ;;  %6429 = vmatprep.mubr.msk.f32.mxu0 %vm7305_vm2, %v7959_v40  ;;  %v3519_v5 = vld [vmem:[#allocation9 + $0x348] sm:$0xff] }
 0x363   : > { %6463 = vmatpush3.msra.mxu1 %v3226_v12  ;;  %6464 = vmatprep.mubr.msk.f32.mxu1 %vm7305_vm2, %v7959_v40  ;;  %v3517_v12 = vld [vmem:[#allocation9 + $0x338] sm:$0xff] }
 0x364   : > { %6430 = vmatmul.mubr.f32.vlgmr.msra.gmra.mxu0 %v3129_v43  ;;  %6465 = vmatmul.mubr.f32.vlgmr.msra.gmra.mxu1 %v3224_v37  ;;  %v3516_v43 = vld [vmem:[#allocation9 + $0x330] sm:$0xff] }
 0x365   : > { %6467 = vmatprep.subr.mxu0 %v7959_v40  ;;  %6502 = vmatprep.subr.mxu1 %v7959_v40  ;;  %v3610_v37 = vld [vmem:[#allocation9 + $0x3b0] sm:$0xff] }
 0x366   : > { %6468 = vmatpush3.msra.mxu0 %v3336_v23  ;;  %6503 = vmatpush3.msra.mxu1 %v3431_v22  ;;  %v3515_v23 = vld [vmem:[#allocation9 + $0x328] sm:$0xff] }
 0x367   : > { %6469 = vmatprep.subr.mxu0 %v7959_v40  ;;  %6504 = vmatprep.subr.mxu1 %v7959_v40  ;;  %v3609_v22 = vld [vmem:[#allocation9 + $0x3a8] sm:$0xff] }
 0x368   : > { %6470 = vmatpush3.msra.mxu0 %v3335_v13  ;;  %6505 = vmatpush3.msra.mxu1 %v3430_v11  ;;  %v3514_v13 = vld [vmem:[#allocation9 + $0x320] sm:$0xff] }
 0x369   : > { %6471 = vmatprep.subr.mxu0 %v7959_v40  ;;  %6506 = vmatprep.subr.mxu1 %v7959_v40  ;;  %v3608_v11 = vld [vmem:[#allocation9 + $0x3a0] sm:$0xff] }
 0x36a   : > { %6472 = vmatpush3.msra.mxu0 %v3334_v52  ;;  %6507 = vmatpush3.msra.mxu1 %v3429_v16  ;;  %v3513_v52 = vld [vmem:[#allocation9 + $0x318] sm:$0xff] }
 0x36b   : > { %6473 = vmatprep.subr.mxu0 %v7959_v40  ;;  %6508 = vmatprep.subr.mxu1 %v7959_v40  ;;  %v3607_v16 = vld [vmem:[#allocation9 + $0x398] sm:$0xff] }
 0x36c   : > { %6474 = vmatpush3.msra.mxu0 %v3333_v61  ;;  %6509 = vmatpush3.msra.mxu1 %v3428_v26  ;;  %v3512_v61 = vld [vmem:[#allocation9 + $0x310] sm:$0xff] }
 0x36d   : > { %6475 = vmatprep.subr.mxu0 %v7959_v40  ;;  %6510 = vmatprep.subr.mxu1 %v7959_v40  ;;  %v3606_v26 = vld [vmem:[#allocation9 + $0x390] sm:$0xff] }
 0x36e   : > { %6476 = vmatpush3.msra.mxu0 %v3332_v27  ;;  %6511 = vmatpush3.msra.mxu1 %v3427_v47  ;;  %v3511_v27 = vld [vmem:[#allocation9 + $0x308] sm:$0xff] }
 0x36f   : > { %6477 = vmatprep.subr.mxu0 %v7959_v40  ;;  %6512 = vmatprep.subr.mxu1 %v7959_v40  ;;  %v3605_v47 = vld [vmem:[#allocation9 + $0x388] sm:$0xff] }
 0x370   : > { %6478 = vmatpush3.msra.mxu0 %v3331_v1  ;;  %6513 = vmatpush3.msra.mxu1 %v3426_v30  ;;  %v3510_v1 = vld [vmem:[#allocation9 + $0x300] sm:$0xff] }
 0x371   : > { %6479 = vmatprep.subr.mxu0 %v7959_v40  ;;  %6514 = vmatprep.subr.mxu1 %v7959_v40  ;;  %v3604_v30 = vld [vmem:[#allocation9 + $0x380] sm:$0xff] }
 0x372   : > { %6480 = vmatpush3.msra.mxu0 %v3330_v29  ;;  %6515 = vmatpush3.msra.mxu1 %v3425_v3  ;;  %v8122_v29 = vld [vmem:[#allocation2 + $0x138] sm:$0xff]  ;;  %v3713_v3 = vld [vmem:[#allocation9 + $0x478] sm:$0xff] }
 0x373   : > { %6481 = vmatprep.subr.mxu0 %v7959_v40  ;;  %6516 = vmatprep.subr.mxu1 %v7959_v40 }
 0x374   : > { %6482 = vmatpush3.msra.mxu0 %v3329_v18  ;;  %6517 = vmatpush3.msra.mxu1 %v3424_v6  ;;  %v3712_v18 = vld [vmem:[#allocation9 + $0x470] sm:$0xff] }
 0x375   : > { %6483 = vmatprep.subr.mxu0 %v7959_v40  ;;  %6518 = vmatprep.subr.mxu1 %v7959_v40  ;;  %v3870_v6 = vld [vmem:[#allocation10 + $0xf0] sm:$0xff] }
 0x376   : > { %6484 = vmatpush3.msra.mxu0 %v3328_v31  ;;  %6519 = vmatpush3.msra.mxu1 %v3423_v49  ;;  %v3711_v31 = vld [vmem:[#allocation9 + $0x468] sm:$0xff]  ;;  %v3868_v49 = vld [vmem:[#allocation10 + $0xe0] sm:$0xff] }
 0x377   : > { %6485 = vmatprep.subr.mxu0 %v7959_v40  ;;  %6520 = vmatprep.subr.mxu1 %v7959_v40 }
 0x378   : > { %6486 = vmatpush3.msra.mxu0 %v3327_v14  ;;  %6521 = vmatpush3.msra.mxu1 %v3422_v44  ;;  %v3709_v14 = vld [vmem:[#allocation9 + $0x458] sm:$0xff] }
 0x379   : > { %6487 = vmatprep.subr.mxu0 %v7959_v40  ;;  %6522 = vmatprep.subr.mxu1 %v7959_v40  ;;  %v3867_v44 = vld [vmem:[#allocation10 + $0xd8] sm:$0xff] }
 0x37a   : > { %6488 = vmatpush3.msra.mxu0 %v3326_v10  ;;  %6523 = vmatpush3.msra.mxu1 %v3421_v17  ;;  %v3708_v10 = vld [vmem:[#allocation9 + $0x450] sm:$0xff] }
 0x37b   : > { %6489 = vmatprep.subr.mxu0 %v7959_v40  ;;  %6524 = vmatprep.subr.mxu1 %v7959_v40  ;;  %v3866_v17 = vld [vmem:[#allocation10 + $0xd0] sm:$0xff] }
 0x37c   : > { %6490 = vmatpush3.msra.mxu0 %v3325_v2  ;;  %6525 = vmatpush3.msra.mxu1 %v3420_v0  ;;  %v3707_v2 = vld [vmem:[#allocation9 + $0x448] sm:$0xff] }
 0x37d   : > { %6491 = vmatprep.subr.mxu0 %v7959_v40  ;;  %6526 = vmatprep.subr.mxu1 %v7959_v40  ;;  %v3865_v0 = vld [vmem:[#allocation10 + $0xc8] sm:$0xff] }
 0x37e   : > { %6492 = vmatpush3.msra.mxu0 %v3324_v58  ;;  %6527 = vmatpush3.msra.mxu1 %v3419_v53  ;;  %v3706_v58 = vld [vmem:[#allocation9 + $0x440] sm:$0xff] }
 0x37f   : > { %6493 = vmatprep.subr.mxu0 %v7959_v40  ;;  %6528 = vmatprep.subr.mxu1 %v7959_v40  ;;  %v3864_v53 = vld [vmem:[#allocation10 + $0xc0] sm:$0xff] }
 0x380   : > { %6494 = vmatpush3.msra.mxu0 %v3323_v59  ;;  %6529 = vmatpush3.msra.mxu1 %v3418_v60  ;;  %v3705_v59 = vld [vmem:[#allocation9 + $0x438] sm:$0xff] }
 0x381   : > { %6495 = vmatprep.subr.mxu0 %v7959_v40  ;;  %6530 = vmatprep.subr.mxu1 %v7959_v40  ;;  %v3863_v60 = vld [vmem:[#allocation10 + $0xb8] sm:$0xff] }
 0x382   : > { %6496 = vmatpush3.msra.mxu0 %v3322_v15  ;;  %6531 = vmatpush3.msra.mxu1 %v3417_v21  ;;  %v3703_v15 = vld [vmem:[#allocation9 + $0x428] sm:$0xff] }
 0x383   : > { %6497 = vmatprep.subr.mxu0 %v7959_v40  ;;  %6532 = vmatprep.subr.mxu1 %v7959_v40  ;;  %v3861_v21 = vld [vmem:[#allocation10 + $0xa8] sm:$0xff] }
 0x384   : > { %6498 = vmatpush3.msra.mxu0 %v3321_v8  ;;  %6499 = vmatprep.mubr.msk.f32.mxu0 %vm7305_vm2, %v7959_v40  ;;  %v3702_v8 = vld [vmem:[#allocation9 + $0x420] sm:$0xff] }
 0x385   : > { %6533 = vmatpush3.msra.mxu1 %v3416_v25  ;;  %6534 = vmatprep.mubr.msk.f32.mxu1 %vm7305_vm2, %v7959_v40  ;;  %v3860_v25 = vld [vmem:[#allocation10 + $0xa0] sm:$0xff] }
 0x386   : > { %6500 = vmatmul.mubr.f32.vlgmr.msra.gmra.mxu0 %v3319_v54  ;;  %6535 = vmatmul.mubr.f32.vlgmr.msra.gmra.mxu1 %v3414_v39  ;;  %v3699_v54 = vld [vmem:[#allocation9 + $0x408] sm:$0xff] }
 0x387   : > { %6537 = vmatprep.subr.mxu0 %v7959_v40  ;;  %6572 = vmatprep.subr.mxu1 %v7959_v40  ;;  %v3857_v39 = vld [vmem:[#allocation10 + $0x88] sm:$0xff] }
 0x388   : > { %6538 = vmatpush3.msra.mxu0 %v3525_v56  ;;  %6573 = vmatpush3.msra.mxu1 %v3619_v36  ;;  %v3698_v56 = vld [vmem:[#allocation9 + $0x400] sm:$0xff]  ;;  %v3853_v36 = vld [vmem:[#allocation10 + $0x78] sm:$0xff] }
 0x389   : > { %6539 = vmatprep.subr.mxu0 %v7959_v40  ;;  %6574 = vmatprep.subr.mxu1 %v7959_v40 }
 0x38a   : > { %6540 = vmatpush3.msra.mxu0 %v3524_v7  ;;  %6575 = vmatpush3.msra.mxu1 %v3618_v42  ;;  %v3856_v7 = vld [vmem:[#allocation10 + $0x80] sm:$0xff]  ;;  %v3852_v42 = vld [vmem:[#allocation10 + $0x70] sm:$0xff] }
 0x38b   : > { %6541 = vmatprep.subr.mxu0 %v7959_v40  ;;  %6576 = vmatprep.subr.mxu1 %v7959_v40 }
 0x38c   : > { %6542 = vmatpush3.msra.mxu0 %v3523_v48  ;;  %6577 = vmatpush3.msra.mxu1 %v3617_v55  ;;  %v3854_v48 = vld [vmem:[#allocation3 + $0x1] sm:$0x1]  ;;  %v3851_v55 = vld [vmem:[#allocation10 + $0x68] sm:$0xff] }
 0x38d   : > { %6543 = vmatprep.subr.mxu0 %v7959_v40  ;;  %6578 = vmatprep.subr.mxu1 %v7959_v40 }
 0x38e   : > { %6544 = vmatpush3.msra.mxu0 %v3522_v51  ;;  %6579 = vmatpush3.msra.mxu1 %v3616_v62  ;;  %v4029_v51 = vld [vmem:[#allocation10 + $0x178] sm:$0xff]  ;;  %v3850_v62 = vld [vmem:[#allocation10 + $0x60] sm:$0xff] }
 0x38f   : > { %6545 = vmatprep.subr.mxu0 %v7959_v40  ;;  %6580 = vmatprep.subr.mxu1 %v7959_v40 }
 0x390   : > { %6546 = vmatpush3.msra.mxu0 %v3521_v20  ;;  %6581 = vmatpush3.msra.mxu1 %v3615_v46  ;;  %v3849_v20 = vld [vmem:[#allocation10 + $0x58] sm:$0xff]  ;;  %v4027_v46 = vld [vmem:[#allocation10 + $0x168] sm:$0xff] }
 0x391   : > { %6547 = vmatprep.subr.mxu0 %v7959_v40  ;;  %6582 = vmatprep.subr.mxu1 %v7959_v40 }
 0x392   : > { %6548 = vmatpush3.msra.mxu0 %v3520_v45  ;;  %6583 = vmatpush3.msra.mxu1 %v3614_v50  ;;  %v3848_v45 = vld [vmem:[#allocation10 + $0x50] sm:$0xff]  ;;  %v4026_v50 = vld [vmem:[#allocation10 + $0x160] sm:$0xff] }
 0x393   : > { %6549 = vmatprep.subr.mxu0 %v7959_v40  ;;  %6584 = vmatprep.subr.mxu1 %v7959_v40 }
 0x394   : > { %6550 = vmatpush3.msra.mxu0 %v3519_v5  ;;  %6585 = vmatpush3.msra.mxu1 %v3613_v19  ;;  %v3847_v5 = vld [vmem:[#allocation10 + $0x48] sm:$0xff]  ;;  %v4025_v19 = vld [vmem:[#allocation10 + $0x158] sm:$0xff] }
 0x395   : > { %6551 = vmatprep.subr.mxu0 %v7959_v40  ;;  %6586 = vmatprep.subr.mxu1 %v7959_v40 }
 0x396   : > { %6552 = vmatpush3.msra.mxu0 %v3518_v41  ;;  %6587 = vmatpush3.msra.mxu1 %v3612_v63  ;;  %v3846_v41 = vld [vmem:[#allocation10 + $0x40] sm:$0xff]  ;;  %v4024_v63 = vld [vmem:[#allocation10 + $0x150] sm:$0xff] }
 0x397   : > { %6553 = vmatprep.subr.mxu0 %v7959_v40  ;;  %6588 = vmatprep.subr.mxu1 %v7959_v40 }
 0x398   : > { %6554 = vmatpush3.msra.mxu0 %v3517_v12  ;;  %6589 = vmatpush3.msra.mxu1 %v3611_v9  ;;  %v3845_v12 = vld [vmem:[#allocation10 + $0x38] sm:$0xff]  ;;  %v4023_v9 = vld [vmem:[#allocation10 + $0x148] sm:$0xff] }
 0x399   : > { %6555 = vmatprep.subr.mxu0 %v7959_v40  ;;  %6590 = vmatprep.subr.mxu1 %v7959_v40 }
 0x39a   : > { %6556 = vmatpush3.msra.mxu0 %v3516_v43  ;;  %6591 = vmatpush3.msra.mxu1 %v3610_v37  ;;  %v3844_v43 = vld [vmem:[#allocation10 + $0x30] sm:$0xff]  ;;  %v4022_v37 = vld [vmem:[#allocation10 + $0x140] sm:$0xff] }
 0x39b   : > { %6557 = vmatprep.subr.mxu0 %v7959_v40  ;;  %6592 = vmatprep.subr.mxu1 %v7959_v40 }
 0x39c   : > { %6558 = vmatpush3.msra.mxu0 %v3515_v23  ;;  %6593 = vmatpush3.msra.mxu1 %v3609_v22  ;;  %v3843_v23 = vld [vmem:[#allocation10 + $0x28] sm:$0xff]  ;;  %v4021_v22 = vld [vmem:[#allocation10 + $0x138] sm:$0xff] }
 0x39d   : > { %6559 = vmatprep.subr.mxu0 %v7959_v40  ;;  %6594 = vmatprep.subr.mxu1 %v7959_v40 }
 0x39e   : > { %6560 = vmatpush3.msra.mxu0 %v3514_v13  ;;  %6595 = vmatpush3.msra.mxu1 %v3608_v11  ;;  %v3842_v13 = vld [vmem:[#allocation10 + $0x20] sm:$0xff]  ;;  %v4020_v11 = vld [vmem:[#allocation10 + $0x130] sm:$0xff] }
 0x39f   : > { %6561 = vmatprep.subr.mxu0 %v7959_v40  ;;  %6596 = vmatprep.subr.mxu1 %v7959_v40 }
 0x3a0   : > { %6562 = vmatpush3.msra.mxu0 %v3513_v52  ;;  %6597 = vmatpush3.msra.mxu1 %v3607_v16  ;;  %v3841_v52 = vld [vmem:[#allocation10 + $0x18] sm:$0xff]  ;;  %v4019_v16 = vld [vmem:[#allocation10 + $0x128] sm:$0xff] }
 0x3a1   : > { %6563 = vmatprep.subr.mxu0 %v7959_v40  ;;  %6598 = vmatprep.subr.mxu1 %v7959_v40 }
 0x3a2   : > { %6564 = vmatpush3.msra.mxu0 %v3512_v61  ;;  %6599 = vmatpush3.msra.mxu1 %v3606_v26  ;;  %v3840_v61 = vld [vmem:[#allocation10 + $0x10] sm:$0xff]  ;;  %v4018_v26 = vld [vmem:[#allocation10 + $0x120] sm:$0xff] }
 0x3a3   : > { %6565 = vmatprep.subr.mxu0 %v7959_v40  ;;  %6600 = vmatprep.subr.mxu1 %v7959_v40  ;;  %v3871_v40 = vld [vmem:[#allocation10 + $0xf8] sm:$0xff] }
 0x3a4   : > { %6566 = vmatpush3.msra.mxu0 %v3511_v27  ;;  %6601 = vmatpush3.msra.mxu1 %v3605_v47  ;;  %v3839_v27 = vld [vmem:[#allocation10 + $0x8] sm:$0xff]  ;;  %v4017_v47 = vld [vmem:[#allocation10 + $0x118] sm:$0xff] }
 0x3a5   : > { %6567 = vmatprep.subr.mxu0 %v8122_v29  ;;  %6602 = vmatprep.subr.mxu1 %v8122_v29 }
 0x3a6   : > { %6568 = vmatpush3.msra.mxu0 %v3510_v1  ;;  %6569 = vmatprep.mubr.msk.f32.mxu0 %vm7305_vm2, %v8122_v29  ;;  %v3838_v1 = vld [vmem:[#allocation10] sm:$0xff] }
 0x3a7   : > { %6603 = vmatpush3.msra.mxu1 %v3604_v30  ;;  %6604 = vmatprep.mubr.msk.f32.mxu1 %vm7305_vm2, %v8122_v29  ;;  %v3837_v30 = vld [vmem:[#allocation3] sm:$0x1] }
 0x3a8   : > { %6570 = vmatmul.mubr.f32.vlgmr.msra.gmra.mxu0 %v8010_v32  ;;  %6605 = vmatmul.mubr.f32.vlgmr.msra.gmra.mxu1 %v8013_v57  ;;  %v3869_v32 = vld [vmem:[#allocation10 + $0xe8] sm:$0xff]  ;;  %v3710_v57 = vld [vmem:[#allocation9 + $0x460] sm:$0xff] }
 0x3a9   : > { %6607 = vmatprep.subr.mxu0 %v8122_v29  ;;  %6639 = vmatprep.mubr.msk.f32.mxu0 %vm7305_vm2, %v8122_v29 }
 0x3aa   : > { %6608 = vmatpush3.msra.mxu0 %v3713_v3  ;;  %6642 = vmatprep.subr.mxu1 %v8122_v29  ;;  %v4118_v3 = vld [vmem:[#allocation10 + $0x1f8] sm:$0xff] }
 0x3ab   : > { %6609 = vmatprep.subr.mxu0 %v8122_v29  ;;  %6643 = vmatpush3.msra.mxu1 %v3871_v40  ;;  %v4016_v40 = vld [vmem:[#allocation10 + $0x110] sm:$0xff] }
 0x3ac   : > { %6610 = vmatpush3.msra.mxu0 %v3712_v18  ;;  %6644 = vmatprep.subr.mxu1 %v8122_v29  ;;  %v4117_v18 = vld [vmem:[#allocation10 + $0x1f0] sm:$0xff] }
 0x3ad   : > { %6611 = vmatprep.subr.mxu0 %v8122_v29  ;;  %6645 = vmatpush3.msra.mxu1 %v3870_v6  ;;  %v4015_v6 = vld [vmem:[#allocation10 + $0x108] sm:$0xff] }
 0x3ae   : > { %6612 = vmatpush3.msra.mxu0 %v3711_v31  ;;  %6646 = vmatprep.subr.mxu1 %v8122_v29  ;;  %v4116_v31 = vld [vmem:[#allocation10 + $0x1e8] sm:$0xff] }
 0x3af   : > { %6613 = vmatprep.subr.mxu0 %v8122_v29  ;;  %6647 = vmatpush3.msra.mxu1 %v3869_v32  ;;  %v4014_v32 = vld [vmem:[#allocation10 + $0x100] sm:$0xff] }
 0x3b0   : > { %6614 = vmatpush3.msra.mxu0 %v3710_v57  ;;  %6648 = vmatprep.subr.mxu1 %v8122_v29  ;;  %v4115_v57 = vld [vmem:[#allocation10 + $0x1e0] sm:$0xff] }
 0x3b1   : > { %6615 = vmatprep.subr.mxu0 %v8122_v29  ;;  %6649 = vmatpush3.msra.mxu1 %v3868_v49  ;;  %v4012_v49 = vld [vmem:[#allocation3 + $0x2] sm:$0x1] }
 0x3b2   : > { %6616 = vmatpush3.msra.mxu0 %v3709_v14  ;;  %6650 = vmatprep.subr.mxu1 %v8122_v29  ;;  %v4114_v14 = vld [vmem:[#allocation10 + $0x1d8] sm:$0xff] }
 0x3b3   : > { %6617 = vmatprep.subr.mxu0 %v8122_v29  ;;  %6651 = vmatpush3.msra.mxu1 %v3867_v44  ;;  %v4207_v44 = vld [vmem:[#allocation10 + $0x278] sm:$0xff] }
 0x3b4   : > { %6618 = vmatpush3.msra.mxu0 %v3708_v10  ;;  %6652 = vmatprep.subr.mxu1 %v8122_v29  ;;  %v4113_v10 = vld [vmem:[#allocation10 + $0x1d0] sm:$0xff] }
 0x3b5   : > { %6619 = vmatprep.subr.mxu0 %v8122_v29  ;;  %6653 = vmatpush3.msra.mxu1 %v3866_v17  ;;  %v4206_v17 = vld [vmem:[#allocation10 + $0x270] sm:$0xff] }
 0x3b6   : > { %6620 = vmatpush3.msra.mxu0 %v3707_v2  ;;  %6654 = vmatprep.subr.mxu1 %v8122_v29  ;;  %v4112_v2 = vld [vmem:[#allocation10 + $0x1c8] sm:$0xff] }
 0x3b7   : > { %6621 = vmatprep.subr.mxu0 %v8122_v29  ;;  %6655 = vmatpush3.msra.mxu1 %v3865_v0  ;;  %v4205_v0 = vld [vmem:[#allocation10 + $0x268] sm:$0xff] }
 0x3b8   : > { %6622 = vmatpush3.msra.mxu0 %v3706_v58  ;;  %6656 = vmatprep.subr.mxu1 %v8122_v29  ;;  %v4111_v58 = vld [vmem:[#allocation10 + $0x1c0] sm:$0xff] }
 0x3b9   : > { %6623 = vmatprep.subr.mxu0 %v8122_v29  ;;  %6657 = vmatpush3.msra.mxu1 %v3864_v53  ;;  %v4204_v53 = vld [vmem:[#allocation10 + $0x260] sm:$0xff] }
 0x3ba   : > { %6624 = vmatpush3.msra.mxu0 %v3705_v59  ;;  %6658 = vmatprep.subr.mxu1 %v8122_v29  ;;  %v4110_v59 = vld [vmem:[#allocation10 + $0x1b8] sm:$0xff] }
 0x3bb   : > { %6625 = vmatprep.subr.mxu0 %v8122_v29  ;;  %6659 = vmatpush3.msra.mxu1 %v3863_v60  ;;  %v4203_v60 = vld [vmem:[#allocation10 + $0x258] sm:$0xff] }
 0x3bc   : > { %6626 = vmatpush3.msra.mxu0 %v3704_v4  ;;  %6660 = vmatprep.subr.mxu1 %v8122_v29  ;;  %v4109_v4 = vld [vmem:[#allocation10 + $0x1b0] sm:$0xff] }
 0x3bd   : > { %6627 = vmatprep.subr.mxu0 %v8122_v29  ;;  %6661 = vmatpush3.msra.mxu1 %v3862_v35  ;;  %v4202_v35 = vld [vmem:[#allocation10 + $0x250] sm:$0xff] }
 0x3be   : > { %6628 = vmatpush3.msra.mxu0 %v3703_v15  ;;  %6662 = vmatprep.subr.mxu1 %v8122_v29  ;;  %v4108_v15 = vld [vmem:[#allocation10 + $0x1a8] sm:$0xff] }
 0x3bf   : > { %6629 = vmatprep.subr.mxu0 %v8122_v29  ;;  %6663 = vmatpush3.msra.mxu1 %v3861_v21  ;;  %v4201_v21 = vld [vmem:[#allocation10 + $0x248] sm:$0xff] }
 0x3c0   : > { %6630 = vmatpush3.msra.mxu0 %v3702_v8  ;;  %6664 = vmatprep.subr.mxu1 %v8122_v29  ;;  %v4107_v8 = vld [vmem:[#allocation10 + $0x1a0] sm:$0xff] }
 0x3c1   : > { %6631 = vmatprep.subr.mxu0 %v8122_v29  ;;  %6665 = vmatpush3.msra.mxu1 %v3860_v25  ;;  %v4200_v25 = vld [vmem:[#allocation10 + $0x240] sm:$0xff] }
 0x3c2   : > { %6632 = vmatpush3.msra.mxu0 %v3701_v38  ;;  %6666 = vmatprep.subr.mxu1 %v8122_v29  ;;  %v4106_v38 = vld [vmem:[#allocation10 + $0x198] sm:$0xff] }
 0x3c3   : > { %6633 = vmatprep.subr.mxu0 %v8122_v29  ;;  %6667 = vmatpush3.msra.mxu1 %v3859_v33  ;;  %v4199_v33 = vld [vmem:[#allocation10 + $0x238] sm:$0xff] }
 0x3c4   : > { %6634 = vmatpush3.msra.mxu0 %v3700_v28  ;;  %6668 = vmatprep.subr.mxu1 %v8122_v29  ;;  %v4105_v28 = vld [vmem:[#allocation10 + $0x190] sm:$0xff] }
 0x3c5   : > { %6635 = vmatprep.subr.mxu0 %v8122_v29  ;;  %6669 = vmatpush3.msra.mxu1 %v3858_v24 }
 0x3c6   : > { %6636 = vmatpush3.msra.mxu0 %v3699_v54  ;;  %6670 = vmatprep.subr.mxu1 %v8122_v29 }
 0x3c7   : > { %6637 = vmatprep.subr.mxu0 %v8122_v29  ;;  %6671 = vmatpush3.msra.mxu1 %v3857_v39  ;;  %v4104_v39 = vld [vmem:[#allocation10 + $0x188] sm:$0xff] }
 0x3c8   : > { %6638 = vmatpush3.msra.mxu0 %v3698_v56  ;;  %6672 = vmatprep.subr.mxu1 %v8122_v29 }
 0x3c9   : > { %6640 = vmatmul.mubr.f32.vlgmr.msra.gmra.mxu0 %v8019_v34  ;;  %6677 = vmatprep.subr.mxu0 %v8122_v29  ;;  %v4028_v34 = vld [vmem:[#allocation10 + $0x170] sm:$0xff] }
 0x3ca   : > { %6678 = vmatpush3.msra.mxu0 %v3853_v36  ;;  %6673 = vmatpush3.msra.mxu1 %v3856_v7 }
 0x3cb   : > { %6679 = vmatprep.subr.mxu0 %v8122_v29  ;;  %6674 = vmatprep.mubr.msk.f32.mxu1 %vm7305_vm2, %v8122_v29 }
 0x3cc   : > { %6680 = vmatpush3.msra.mxu0 %v3852_v42  ;;  %6712 = vmatprep.subr.mxu1 %v8122_v29  ;;  %v4103_v42 = vld [vmem:[#allocation10 + $0x180] sm:$0xff] }
 0x3cd   : > { %6681 = vmatprep.subr.mxu0 %v8122_v29  ;;  %6675 = vmatmul.mubr.f32.vlgmr.msra.gmra.mxu1 %v3854_v48  ;;  %v4101_v48 = vld [vmem:[#allocation3 + $0x4] sm:$0x1] }
 0x3ce   : > { %6682 = vmatpush3.msra.mxu0 %v3851_v55  ;;  %6713 = vmatpush3.msra.mxu1 %v4029_v51  ;;  %v4296_v55 = vld [vmem:[#allocation10 + $0x2f8] sm:$0xff]  ;;  %v4295_v51 = vld [vmem:[#allocation10 + $0x2f0] sm:$0xff] }
 0x3cf   : > { %6683 = vmatprep.subr.mxu0 %v8122_v29  ;;  %6709 = vmatprep.mubr.msk.f32.mxu0 %vm7305_vm2, %v8122_v29 }
 0x3d0   : > { %6684 = vmatpush3.msra.mxu0 %v3850_v62  ;;  %6714 = vmatprep.subr.mxu1 %v8122_v29  ;;  %v4198_v62 = vld [vmem:[#allocation10 + $0x230] sm:$0xff] }
 0x3d1   : > { %6685 = vmatprep.subr.mxu0 %v8122_v29  ;;  %6715 = vmatpush3.msra.mxu1 %v4028_v34  ;;  %v4294_v34 = vld [vmem:[#allocation10 + $0x2e8] sm:$0xff] }
 0x3d2   : > { %6686 = vmatpush3.msra.mxu0 %v3849_v20  ;;  %6716 = vmatprep.subr.mxu1 %v8122_v29  ;;  %v4197_v20 = vld [vmem:[#allocation10 + $0x228] sm:$0xff] }
 0x3d3   : > { %6687 = vmatprep.subr.mxu0 %v8122_v29  ;;  %6717 = vmatpush3.msra.mxu1 %v4027_v46  ;;  %v4293_v46 = vld [vmem:[#allocation10 + $0x2e0] sm:$0xff] }
 0x3d4   : > { %6688 = vmatpush3.msra.mxu0 %v3848_v45  ;;  %6718 = vmatprep.subr.mxu1 %v8122_v29  ;;  %v4196_v45 = vld [vmem:[#allocation10 + $0x220] sm:$0xff] }
 0x3d5   : > { %6689 = vmatprep.subr.mxu0 %v8122_v29  ;;  %6719 = vmatpush3.msra.mxu1 %v4026_v50  ;;  %v4292_v50 = vld [vmem:[#allocation10 + $0x2d8] sm:$0xff] }
 0x3d6   : > { %6690 = vmatpush3.msra.mxu0 %v3847_v5  ;;  %6720 = vmatprep.subr.mxu1 %v8122_v29  ;;  %v4195_v5 = vld [vmem:[#allocation10 + $0x218] sm:$0xff] }
 0x3d7   : > { %6691 = vmatprep.subr.mxu0 %v8122_v29  ;;  %6721 = vmatpush3.msra.mxu1 %v4025_v19  ;;  %v4194_v19 = vld [vmem:[#allocation10 + $0x210] sm:$0xff] }
 0x3d8   : > { %6692 = vmatpush3.msra.mxu0 %v3846_v41  ;;  %6722 = vmatprep.subr.mxu1 %v8122_v29  ;;  %v4291_v41 = vld [vmem:[#allocation10 + $0x2d0] sm:$0xff] }
 0x3d9   : > { %6693 = vmatprep.subr.mxu0 %v8122_v29  ;;  %6723 = vmatpush3.msra.mxu1 %v4024_v63  ;;  %v4193_v63 = vld [vmem:[#allocation10 + $0x208] sm:$0xff] }
 0x3da   : > { %6694 = vmatpush3.msra.mxu0 %v3845_v12  ;;  %6724 = vmatprep.subr.mxu1 %v8122_v29  ;;  %v4290_v12 = vld [vmem:[#allocation10 + $0x2c8] sm:$0xff] }
 0x3db   : > { %6695 = vmatprep.subr.mxu0 %v8122_v29  ;;  %6725 = vmatpush3.msra.mxu1 %v4023_v9  ;;  %v4192_v9 = vld [vmem:[#allocation10 + $0x200] sm:$0xff] }
 0x3dc   : > { %6696 = vmatpush3.msra.mxu0 %v3844_v43  ;;  %6726 = vmatprep.subr.mxu1 %v8122_v29  ;;  %v4289_v43 = vld [vmem:[#allocation10 + $0x2c0] sm:$0xff] }
 0x3dd   : > { %6697 = vmatprep.subr.mxu0 %v8122_v29  ;;  %6727 = vmatpush3.msra.mxu1 %v4022_v37  ;;  %v4288_v37 = vld [vmem:[#allocation10 + $0x2b8] sm:$0xff] }
 0x3de   : > { %6698 = vmatpush3.msra.mxu0 %v3843_v23  ;;  %6728 = vmatprep.subr.mxu1 %v8122_v29  ;;  %v4287_v23 = vld [vmem:[#allocation10 + $0x2b0] sm:$0xff] }
 0x3df   : > { %6699 = vmatprep.subr.mxu0 %v8122_v29  ;;  %6729 = vmatpush3.msra.mxu1 %v4021_v22  ;;  %v4286_v22 = vld [vmem:[#allocation10 + $0x2a8] sm:$0xff] }
 0x3e0   : > { %6700 = vmatpush3.msra.mxu0 %v3842_v13  ;;  %6730 = vmatprep.subr.mxu1 %v8122_v29  ;;  %v4285_v13 = vld [vmem:[#allocation10 + $0x2a0] sm:$0xff] }
 0x3e1   : > { %6701 = vmatprep.subr.mxu0 %v8122_v29  ;;  %6731 = vmatpush3.msra.mxu1 %v4020_v11  ;;  %v4284_v11 = vld [vmem:[#allocation10 + $0x298] sm:$0xff] }
 0x3e2   : > { %6702 = vmatpush3.msra.mxu0 %v3841_v52  ;;  %6732 = vmatprep.subr.mxu1 %v8122_v29  ;;  %v4283_v52 = vld [vmem:[#allocation10 + $0x290] sm:$0xff] }
 0x3e3   : > { %6703 = vmatprep.subr.mxu0 %v8122_v29  ;;  %6733 = vmatpush3.msra.mxu1 %v4019_v16  ;;  %v4282_v16 = vld [vmem:[#allocation10 + $0x288] sm:$0xff] }
 0x3e4   : > { %6704 = vmatpush3.msra.mxu0 %v3840_v61  ;;  %6734 = vmatprep.subr.mxu1 %v8122_v29 }
 0x3e5   : > { %6705 = vmatprep.subr.mxu0 %v8122_v29  ;;  %6735 = vmatpush3.msra.mxu1 %v4018_v26 }
 0x3e6   : > { %6706 = vmatpush3.msra.mxu0 %v3839_v27  ;;  %6736 = vmatprep.subr.mxu1 %v8122_v29 }
 0x3e7   : > { %6707 = vmatprep.subr.mxu0 %v8122_v29  ;;  %6737 = vmatpush3.msra.mxu1 %v4017_v47  ;;  %v4281_v47 = vld [vmem:[#allocation10 + $0x280] sm:$0xff] }
 0x3e8   : > { %6708 = vmatpush3.msra.mxu0 %v3838_v1  ;;  %6738 = vmatprep.subr.mxu1 %v8122_v29 }
 0x3e9   : > { %6747 = vmatprep.subr.mxu0 %v8122_v29  ;;  %6710 = vmatmul.mubr.f32.vlgmr.msra.gmra.mxu0 %v3837_v30 }
 0x3ea   : > { %6748 = vmatpush3.msra.mxu0 %v4118_v3  ;;  %6739 = vmatpush3.msra.mxu1 %v4016_v40 }
 0x3eb   : > { %6749 = vmatprep.subr.mxu0 %v8122_v29  ;;  %6740 = vmatprep.subr.mxu1 %v8122_v29 }
 0x3ec   : > { %6750 = vmatpush3.msra.mxu0 %v4117_v18  ;;  %6741 = vmatpush3.msra.mxu1 %v4015_v6 }
 0x3ed   : > { %6751 = vmatprep.subr.mxu0 %v8122_v29  ;;  %6742 = vmatprep.subr.mxu1 %v8122_v29 }
 0x3ee   : > { %6752 = vmatpush3.msra.mxu0 %v4116_v31  ;;  %6743 = vmatpush3.msra.mxu1 %v4014_v32 }
 0x3ef   : > { %6753 = vmatprep.subr.mxu0 %v8122_v29  ;;  %6744 = vmatprep.mubr.msk.f32.mxu1 %vm7305_vm2, %v8122_v29 }
 0x3f0   : > { %6754 = vmatpush3.msra.mxu0 %v4115_v57  ;;  %6745 = vmatmul.mubr.f32.vlgmr.msra.gmra.mxu1 %v4012_v49 }
 0x3f1   : > { %6755 = vmatprep.subr.mxu0 %v8122_v29  ;;  %6779 = vmatprep.mubr.msk.f32.mxu0 %vm7305_vm2, %v8122_v29 }
 0x3f2   : > { %6756 = vmatpush3.msra.mxu0 %v4114_v14  ;;  %6782 = vmatprep.subr.mxu1 %v8122_v29 }
 0x3f3   : > { %6757 = vmatprep.subr.mxu0 %v8122_v29  ;;  %6783 = vmatpush3.msra.mxu1 %v4207_v44 }
 0x3f4   : > { %6758 = vmatpush3.msra.mxu0 %v4113_v10  ;;  %6784 = vmatprep.subr.mxu1 %v8122_v29 }
 0x3f5   : > { %6759 = vmatprep.subr.mxu0 %v8122_v29  ;;  %6785 = vmatpush3.msra.mxu1 %v4206_v17 }
 0x3f6   : > { %6760 = vmatpush3.msra.mxu0 %v4112_v2  ;;  %6786 = vmatprep.subr.mxu1 %v8122_v29 }
 0x3f7   : > { %6761 = vmatprep.subr.mxu0 %v8122_v29  ;;  %6787 = vmatpush3.msra.mxu1 %v4205_v0 }
 0x3f8   : > { %6762 = vmatpush3.msra.mxu0 %v4111_v58  ;;  %6788 = vmatprep.subr.mxu1 %v8122_v29  ;;  %v4908_v58 = vld [vmem:[%s8484_s6] ss:$0 sm:$0xff] }
 0x3f9   : > { %6763 = vmatprep.subr.mxu0 %v8122_v29  ;;  %6789 = vmatpush3.msra.mxu1 %v4204_v53 }
 0x3fa   : > { %6764 = vmatpush3.msra.mxu0 %v4110_v59  ;;  %6790 = vmatprep.subr.mxu1 %v8122_v29 }
 0x3fb   : > { %6765 = vmatprep.subr.mxu0 %v8122_v29  ;;  %6791 = vmatpush3.msra.mxu1 %v4203_v60 }
 0x3fc   : > { %6766 = vmatpush3.msra.mxu0 %v4109_v4  ;;  %6792 = vmatprep.subr.mxu1 %v8122_v29 }
 0x3fd   : > { %6767 = vmatprep.subr.mxu0 %v8122_v29  ;;  %6793 = vmatpush3.msra.mxu1 %v4202_v35 }
 0x3fe   : > { %6768 = vmatpush3.msra.mxu0 %v4108_v15  ;;  %6794 = vmatprep.subr.mxu1 %v8122_v29 }
 0x3ff   : > { %6769 = vmatprep.subr.mxu0 %v8122_v29  ;;  %6795 = vmatpush3.msra.mxu1 %v4201_v21  ;;  %v4385_v21 = vld [vmem:[#allocation10 + $0x378] sm:$0xff] }
 0x400   : > { %6770 = vmatpush3.msra.mxu0 %v4107_v8  ;;  %6796 = vmatprep.subr.mxu1 %v8122_v29  ;;  %v4474_v8 = vld [vmem:[#allocation10 + $0x3f8] sm:$0xff] }
 0x401   : > { %6771 = vmatprep.subr.mxu0 %v8122_v29  ;;  %6797 = vmatpush3.msra.mxu1 %v4200_v25 }
 0x402   : > { %6772 = vmatpush3.msra.mxu0 %v4106_v38  ;;  %6798 = vmatprep.subr.mxu1 %v8122_v29 }
 0x403   : > { %v3049_v24 = vpop.f32.mrf.mxu0  ;;  %v3119_v54 = vpop.f32.mrf.mxu1  ;;  %6773 = vmatprep.subr.mxu0 %v8122_v29  ;;  %6799 = vmatpush3.msra.mxu1 %v4199_v33  ;;  %v4384_v33 = vld [vmem:[#allocation10 + $0x370] sm:$0xff] }
 0x404   : > { %v8230_v56 = vadd.f32 %v3119_v54, %v3049_v24  ;;  %6774 = vmatpush3.msra.mxu0 %v4105_v28  ;;  %6800 = vmatprep.subr.mxu1 %v8122_v29  ;;  %v4473_v28 = vld [vmem:[#allocation10 + $0x3f0] sm:$0xff]  ;;  %v4383_v24 = vld [vmem:[#allocation10 + $0x368] sm:$0xff] }
 0x405   : > { %v6361_v36 = vpop.f32.mrf.mxu0  ;;  %v6396_v7 = vpop.f32.mrf.mxu1  ;;  %6775 = vmatprep.subr.mxu0 %v8122_v29  ;;  %6814 = vmatprep.mubr.msk.f32.mxu1 %vm7305_vm2, %v8122_v29  ;;  %v4472_v54 = vld [vmem:[#allocation10 + $0x3e8] sm:$0xff] }
 0x406   : > { %6776 = vmatpush3.msra.mxu0 %v4104_v39  ;;  %6801 = vmatpush3.msra.mxu1 %v4198_v62  ;;  %v4382_v39 = vld [vmem:[#allocation10 + $0x360] sm:$0xff]  ;;  %v4381_v36 = vld [vmem:[#allocation10 + $0x358] sm:$0xff] }
 0x407   : > { %6777 = vmatprep.subr.mxu0 %v8122_v29  ;;  %6802 = vmatprep.subr.mxu1 %v8122_v29  ;;  %v4470_v7 = vld [vmem:[#allocation10 + $0x3d8] sm:$0xff]  ;;  %v4378_v62 = vld [vmem:[#allocation10 + $0x340] sm:$0xff] }
 0x408   : > { %6778 = vmatpush3.msra.mxu0 %v4103_v42  ;;  %6803 = vmatpush3.msra.mxu1 %v4197_v20  ;;  %v4380_v42 = vld [vmem:[#allocation10 + $0x350] sm:$0xff]  ;;  %v4377_v20 = vld [vmem:[#allocation10 + $0x338] sm:$0xff] }
 0x409   : > { %6780 = vmatmul.mubr.f32.vlgmr.msra.gmra.mxu0 %v4101_v48  ;;  %6817 = vmatprep.subr.mxu0 %v8122_v29  ;;  %v4469_v48 = vld [vmem:[#allocation10 + $0x3d0] sm:$0xff] }
 0x40a   : > { %6818 = vmatpush3.msra.mxu0 %v4296_v55  ;;  %6804 = vmatprep.subr.mxu1 %v8122_v29  ;;  %v4379_v55 = vld [vmem:[#allocation10 + $0x348] sm:$0xff] }
 0x40b   : > { %6819 = vmatprep.subr.mxu0 %v8122_v29  ;;  %6805 = vmatpush3.msra.mxu1 %v4196_v45  ;;  %v4376_v45 = vld [vmem:[#allocation10 + $0x330] sm:$0xff] }
 0x40c   : > { %6820 = vmatpush3.msra.mxu0 %v4295_v51  ;;  %6806 = vmatprep.subr.mxu1 %v8122_v29  ;;  %v4468_v51 = vld [vmem:[#allocation10 + $0x3c8] sm:$0xff] }
 0x40d   : > { %6821 = vmatprep.subr.mxu0 %v8122_v29  ;;  %6807 = vmatpush3.msra.mxu1 %v4195_v5 }
 0x40e   : > { %6822 = vmatpush3.msra.mxu0 %v4294_v34  ;;  %6808 = vmatprep.subr.mxu1 %v8122_v29  ;;  %v4467_v34 = vld [vmem:[#allocation10 + $0x3c0] sm:$0xff] }
 0x40f   : > { %6823 = vmatprep.subr.mxu0 %v8122_v29  ;;  %6809 = vmatpush3.msra.mxu1 %v4194_v19  ;;  %v4375_v19 = vld [vmem:[#allocation10 + $0x328] sm:$0xff] }
 0x410   : > { %6824 = vmatpush3.msra.mxu0 %v4293_v46  ;;  %6810 = vmatprep.subr.mxu1 %v8122_v29  ;;  %v4466_v46 = vld [vmem:[#allocation10 + $0x3b8] sm:$0xff] }
 0x411   : > { %6825 = vmatprep.subr.mxu0 %v8122_v29  ;;  %6811 = vmatpush3.msra.mxu1 %v4193_v63 }
 0x412   : > { %6826 = vmatpush3.msra.mxu0 %v4292_v50  ;;  %6812 = vmatprep.subr.mxu1 %v8122_v29  ;;  %v4465_v50 = vld [vmem:[#allocation10 + $0x3b0] sm:$0xff] }
 0x413   : > { %6827 = vmatprep.subr.mxu0 %v8122_v29  ;;  %6813 = vmatpush3.msra.mxu1 %v4192_v9  ;;  %v4374_v9 = vld [vmem:[#allocation10 + $0x320] sm:$0xff] }
 0x414   : > { %6828 = vmatpush3.msra.mxu0 %v4291_v41  ;;  %6849 = vmatprep.mubr.msk.f32.mxu0 %vm7305_vm2, %v8122_v29  ;;  %v4464_v41 = vld [vmem:[#allocation10 + $0x3a8] sm:$0xff] }
 0x415   : > { %6829 = vmatprep.subr.mxu0 %v8122_v29  ;;  %6852 = vmatprep.subr.mxu1 %v8122_v29 }
 0x416   : > { %6830 = vmatpush3.msra.mxu0 %v4290_v12 }
 0x417   : > { %6831 = vmatprep.subr.mxu0 %v8122_v29 }
 0x418   : > { %6832 = vmatpush3.msra.mxu0 %v4289_v43  ;;  %v4463_v43 = vld [vmem:[#allocation10 + $0x3a0] sm:$0xff] }
 0x419   : > { %6833 = vmatprep.subr.mxu0 %v8122_v29 }
 0x41a   : > { %6834 = vmatpush3.msra.mxu0 %v4288_v37  ;;  %v4373_v37 = vld [vmem:[#allocation10 + $0x318] sm:$0xff] }
 0x41b   : > { %6835 = vmatprep.subr.mxu0 %v8122_v29 }
 0x41c   : > { %6836 = vmatpush3.msra.mxu0 %v4287_v23  ;;  %v4462_v23 = vld [vmem:[#allocation10 + $0x398] sm:$0xff] }
 0x41d   : > { %6837 = vmatprep.subr.mxu0 %v8122_v29 }
 0x41e   : > { %6838 = vmatpush3.msra.mxu0 %v4286_v22  ;;  %v4372_v22 = vld [vmem:[#allocation10 + $0x310] sm:$0xff] }
 0x41f   : > { %6839 = vmatprep.subr.mxu0 %v8122_v29 }
 0x420   : > { %6840 = vmatpush3.msra.mxu0 %v4285_v13  ;;  %v4461_v13 = vld [vmem:[#allocation10 + $0x390] sm:$0xff] }
 0x421   : > { %6841 = vmatprep.subr.mxu0 %v8122_v29 }
 0x422   : > { %6842 = vmatpush3.msra.mxu0 %v4284_v11 }
 0x423   : > { %6843 = vmatprep.subr.mxu0 %v8122_v29 }
 0x424   : > { %v3213_v61 = vpop.f32.mrf.mxu0  ;;  %v3308_v26 = vpop.f32.mrf.mxu1  ;;  %6844 = vmatpush3.msra.mxu0 %v4283_v52 }
 0x425   : > { %v3217_v27 = vadd.f32 %v3213_v61, %v8230_v56  ;;  %6845 = vmatprep.subr.mxu0 %v8122_v29  ;;  %v4471_v56 = vld [vmem:[#allocation10 + $0x3e0] sm:$0xff]  ;;  %v4460_v61 = vld [vmem:[#allocation10 + $0x388] sm:$0xff] }
 0x426   : > { %v6431_v1 = vpop.f32.mrf.mxu0  ;;  %v6466_v30 = vpop.f32.mrf.mxu1  ;;  %6846 = vmatpush3.msra.mxu0 %v4282_v16  ;;  %v4371_v16 = vld [vmem:[#allocation10 + $0x308] sm:$0xff] }
 0x427   : > { %v3312_v3 = vadd.f32 %v3308_v26, %v3217_v27  ;;  %6847 = vmatprep.subr.mxu0 %v8122_v29  ;;  %v4370_v27 = vld [vmem:[#allocation10 + $0x300] sm:$0xff] }
 0x428   : > { %6848 = vmatpush3.msra.mxu0 %v4281_v47  ;;  %v4459_v47 = vld [vmem:[#allocation10 + $0x380] sm:$0xff] }
 0x429   : > { %6887 = vmatprep.subr.mxu0 %v8122_v29  ;;  %v4368_v1 = vld [vmem:[#allocation3 + $0x8] sm:$0x1] }
 0x446   : > { %v3403_v40 = vpop.f32.mrf.mxu0  ;;  %v3498_v18 = vpop.f32.mrf.mxu1 }
 0x447   : > { %v3407_v44 = vadd.f32 %v3403_v40, %v3312_v3  ;;  %v4563_v3 = vld [vmem:[#allocation10 + $0x478] sm:$0xff]  ;;  %v4562_v40 = vld [vmem:[#allocation10 + $0x470] sm:$0xff] }
 0x448   : > { %v6501_v6 = vpop.f32.mrf.mxu0  ;;  %v6536_v31 = vpop.f32.mrf.mxu1 }
 0x449   : > { %v3502_v10 = vadd.f32 %v3498_v18, %v3407_v44  ;;  %v4561_v18 = vld [vmem:[#allocation10 + $0x468] sm:$0xff]  ;;  %v4560_v31 = vld [vmem:[#allocation10 + $0x460] sm:$0xff] }
 0x44a   : > { %v8309_v6 = vld [vmem:[#allocation2 + $0x138] sm:$0xff] }
 0x468   : > { %v3592_v32 = vpop.f32.mrf.mxu0  ;;  %v3686_v57 = vpop.f32.mrf.mxu1 }
 0x469   : > { %v3596_v17 = vadd.f32 %v3592_v32, %v3502_v10  ;;  %v4559_v32 = vld [vmem:[#allocation10 + $0x458] sm:$0xff]  ;;  %v4554_v10 = vld [vmem:[#allocation10 + $0x430] sm:$0xff] }
 0x46a   : > { %v6571_v49 = vpop.f32.mrf.mxu0  ;;  %v6606_v14 = vpop.f32.mrf.mxu1 }
 0x46b   : > { %v3690_v2 = vadd.f32 %v3686_v57, %v3596_v17  ;;  %v4558_v57 = vld [vmem:[#allocation10 + $0x450] sm:$0xff]  ;;  %v4556_v49 = vld [vmem:[#allocation10 + $0x440] sm:$0xff]  ;;  %v4555_v14 = vld [vmem:[#allocation10 + $0x438] sm:$0xff] }
 0x489   : > { %v3780_v0 = vpop.f32.mrf.mxu0 }
 0x48a   : > { %v3784_v53 = vadd.f32 %v3780_v0, %v3690_v2  ;;  %v4553_v0 = vld [vmem:[#allocation10 + $0x428] sm:$0xff] }
 0x48b   : > { %v6641_v59 = vpop.f32.mrf.mxu0 }
 0x48c   : > { %v3792_v60 = vadd.f32 %v4908_v58, %v3784_v53  ;;  %v4552_v58 = vld [vmem:[#allocation10 + $0x420] sm:$0xff]  ;;  %v4551_v53 = vld [vmem:[#allocation10 + $0x418] sm:$0xff]  ;;  %v4550_v59 = vld [vmem:[#allocation10 + $0x410] sm:$0xff] }
 0x48d   : > { %v8267_v4 = vpop.f32.mrf.mxu1 }
 0x48e   : > { %v3793_v35 = vmax.f32 %v3792_v60, 0.0  ;;  %v4549_v60 = vld [vmem:[#allocation10 + $0x408] sm:$0xff] }
 0x48f   : > { %v6676_v15 = vpop.f32.mrf.mxu1 }
 0x490   : > { %3835 = vst [vmem:[#allocation3 + $0x5] sm:$0x3] %v3793_v35  ;;  %3836 = vst [vmem:[#allocation3 + $0x7] sm:$0xc] %v3793_v35  ;;  %v4658_v15 = vld [vmem:[%s8487_s9 + $0x78] sm:$0xff] }
 0x497   : > { %v4190_v25 = vld [vmem:[#allocation3 + $0x5] sm:$0x1]  ;;  %v4279_v38 = vld [vmem:[#allocation3 + $0x6] sm:$0x1]  ;;  %v4457_v30 = vld [vmem:[#allocation3 + $0x9] sm:$0x1] }
 0x498   : > { %6815 = vmatmul.mubr.f32.vlgmr.msra.gmra.mxu1 %v4190_v25  ;;  %6850 = vmatmul.mubr.f32.vlgmr.msra.gmra.mxu0 %v4279_v38  ;;  %v4546_v35 = vld [vmem:[#allocation3 + $0xa] sm:$0x1]  ;;  %v4655_v25 = vld [vmem:[%s8487_s9 + $0x60] sm:$0xff]  ;;  %v4654_v38 = vld [vmem:[%s8487_s9 + $0x58] sm:$0xff] }
 0x499   : > { %6853 = vmatpush3.msra.mxu1 %v4385_v21  ;;  %6888 = vmatpush3.msra.mxu0 %v4474_v8  ;;  %v4657_v21 = vld [vmem:[%s8487_s9 + $0x70] sm:$0xff]  ;;  %v4656_v8 = vld [vmem:[%s8487_s9 + $0x68] sm:$0xff] }
 0x49a   : > { %6854 = vmatprep.subr.mxu1 %v8122_v29  ;;  %6889 = vmatprep.subr.mxu0 %v8122_v29 }
 0x49b   : > { %6855 = vmatpush3.msra.mxu1 %v4384_v33  ;;  %6890 = vmatpush3.msra.mxu0 %v4473_v28  ;;  %v4653_v33 = vld [vmem:[%s8487_s9 + $0x50] sm:$0xff]  ;;  %v4652_v28 = vld [vmem:[%s8487_s9 + $0x48] sm:$0xff] }
 0x49c   : > { %6856 = vmatprep.subr.mxu1 %v8122_v29  ;;  %6891 = vmatprep.subr.mxu0 %v8122_v29 }
 0x49d   : > { %6857 = vmatpush3.msra.mxu1 %v4383_v24  ;;  %6892 = vmatpush3.msra.mxu0 %v4472_v54  ;;  %v4651_v24 = vld [vmem:[%s8487_s9 + $0x40] sm:$0xff]  ;;  %v4650_v54 = vld [vmem:[%s8487_s9 + $0x38] sm:$0xff] }
 0x49e   : > { %6858 = vmatprep.subr.mxu1 %v8122_v29  ;;  %6893 = vmatprep.subr.mxu0 %v8122_v29 }
 0x49f   : > { %6859 = vmatpush3.msra.mxu1 %v4382_v39  ;;  %6894 = vmatpush3.msra.mxu0 %v4471_v56  ;;  %v4649_v39 = vld [vmem:[%s8487_s9 + $0x30] sm:$0xff]  ;;  %v4648_v56 = vld [vmem:[%s8487_s9 + $0x28] sm:$0xff] }
 0x4a0   : > { %6860 = vmatprep.subr.mxu1 %v8122_v29  ;;  %6895 = vmatprep.subr.mxu0 %v8122_v29 }
 0x4a1   : > { %6861 = vmatpush3.msra.mxu1 %v4381_v36  ;;  %6896 = vmatpush3.msra.mxu0 %v4470_v7  ;;  %v4647_v36 = vld [vmem:[%s8487_s9 + $0x20] sm:$0xff]  ;;  %v4646_v7 = vld [vmem:[%s8487_s9 + $0x18] sm:$0xff] }
 0x4a2   : > { %6862 = vmatprep.subr.mxu1 %v8122_v29  ;;  %6897 = vmatprep.subr.mxu0 %v8122_v29 }
 0x4a3   : > { %6863 = vmatpush3.msra.mxu1 %v4380_v42  ;;  %6898 = vmatpush3.msra.mxu0 %v4469_v48  ;;  %v4645_v42 = vld [vmem:[%s8487_s9 + $0x10] sm:$0xff]  ;;  %v4644_v48 = vld [vmem:[%s8487_s9 + $0x8] sm:$0xff] }
 0x4a4   : > { %6864 = vmatprep.subr.mxu1 %v8122_v29  ;;  %6899 = vmatprep.subr.mxu0 %v8122_v29 }
 0x4a5   : > { %6865 = vmatpush3.msra.mxu1 %v4379_v55  ;;  %6900 = vmatpush3.msra.mxu0 %v4468_v51  ;;  %v4643_v55 = vld [vmem:[%s8487_s9] sm:$0xff] }
 0x4a6   : > { %6866 = vmatprep.subr.mxu1 %v8122_v29  ;;  %6901 = vmatprep.subr.mxu0 %v8122_v29 }
 0x4a7   : > { %6867 = vmatpush3.msra.mxu1 %v4378_v62  ;;  %6902 = vmatpush3.msra.mxu0 %v4467_v34 }
 0x4a8   : > { %6868 = vmatprep.subr.mxu1 %v8122_v29  ;;  %6903 = vmatprep.subr.mxu0 %v8122_v29 }
 0x4a9   : > { %6869 = vmatpush3.msra.mxu1 %v4377_v20  ;;  %6904 = vmatpush3.msra.mxu0 %v4466_v46  ;;  %v4008_v5 = vpop.f32.mrf.mxu0 }
 0x4aa   : > { %6870 = vmatprep.subr.mxu1 %v8122_v29  ;;  %6905 = vmatprep.subr.mxu0 %v8122_v29  ;;  %v4009_v63 = vadd.f32 %v4008_v5, %v8267_v4  ;;  %v4548_v4 = vld [vmem:[#allocation10 + $0x400] sm:$0xff] }
 0x4ab   : > { %6871 = vmatpush3.msra.mxu1 %v4376_v45  ;;  %6906 = vmatpush3.msra.mxu0 %v4465_v50  ;;  %v6711_v12 = vpop.f32.mrf.mxu0 }
 0x4ac   : > { %6872 = vmatprep.subr.mxu1 %v8122_v29  ;;  %6907 = vmatprep.subr.mxu0 %v8122_v29 }
 0x4ad   : > { %6873 = vmatpush3.msra.mxu1 %v4375_v19  ;;  %6908 = vmatpush3.msra.mxu0 %v4464_v41 }
 0x4ae   : > { %6874 = vmatprep.subr.mxu1 %v8122_v29  ;;  %6909 = vmatprep.subr.mxu0 %v8122_v29 }
 0x4af   : > { %6875 = vmatpush3.msra.mxu1 %v4374_v9  ;;  %6910 = vmatpush3.msra.mxu0 %v4463_v43  ;;  %v4635_v43 = vld [vmem:[%s8486_s8] sm:$0x1] }
 0x4b0   : > { %6876 = vmatprep.subr.mxu1 %v8122_v29  ;;  %6911 = vmatprep.subr.mxu0 %v8122_v29  ;;  %v4096_v11 = vpop.f32.mrf.mxu1 }
 0x4b1   : > { %6877 = vmatpush3.msra.mxu1 %v4373_v37  ;;  %6912 = vmatpush3.msra.mxu0 %v4462_v23  ;;  %v4100_v52 = vadd.f32 %v4096_v11, %v4009_v63 }
 0x4b2   : > { %6878 = vmatprep.subr.mxu1 %v8122_v29  ;;  %6913 = vmatprep.subr.mxu0 %v8122_v29  ;;  %v6746_v26 = vpop.f32.mrf.mxu1 }
 0x4b3   : > { %6879 = vmatpush3.msra.mxu1 %v4372_v22  ;;  %6914 = vmatpush3.msra.mxu0 %v4461_v13 }
 0x4b4   : > { %6880 = vmatprep.subr.mxu1 %v8122_v29  ;;  %6915 = vmatprep.subr.mxu0 %v8122_v29 }
 0x4b5   : > { %6881 = vmatpush3.msra.mxu1 %v4371_v16  ;;  %6916 = vmatpush3.msra.mxu0 %v4460_v61  ;;  %v4659_v61 = vld [vmem:[%s8488_s10] sm:$0x1] }
 0x4b6   : > { %6882 = vmatprep.subr.mxu1 %v8122_v29  ;;  %6917 = vmatprep.subr.mxu0 %v8122_v29 }
 0x4b7   : > { %6883 = vmatpush3.msra.mxu1 %v4370_v27  ;;  %6884 = vmatprep.mubr.msk.f32.mxu1 %vm7305_vm2, %v8122_v29 }
 0x4b8   : > { %6918 = vmatpush3.msra.mxu0 %v4459_v47  ;;  %6919 = vmatprep.mubr.msk.f32.mxu0 %vm7305_vm2, %v8122_v29 }
 0x4b9   : > { %6885 = vmatmul.mubr.f32.vlgmr.msra.gmra.mxu1 %v4368_v1  ;;  %6920 = vmatmul.mubr.f32.vlgmr.msra.gmra.mxu0 %v4457_v30 }
 0x4ba   : > { %6922 = vmatprep.subr.mxu1 %v8122_v29  ;;  %6954 = vmatprep.mubr.msk.f32.mxu1 %vm7305_vm2, %v8122_v29 }
 0x4bb   : > { %6923 = vmatpush3.msra.mxu1 %v4563_v3  ;;  %6957 = vmatprep.subr.mxu0 %v8122_v29 }
 0x4bc   : > { %6924 = vmatprep.subr.mxu1 %v8122_v29  ;;  %6989 = vmatprep.mubr.msk.f32.mxu0 %vm7305_vm2, %v8309_v6  ;;  %v4557_v29 = vld [vmem:[#allocation10 + $0x448] sm:$0xff] }
 0x4bd   : > { %6925 = vmatpush3.msra.mxu1 %v4562_v40  ;;  %6958 = vmatpush3.msra.mxu0 %v4658_v15 }
 0x4be   : > { %6926 = vmatprep.subr.mxu1 %v8309_v6  ;;  %6959 = vmatprep.subr.mxu0 %v8309_v6 }
 0x4bf   : > { %6927 = vmatpush3.msra.mxu1 %v4561_v18  ;;  %6960 = vmatpush3.msra.mxu0 %v4657_v21 }
 0x4c0   : > { %6928 = vmatprep.subr.mxu1 %v8309_v6  ;;  %6961 = vmatprep.subr.mxu0 %v8309_v6 }
 0x4c1   : > { %6929 = vmatpush3.msra.mxu1 %v4560_v31  ;;  %6962 = vmatpush3.msra.mxu0 %v4656_v8 }
 0x4c2   : > { %6930 = vmatprep.subr.mxu1 %v8309_v6  ;;  %6963 = vmatprep.subr.mxu0 %v8309_v6 }
 0x4c3   : > { %6931 = vmatpush3.msra.mxu1 %v4559_v32  ;;  %6964 = vmatpush3.msra.mxu0 %v4655_v25 }
 0x4c4   : > { %6932 = vmatprep.subr.mxu1 %v8309_v6  ;;  %6965 = vmatprep.subr.mxu0 %v8309_v6 }
 0x4c5   : > { %6933 = vmatpush3.msra.mxu1 %v4558_v57  ;;  %6966 = vmatpush3.msra.mxu0 %v4654_v38 }
 0x4c6   : > { %6934 = vmatprep.subr.mxu1 %v8309_v6  ;;  %6967 = vmatprep.subr.mxu0 %v8309_v6 }
 0x4c7   : > { %6935 = vmatpush3.msra.mxu1 %v4557_v29  ;;  %6968 = vmatpush3.msra.mxu0 %v4653_v33 }
 0x4c8   : > { %6936 = vmatprep.subr.mxu1 %v8309_v6  ;;  %6969 = vmatprep.subr.mxu0 %v8309_v6 }
 0x4c9   : > { %6937 = vmatpush3.msra.mxu1 %v4556_v49  ;;  %v4185_v44 = vpop.f32.mrf.mxu0  ;;  %6970 = vmatpush3.msra.mxu0 %v4652_v28 }
 0x4ca   : > { %6938 = vmatprep.subr.mxu1 %v8309_v6  ;;  %v8320_v17 = vadd.f32 %v4185_v44, %v4100_v52  ;;  %6971 = vmatprep.subr.mxu0 %v8309_v6 }
 0x4cb   : > { %6939 = vmatpush3.msra.mxu1 %v4555_v14  ;;  %v6781_v2 = vpop.f32.mrf.mxu0  ;;  %6972 = vmatpush3.msra.mxu0 %v4651_v24 }
 0x4cc   : > { %6940 = vmatprep.subr.mxu1 %v8309_v6  ;;  %6973 = vmatprep.subr.mxu0 %v8309_v6 }
 0x4cd   : > { %6941 = vmatpush3.msra.mxu1 %v4554_v10  ;;  %6974 = vmatpush3.msra.mxu0 %v4650_v54 }
 0x4ce   : > { %6942 = vmatprep.subr.mxu1 %v8309_v6  ;;  %6975 = vmatprep.subr.mxu0 %v8309_v6 }
 0x4cf   : > { %6943 = vmatpush3.msra.mxu1 %v4553_v0  ;;  %6976 = vmatpush3.msra.mxu0 %v4649_v39 }
 0x4d0   : > { %6944 = vmatprep.subr.mxu1 %v8309_v6  ;;  %6977 = vmatprep.subr.mxu0 %v8309_v6 }
 0x4d1   : > { %6945 = vmatpush3.msra.mxu1 %v4552_v58  ;;  %6978 = vmatpush3.msra.mxu0 %v4648_v56 }
 0x4d2   : > { %6946 = vmatprep.subr.mxu1 %v8309_v6  ;;  %6979 = vmatprep.subr.mxu0 %v8309_v6 }
 0x4d3   : > { %6947 = vmatpush3.msra.mxu1 %v4551_v53  ;;  %6980 = vmatpush3.msra.mxu0 %v4647_v36 }
 0x4d4   : > { %6948 = vmatprep.subr.mxu1 %v8309_v6  ;;  %6981 = vmatprep.subr.mxu0 %v8309_v6 }
 0x4d5   : > { %6949 = vmatpush3.msra.mxu1 %v4550_v59  ;;  %6982 = vmatpush3.msra.mxu0 %v4646_v7 }
 0x4d6   : > { %6950 = vmatprep.subr.mxu1 %v8309_v6  ;;  %6983 = vmatprep.subr.mxu0 %v8309_v6 }
 0x4d7   : > { %6951 = vmatpush3.msra.mxu1 %v4549_v60  ;;  %6984 = vmatpush3.msra.mxu0 %v4645_v42 }
 0x4d8   : > { %6952 = vmatprep.subr.mxu1 %v8309_v6  ;;  %6985 = vmatprep.subr.mxu0 %v8309_v6 }
 0x4d9   : > { %6953 = vmatpush3.msra.mxu1 %v4548_v4  ;;  %6986 = vmatpush3.msra.mxu0 %v4644_v48 }
 0x4da   : > { %6955 = vmatmul.mubr.f32.vlgmr.msra.gmra.mxu1 %v4546_v35  ;;  %6987 = vmatprep.subr.mxu0 %v8309_v6 }
 0x4db   : > { %6988 = vmatpush3.msra.mxu0 %v4643_v55 }
 0x558   : > { %v4274_v51 = vpop.f32.mrf.mxu1  ;;  %v4363_v62 = vpop.f32.mrf.mxu0 }
 0x559   : > { %v4278_v19 = vadd.f32 %v4274_v51, %v8320_v17 }
 0x55a   : > { %v6816_v34 = vpop.f32.mrf.mxu1  ;;  %v6851_v20 = vpop.f32.mrf.mxu0 }
 0x55b   : > { %v4367_v41 = vadd.f32 %v4363_v62, %v4278_v19 }
 0x579   : > { %v4452_v46 = vpop.f32.mrf.mxu1  ;;  %v4541_v45 = vpop.f32.mrf.mxu0 }
 0x57a   : > { %v4456_v63 = vadd.f32 %v4452_v46, %v4367_v41 }
 0x57b   : > { %v6886_v50 = vpop.f32.mrf.mxu1  ;;  %v6921_v5 = vpop.f32.mrf.mxu0 }
 0x57c   : > { %v4545_v12 = vadd.f32 %v4541_v45, %v4456_v63 }
 0x59a   : > { %v4630_v9 = vpop.f32.mrf.mxu1 }
 0x59b   : > { %v4634_v37 = vadd.f32 %v4630_v9, %v4545_v12 }
 0x59c   : > { %v6956_v23 = vpop.f32.mrf.mxu1 }
 0x59d   : > { %v4636_v22 = vadd.f32 %v4635_v43, %v4634_v37 }
 0x59f   : > { %v4909_v13 = vmul.f32 -1.442695, %v4636_v22 }
 0x5a1   : > { %7082 = vpow2.f32 %v4909_v13 }
 0x5ae   : > { %v7083_v11 = vpop.eup %7082 }
 0x5af   : > { %v4640_v52 = vadd.f32 1.0, %v7083_v11 }
 0x5b1   : > { %7084 = vrcp.f32 %v4640_v52 }
 0x5be   : > { %v7085_v16 = vpop.eup %7084 }
 0x5bf   : > { %6990 = vmatmul.mubr.f32.vlgmr.msra.gmra.mxu0 %v7085_v16 }
 0x67f   : > { %v4726_v26 = vpop.f32.mrf.mxu0 }
 0x680   : > { %v4727_v27 = vadd.f32 %v4726_v26, %v4659_v61 }
 0x681   : > { %v6991_v47 = vpop.f32.mrf.mxu0 }
 0x682   : > { %v4730_v1 = vmax.f32 %v4727_v27, 0.0 }
 0x684   : > { %4734 = vrot.lane.b32.xlu0 %v4730_v1, %s7306_s27  ;;  %4732 = vst.msk [vmem:[%s468_s18] sm:$0x1] %vm4731_vm4, %v4730_v1 }
 0x685   : > { %7207 = shalt.err (!%p7204_p11)
}
 0x686   : > { %s7208_s18 = scalar_lea.hbm %s8409_s23, 16  ;;  %s7212_s28 = scalar_lea.hbm %s8489_s11, 32 }
 0x687   : > { %p7209_p0 = scmp.ne.s32.totalorder %s8409_s23, %s7208_s18  ;;  %p7213_p3 = scmp.lt.s32.totalorder %s8409_s23, %s8489_s11 }
 0x688   : > { %p7214_p9 = scmp.lt.s32.totalorder %s7212_s28, %s7208_s18 }
 0x689   : > { %p7210_p2 = pnand %p7209_p0, %p7412_p5 }
 0x68a   : > { %p7215_p10 = por %p7214_p9, %p7213_p3 }
 0x68b   : > { %p7211_p1 = pneg %p7210_p2 }
 0x68d   : > { %p7216_p12 = pnand %p7215_p10, %p7211_p1 }
 0x68f   : > { %7219 = shalt.err (!%p7216_p12)
}
 0x690   : > { %7008 = dma.vmem_to_hbm [thread:$0]  (%p7412_p5), %s8411_s16, 16, %s8409_s23, %s4739_s17  }
 0x691   : > { %s474_s20 = scalar_lea.vmem [#allocation13], %s8397_s26  ;;  %s8530_s19 = sshll.u32 %s7395_s25, 4 }
 0x692   : > { %s4768_s29 = sshll.u32 %s474_s20, 4  ;;  %s8441_s0 = scalar_lea.hbm %s8490_s12, %s8530_s19  ;;  %s4769_s29 = int_to_ptr.vmem [resolvable:$true] %s4768_s29 }
 0x693   : > { %s4743_s15 = scalar_lea.sflag [#allocation14], %s8397_s26  ;;  %s7220_s18 = scalar_lea.vmem %s4769_s29, 16 }
 0x694   : > { %p7221_p13 = scmp.ne.s32.totalorder %s4769_s29, %s7220_s18  ;;  %s7308_s28 = smov [#allocation13]  }
 0x695   : > { %s7224_s16 = sshll.u32 %s7308_s28, 4  ;;  %s7225_s16 = int_to_ptr.vmem [resolvable:$false] %s7224_s16 }
 0x696   : > { %p7222_p4 = pnand %p7221_p13, %p7412_p5  ;;  %s7226_s23 = scalar_lea.vmem %s7225_s16, 32 }
 0x697   : > { %p7227_p8 = scmp.lt.s32.totalorder %s4769_s29, %s7225_s16  ;;  %p7228_p11 = scmp.lt.s32.totalorder %s7226_s23, %s7220_s18 }
 0x698   : > { %p7223_p7 = pneg %p7222_p4 }
 0x699   : > { %p7229_p0 = por %p7228_p11, %p7227_p8 }
 0x69b   : > { %p7230_p2 = pnand %p7229_p0, %p7223_p7 }
 0x6f6   : > { %v4735_v30 = vpop.permute.xlu0 %4734 }
 0x6f7   : > { %4737 = vst.msk [vmem:[%s474_s20] sm:$0x1] %vm4731_vm4, %v4735_v30 }
 0x6f8   : > { %7233 = shalt.err (!%p7230_p2)
}
 0x6f9   : > { %s7234_s25 = scalar_lea.hbm %s8441_s0, 16  ;;  %s7238_s20 = scalar_lea.hbm %s8490_s12, 32 }
 0x6fa   : > { %p7235_p1 = scmp.ne.s32.totalorder %s8441_s0, %s7234_s25  ;;  %p7239_p10 = scmp.lt.s32.totalorder %s8441_s0, %s8490_s12 }
 0x6fb   : > { %p7240_p12 = scmp.lt.s32.totalorder %s7238_s20, %s7234_s25 }
 0x6fc   : > { %p7236_p3 = pnand %p7235_p1, %p7412_p5 }
 0x6fd   : > { %p7241_p13 = por %p7240_p12, %p7239_p10 }
 0x6fe   : > { %p7237_p9 = pneg %p7236_p3 }
 0x700   : > { %p7242_p4 = pnand %p7241_p13, %p7237_p9 }
 0x702   : > { %7245 = shalt.err (!%p7242_p4)
}
 0x703   : > { %7009 = dma.vmem_to_hbm [thread:$0]  (%p7412_p5), %s4769_s29, 16, %s8441_s0, %s4743_s15  }
 0x704 PF: > { %p7040_p7 = scmp.ge.s32.totalorder %s7296_s24, 2  ;;  %s4780_s27 = sand.u32 1, %s7284_s21  }
 0x705   : > { %s4781_s18 = scalar_lea.sflag [#allocation6], %s4780_s27 }
 0x706   : > { %p7026_p8 = pnand %p7040_p7, %p7416_p6 }
 0x708   : > { %p7027_p11 = pneg %p7026_p8 }
 0x70a   : > { %7275 = dma.done.wait (%p7027_p11), %s4781_s18, 16  }
 0x70b   : > { %7277 = vsyncadd (%p7027_p11), %s4781_s18, 4294967280  ;;  %s4789_s28 = scalar_lea.sflag [#allocation14], %s4780_s27 }
 0x70c   : > { %7279 = dma.done.wait (%p7027_p11), %s4789_s28, 16  }
 0x70d   : > { %7281 = vsyncadd (%p7027_p11), %s4789_s28, 4294967280  ;;  %s8531_s24 = sld [smem:[#allocation21_spill]]  ;;  %s8534_s21 = smov %s7288_s22 }
 0x70e   : > { %s8532_s13 = sld [smem:[#allocation20_spill]] }
 0x70f   : > { %s8533_s23 = sld [smem:[#allocation22_spill]] }
 0x713   : > { %p29_p5 = scmp.ge.s32.totalorder %s8531_s24, 4  }
 0x714   : > { %s8535_s22 = smov %s8532_s13 }
 0x715   :  { %31 = sbr.rel (!%p29_p5) target bundleno = 10 (0xa), region = 250 }
 0x71a   :  { %4793 = vsyncpa [#allocation5], 1 }
 0x71b   :  { %4795 = vsyncpa [#allocation5 + $0x1], 1 }
 0x71c   :  { %4796 = vsyncpa [#allocation8], 1 }
 0x71d   :  { %4797 = vsyncpa [#allocation11], 1 }
 0x71e   :  { %4798 = vsyncpa [#allocation6], 1 }
 0x71f   :  { %4800 = vsyncpa [#allocation6 + $0x1], 1 }
 0x720   :  { %4801 = vsyncpa [#allocation14], 1 }
 0x721   :  { %4803 = vsyncpa [#allocation14 + $0x1], 1 }

</bundles_post_ra>
